<compile_context>
chip_gen: v6e
topology: v6e:2x2x1
jax: 0.10.0
libtpu: 0.0.40
codegen_flags: <defaults>
</compile_context>

<pallas_src>
import functools

import jax
import jax.numpy as jnp
from jax import lax
from jax.experimental import pallas as pl
from jax.experimental.pallas import tpu as pltpu

BN_EPS = 1e-5
HIDDEN = (256, 128, 64, 16)          # widths of the 4 BN layers
NUM_BN = len(HIDDEN)
NUM_PASSES = NUM_BN + 1              # 4 stat passes + 1 output pass (Path B)
PP_ROWS, PP_COLS = 16, 256           # packed small-parameter array

# v7x has 64 MiB VMEM per TensorCore (vs 128 MiB on v5e/v6e): keep all
# requested budgets v7x-safe.
_VMEM_BUDGET_BYTES = 40 * 1024 * 1024


def _round_up(v, m):
    return ((v + m - 1) // m) * m


def _pack_params(params):
    """Pack b1..b4, g1..g4, be1..be4, w5, b5 into one (16, 256) f32 array."""
    pp = jnp.zeros((PP_ROWS, PP_COLS), jnp.float32)
    for l, f in enumerate(HIDDEN):
        pp = pp.at[3 * l + 0, :f].set(params[f"b{l + 1}"].reshape(f))
        pp = pp.at[3 * l + 1, :f].set(params[f"g{l + 1}"].reshape(f))
        pp = pp.at[3 * l + 2, :f].set(params[f"be{l + 1}"].reshape(f))
    pp = pp.at[12, :HIDDEN[-1]].set(params["w5"].reshape(HIDDEN[-1]))
    pp = pp.at[13, 0].set(params["b5"].reshape(()))
    return pp


def _small_params(pp_ref, l, f):
    b_row = pp_ref[3 * l + 0:3 * l + 1, :f]      # (1, f)
    g_row = pp_ref[3 * l + 1:3 * l + 2, :f]
    be_row = pp_ref[3 * l + 2:3 * l + 3, :f]
    return b_row, g_row, be_row


# --------------------------------------------------------------------------
# Path A: whole batch resident in VMEM, single grid step.
# --------------------------------------------------------------------------
def nyc_single_pass_kernel(n_true, x_ref, w1_ref, w2_ref, w3_ref, w4_ref,
                           pp_ref, o_ref):
    n_pad = x_ref.shape[0]
    row_ids = lax.broadcasted_iota(jnp.int32, (n_pad, 1), 0)
    mask = (row_ids < n_true).astype(jnp.float32)    # padded rows -> 0
    inv_n = 1.0 / float(n_true)

    h_mxu = x_ref[...]                               # (n_pad, cols) bf16
    h = None
    for l, (f, w_ref) in enumerate(
            zip(HIDDEN, (w1_ref, w2_ref, w3_ref, w4_ref))):
        b_row, g_row, be_row = _small_params(pp_ref, l, f)
        z = jnp.dot(h_mxu, w_ref[...], preferred_element_type=jnp.float32)
        z = jnp.maximum(z + b_row, 0.0)              # (n_pad, f) f32
        # Full-batch BN statistics (masked, centered variance, clamped).
        mu = jnp.sum(z * mask, axis=0, keepdims=True) * inv_n
        zc = (z - mu) * mask
        var = jnp.maximum(jnp.sum(zc * zc, axis=0, keepdims=True) * inv_n, 0.0)
        scale = g_row * lax.rsqrt(var + BN_EPS)
        shift = be_row - mu * scale
        h = z * scale + shift
        h_mxu = h.astype(jnp.bfloat16)

    # Final linear (16 -> 1): tiny, do it on the VPU/XLU.
    w5_row = pp_ref[12:13, :HIDDEN[-1]]              # (1, 16)
    b5 = pp_ref[13:14, 0:1]                          # (1, 1)
    o_ref[...] = jnp.sum(h * w5_row, axis=1, keepdims=True) + b5


# --------------------------------------------------------------------------
# Path B: multi-pass streaming over batch tiles (large N).
# --------------------------------------------------------------------------
def nyc_multi_pass_kernel(n_true, block_n,
                          x_ref, w1_ref, w2_ref, w3_ref, w4_ref, pp_ref,
                          o_ref, stats_ref, ss_ref):
    p = pl.program_id(0)          # pass index (0..3 = BN stat passes, 4 = output)
    i = pl.program_id(1)          # batch-tile index
    nb = pl.num_programs(1)

    @pl.when((p == 0) & (i == 0))
    def _init():
        stats_ref[...] = jnp.zeros_like(stats_ref)   # running sum / sum(z^2)
        ss_ref[...] = jnp.zeros_like(ss_ref)         # finalized scale / shift

    row_ids = lax.broadcasted_iota(jnp.int32, (block_n, 1), 0)
    mask = (row_ids + i * block_n < n_true).astype(jnp.float32)
    inv_n = 1.0 / float(n_true)

    h = x_ref[...]                                   # (block_n, cols) bf16
    for l, (f, w_ref) in enumerate(
            zip(HIDDEN, (w1_ref, w2_ref, w3_ref, w4_ref))):
        b_row, g_row, be_row = _small_params(pp_ref, l, f)
        w = w_ref[...]                               # VMEM-resident bf16

        def _linear_relu(h=h, w=w, b_row=b_row):
            zz = jnp.dot(h.astype(jnp.bfloat16), w,
                         preferred_element_type=jnp.float32)
            return jnp.maximum(zz + b_row, 0.0)      # (block_n, f) f32

        if l == 0:
            z = _linear_relu()
        else:
            # Layers with l > p are provably dead in pass p: skip their MXU /
            # VPU work entirely (pure-value lax.cond; ref writes stay outside).
            z = lax.cond(p >= l, _linear_relu,
                         lambda f=f: jnp.zeros((block_n, f), jnp.float32))

        # Pass l: accumulate single-pass moments of z over the (masked) batch.
        @pl.when(p == l)
        def _acc(z=z, l=l, f=f):
            zm = z * mask
            stats_ref[2 * l:2 * l + 1, :f] += jnp.sum(zm, axis=0, keepdims=True)
            stats_ref[2 * l + 1:2 * l + 2, :f] += jnp.sum(z * zm, axis=0,
                                                          keepdims=True)

        # End of pass l: fold mean/var + affine into scale/shift (once).
        @pl.when((p == l) & (i == nb - 1))
        def _finalize(l=l, f=f, g_row=g_row, be_row=be_row):
            s1 = stats_ref[2 * l:2 * l + 1, :f]
            s2 = stats_ref[2 * l + 1:2 * l + 2, :f]
            mu = s1 * inv_n
            var = jnp.maximum(s2 * inv_n - mu * mu, 0.0)   # clamp cancellation
            scale = g_row * lax.rsqrt(var + BN_EPS)
            ss_ref[2 * l:2 * l + 1, :f] = scale
            ss_ref[2 * l + 1:2 * l + 2, :f] = be_row - mu * scale

        # scale/shift rows are still zero for not-yet-finalized layers -> h==0.
        h = z * ss_ref[2 * l:2 * l + 1, :f] + ss_ref[2 * l + 1:2 * l + 2, :f]

    @pl.when(p == NUM_PASSES - 1)
    def _output(h=h):
        w5_row = pp_ref[12:13, :HIDDEN[-1]]
        b5 = pp_ref[13:14, 0:1]
        o_ref[...] = jnp.sum(h * w5_row, axis=1, keepdims=True) + b5


# --------------------------------------------------------------------------
# Wrapper
# --------------------------------------------------------------------------
def _cost_single(n_pad, cols, w_bytes):
    per_row = 2 * (cols * 256 + 256 * 128 + 128 * 64 + 64 * 16 + 16)
    return pl.CostEstimate(flops=n_pad * per_row, transcendentals=sum(HIDDEN),
                           bytes_accessed=n_pad * (2 * cols + 4) + w_bytes)


def _cost_multi(n_pad, cols, w_bytes):
    # Layer l is recomputed in passes l..NUM_BN (dead layers are skipped).
    layer_flops = (2 * cols * 256, 2 * 256 * 128, 2 * 128 * 64, 2 * 64 * 16)
    per_row = sum((NUM_PASSES - l) * fl for l, fl in enumerate(layer_flops)) + 2 * 16
    return pl.CostEstimate(
        flops=n_pad * per_row, transcendentals=sum(HIDDEN),
        bytes_accessed=NUM_PASSES * n_pad * cols * 2 + n_pad * 4 + w_bytes)


def init_params(cols, key):
    dims = [cols, 256, 128, 64, 16, 1]
    keys = jax.random.split(key, 2 * (len(dims) - 1))
    params = {}
    for i in range(len(dims) - 1):
        fan_in, fan_out = dims[i], dims[i + 1]
        bound = 1.0 / jnp.sqrt(jnp.float32(fan_in))
        params[f"w{i + 1}"] = jax.random.uniform(
            keys[2 * i], (fan_in, fan_out), jnp.float32, -bound, bound)
        params[f"b{i + 1}"] = jax.random.uniform(
            keys[2 * i + 1], (1, fan_out), jnp.float32, -bound, bound)
    for i, f in enumerate(HIDDEN, start=1):          # fresh BN: gamma=1, beta=0
        params[f"g{i}"] = jnp.ones((1, f), jnp.float32)
        params[f"be{i}"] = jnp.zeros((1, f), jnp.float32)
    return params


@functools.partial(jax.jit, static_argnames=("block_n", "max_single_pass_rows"))
def nyc_model_forward(x, params, *, block_n=2048, max_single_pass_rows=4096):
    """x: (N, cols) float32 (already concatenated, like torch.cat(x, dim=1))."""
    n, cols = x.shape

    # Weights as bf16 (MXU-native, half the HBM/VMEM bytes); small params packed.
    w1 = params["w1"].astype(jnp.bfloat16)
    w2 = params["w2"].astype(jnp.bfloat16)
    w3 = params["w3"].astype(jnp.bfloat16)
    w4 = params["w4"].astype(jnp.bfloat16)
    pp = _pack_params(params)
    w_bytes = 2 * (w1.size + w2.size + w3.size + w4.size) + 4 * pp.size

    # ---- Path A: whole batch resident in VMEM, single pass. ---------------
    n_pad_a = _round_up(n, 16)
    # per-row: bf16 x + a few f32/bf16 temps of the widest (256-wide) layer.
    per_row_bytes = 2 * cols + 3 * 4 * HIDDEN[0] + 2 * HIDDEN[0]
    single_pass_ok = (n <= max_single_pass_rows and
                      n_pad_a * per_row_bytes + w_bytes <= _VMEM_BUDGET_BYTES)

    if single_pass_ok:
        x_b = x.astype(jnp.bfloat16)
        if n_pad_a != n:
            x_b = jnp.pad(x_b, ((0, n_pad_a - n), (0, 0)))
        out = pl.pallas_call(
            functools.partial(nyc_single_pass_kernel, n),
            out_shape=jax.ShapeDtypeStruct((n_pad_a, 1), jnp.float32),
            grid=(1,),
            in_specs=[
                pl.BlockSpec((n_pad_a, cols), lambda g: (0, 0)),
                pl.BlockSpec(w1.shape, lambda g: (0, 0)),
                pl.BlockSpec(w2.shape, lambda g: (0, 0)),
                pl.BlockSpec(w3.shape, lambda g: (0, 0)),
                pl.BlockSpec(w4.shape, lambda g: (0, 0)),
                pl.BlockSpec(pp.shape, lambda g: (0, 0)),
            ],
            out_specs=pl.BlockSpec((n_pad_a, 1), lambda g: (0, 0)),
            compiler_params=pltpu.CompilerParams(
                dimension_semantics=("arbitrary",),
                vmem_limit_bytes=_VMEM_BUDGET_BYTES),
            cost_estimate=_cost_single(n_pad_a, cols, w_bytes),
        )(x_b, w1, w2, w3, w4, pp)
        return out[:n]

    # ---- Path B: multi-pass streaming over 128-aligned batch tiles. -------
    block_n = max(128, _round_up(min(block_n, _round_up(n, 128)), 128))
    n_pad = _round_up(n, block_n)
    nb = n_pad // block_n
    x_b = x.astype(jnp.bfloat16)
    if n_pad != n:
        x_b = jnp.pad(x_b, ((0, n_pad - n), (0, 0)))   # padded rows masked in-kernel

    kernel = functools.partial(nyc_multi_pass_kernel, n, block_n)
    last = NUM_PASSES - 1

    out = pl.pallas_call(
        kernel,
        out_shape=jax.ShapeDtypeStruct((n_pad, 1), jnp.float32),
        grid_spec=pltpu.PrefetchScalarGridSpec(
            num_scalar_prefetch=0,
            grid=(NUM_PASSES, nb),
            in_specs=[
                # x: streamed per batch tile (double-buffered pipeline), bf16.
                pl.BlockSpec((block_n, cols), lambda p, i: (i, 0)),
                # weights / packed params: constant block -> VMEM-resident.
                pl.BlockSpec(w1.shape, lambda p, i: (0, 0)),
                pl.BlockSpec(w2.shape, lambda p, i: (0, 0)),
                pl.BlockSpec(w3.shape, lambda p, i: (0, 0)),
                pl.BlockSpec(w4.shape, lambda p, i: (0, 0)),
                pl.BlockSpec(pp.shape, lambda p, i: (0, 0)),
            ],
            # Park the output block on tile 0 during stat passes (p // last == 0)
            # so only the final pass's valid tiles are ever flushed to HBM.
            out_specs=pl.BlockSpec((block_n, 1),
                                   lambda p, i: (i * (p // last), 0)),
            scratch_shapes=[
                pltpu.VMEM((2 * NUM_BN, PP_COLS), jnp.float32),  # sum / sum(z^2)
                pltpu.VMEM((2 * NUM_BN, PP_COLS), jnp.float32),  # scale / shift
            ],
        ),
        compiler_params=pltpu.CompilerParams(
            # Both axes carry cross-step BN scratch state -> serial execution.
            dimension_semantics=("arbitrary", "arbitrary"),
            vmem_limit_bytes=32 * 1024 * 1024,
        ),
        cost_estimate=_cost_multi(n_pad, cols, w_bytes),
    )(x_b, w1, w2, w3, w4, pp)
    return out[:n]


# --------------------------------------------------------------------------
# References
# --------------------------------------------------------------------------
def reference_forward(x, params):
    """Pure-JAX f32 reference with the PyTorch module's semantics."""
    def block(h, w, b, g, be):
        z = jnp.maximum(h @ w + b, 0.0)
        mu = jnp.mean(z, axis=0, keepdims=True)
        var = jnp.mean((z - mu) ** 2, axis=0, keepdims=True)
        return (z - mu) / jnp.sqrt(var + BN_EPS) * g + be

    h = x
    for l in range(1, 5):
        h = block(h, params[f"w{l}"], params[f"b{l}"],
                  params[f"g{l}"], params[f"be{l}"])
    return h @ params["w5"] + params["b5"]


def kernel_numerics_reference(x, params, *, centered_var):
    """Mirrors the kernels' numerics (bf16 MXU operands, f32 BN math)."""
    n = x.shape[0]
    inv_n = 1.0 / n
    h_mxu = x.astype(jnp.bfloat16)
    h = None
    for l, f in enumerate(HIDDEN, start=1):
        w = params[f"w{l}"].astype(jnp.bfloat16)
        z = jnp.dot(h_mxu, w, preferred_element_type=jnp.float32)
        z = jnp.maximum(z + params[f"b{l}"], 0.0)
        mu = jnp.sum(z, axis=0, keepdims=True) * inv_n
        if centered_var:
            var = jnp.sum((z - mu) ** 2, axis=0, keepdims=True) * inv_n
        else:
            var = jnp.sum(z * z, axis=0, keepdims=True) * inv_n - mu * mu
        var = jnp.maximum(var, 0.0)
        scale = params[f"g{l}"] * lax.rsqrt(var + BN_EPS)
        shift = params[f"be{l}"] - mu * scale
        h = z * scale + shift
        h_mxu = h.astype(jnp.bfloat16)
    return h @ params["w5"] + params["b5"]


if __name__ == "__main__":
    key = jax.random.PRNGKey(0)
    k_params, k_x1, k_x2 = jax.random.split(key, 3)

    batch = 200          # deliberately NOT a multiple of any tile size
    cols = 32            # total feature columns after torch.cat(x, dim=1)

    # forward(*x) concatenates its inputs along dim=1 -> do that glue in JAX.
    x_a = jax.random.normal(k_x1, (batch, 20), jnp.float32)
    x_b = jax.random.normal(k_x2, (batch, cols - 20), jnp.float32)
    x = jnp.concatenate([x_a, x_b], axis=1)          # (200, 32)

    params = init_params(cols, k_params)
    ref_32 = reference_forward(x, params)

    # ---- Path A: single-pass whole-batch-in-VMEM (the default here). ------
    out_a = jax.block_until_ready(nyc_model_forward(x, params))
    assert out_a.shape == (batch, 1), out_a.shape
    ref_a = kernel_numerics_reference(x, params, centered_var=True)
    err_a = float(jnp.max(jnp.abs(out_a - ref_a)))
    assert jnp.allclose(out_a, ref_a, atol=3e-3, rtol=3e-3), ("path A", err_a)
    assert jnp.allclose(out_a, ref_32, atol=1e-1, rtol=1e-1), (
        "path A vs f32", float(jnp.max(jnp.abs(out_a - ref_32))))

    # ---- Path B: forced multi-pass streaming path (correctness exercise at a
    # tiny tile; production default is block_n=2048). ------------------------
    out_b = jax.block_until_ready(
        nyc_model_forward(x, params, block_n=128, max_single_pass_rows=0))
    assert out_b.shape == (batch, 1), out_b.shape
    ref_b = kernel_numerics_reference(x, params, centered_var=False)
    err_b = float(jnp.max(jnp.abs(out_b - ref_b)))
    assert jnp.allclose(out_b, ref_b, atol=3e-3, rtol=3e-3), ("path B", err_b)
    assert jnp.allclose(out_b, ref_32, atol=1e-1, rtol=1e-1), (
        "path B vs f32", float(jnp.max(jnp.abs(out_b - ref_32))))

    print("KERNEL_OK")
</pallas_src>

<mosaic_0001>
module attributes {stable_mosaic.version = 11 : i64} {
  func.func @nyc_single_pass_kernel(%arg0: i32, %arg1: memref<208x32xbf16, #tpu.memory_space<vmem>>, %arg2: memref<32x256xbf16, #tpu.memory_space<vmem>>, %arg3: memref<256x128xbf16, #tpu.memory_space<vmem>>, %arg4: memref<128x64xbf16, #tpu.memory_space<vmem>>, %arg5: memref<64x16xbf16, #tpu.memory_space<vmem>>, %arg6: memref<16x256xf32, #tpu.memory_space<vmem>>, %arg7: memref<208x1xf32, #tpu.memory_space<vmem>>) attributes {dimension_semantics = [#tpu.dimension_semantics<arbitrary>], iteration_bounds = array<i64: 1>, scalar_prefetch = 0 : i64, scratch_operands = 0 : i64, tpu.core_type = #tpu.core_type<tc>, window_params = [{pipeline_mode = #tpu.pipeline_mode<synchronous>, transform_indices = @transform_0, window_bounds = array<i64: 208, 32>}, {pipeline_mode = #tpu.pipeline_mode<synchronous>, transform_indices = @transform_1, window_bounds = array<i64: 32, 256>}, {pipeline_mode = #tpu.pipeline_mode<synchronous>, transform_indices = @transform_2, window_bounds = array<i64: 256, 128>}, {pipeline_mode = #tpu.pipeline_mode<synchronous>, transform_indices = @transform_3, window_bounds = array<i64: 128, 64>}, {pipeline_mode = #tpu.pipeline_mode<synchronous>, transform_indices = @transform_4, window_bounds = array<i64: 64, 16>}, {pipeline_mode = #tpu.pipeline_mode<synchronous>, transform_indices = @transform_5, window_bounds = array<i64: 16, 256>}, {pipeline_mode = #tpu.pipeline_mode<synchronous>, transform_indices = @transform_6, window_bounds = array<i64: 208, 1>}]} {
    %0 = tpu.iota {dimensions = array<i32: 0>} : vector<208x1xi32>
    %c200_i32 = arith.constant 200 : i32
    %1 = vector.broadcast %c200_i32 : i32 to vector<208x1xi32>
    %2 = arith.cmpi slt, %0, %1 : vector<208x1xi32>
    %3 = arith.extui %2 : vector<208x1xi1> to vector<208x1xi32>
    %4 = arith.sitofp %3 : vector<208x1xi32> to vector<208x1xf32>
    %c0 = arith.constant 0 : index
    %c0_0 = arith.constant 0 : index
    %5 = vector.load %arg1[%c0, %c0_0] : memref<208x32xbf16, #tpu.memory_space<vmem>>, vector<208x32xbf16>
    %c0_1 = arith.constant 0 : index
    %c0_2 = arith.constant 0 : index
    %6 = vector.load %arg6[%c0_1, %c0_2] : memref<16x256xf32, #tpu.memory_space<vmem>>, vector<1x256xf32>
    %c1 = arith.constant 1 : index
    %c0_3 = arith.constant 0 : index
    %7 = vector.load %arg6[%c1, %c0_3] : memref<16x256xf32, #tpu.memory_space<vmem>>, vector<1x256xf32>
    %c2 = arith.constant 2 : index
    %c0_4 = arith.constant 0 : index
    %8 = vector.load %arg6[%c2, %c0_4] : memref<16x256xf32, #tpu.memory_space<vmem>>, vector<1x256xf32>
    %c0_5 = arith.constant 0 : index
    %c0_6 = arith.constant 0 : index
    %9 = vector.load %arg2[%c0_5, %c0_6] : memref<32x256xbf16, #tpu.memory_space<vmem>>, vector<32x256xbf16>
    %cst = arith.constant dense<0.000000e+00> : vector<208x256xf32>
    %10 = tpu.matmul %5, %9, %cst {dimension_numbers = #tpu.dot_dimension_numbers<[1], [0], [0], [1], [0, 0, 1, 1], [], []>} : vector<208x32xbf16>, vector<32x256xbf16>, vector<208x256xf32> -> vector<208x256xf32>
    %11 = vector.broadcast %6 : vector<1x256xf32> to vector<208x256xf32>
    %12 = arith.addf %10, %11 : vector<208x256xf32>
    %cst_7 = arith.constant 0.000000e+00 : f32
    %13 = vector.broadcast %cst_7 : f32 to vector<208x256xf32>
    %14 = arith.maximumf %12, %13 : vector<208x256xf32>
    %15 = vector.broadcast %4 : vector<208x1xf32> to vector<208x256xf32>
    %16 = arith.mulf %14, %15 : vector<208x256xf32>
    %cst_8 = arith.constant dense<0.000000e+00> : vector<256xf32>
    %17 = vector.multi_reduction <add>, %16, %cst_8 [0] : vector<208x256xf32> to vector<256xf32>
    %18 = vector.shape_cast %17 : vector<256xf32> to vector<1x256xf32>
    %cst_9 = arith.constant 5.000000e-03 : f32
    %19 = vector.broadcast %cst_9 : f32 to vector<1x256xf32>
    %20 = arith.mulf %18, %19 : vector<1x256xf32>
    %21 = vector.broadcast %20 : vector<1x256xf32> to vector<208x256xf32>
    %22 = arith.subf %14, %21 : vector<208x256xf32>
    %23 = vector.broadcast %4 : vector<208x1xf32> to vector<208x256xf32>
    %24 = arith.mulf %22, %23 : vector<208x256xf32>
    %25 = arith.mulf %24, %24 : vector<208x256xf32>
    %cst_10 = arith.constant dense<0.000000e+00> : vector<256xf32>
    %26 = vector.multi_reduction <add>, %25, %cst_10 [0] : vector<208x256xf32> to vector<256xf32>
    %27 = vector.shape_cast %26 : vector<256xf32> to vector<1x256xf32>
    %cst_11 = arith.constant 5.000000e-03 : f32
    %28 = vector.broadcast %cst_11 : f32 to vector<1x256xf32>
    %29 = arith.mulf %27, %28 : vector<1x256xf32>
    %cst_12 = arith.constant 0.000000e+00 : f32
    %30 = vector.broadcast %cst_12 : f32 to vector<1x256xf32>
    %31 = arith.maximumf %29, %30 : vector<1x256xf32>
    %cst_13 = arith.constant 9.99999974E-6 : f32
    %32 = vector.broadcast %cst_13 : f32 to vector<1x256xf32>
    %33 = arith.addf %31, %32 : vector<1x256xf32>
    %34 = math.rsqrt %33 : vector<1x256xf32>
    %35 = arith.mulf %7, %34 : vector<1x256xf32>
    %36 = arith.mulf %20, %35 : vector<1x256xf32>
    %37 = arith.subf %8, %36 : vector<1x256xf32>
    %38 = vector.broadcast %35 : vector<1x256xf32> to vector<208x256xf32>
    %39 = arith.mulf %14, %38 : vector<208x256xf32>
    %40 = vector.broadcast %37 : vector<1x256xf32> to vector<208x256xf32>
    %41 = arith.addf %39, %40 : vector<208x256xf32>
    %42 = arith.truncf %41 : vector<208x256xf32> to vector<208x256xbf16>
    %c3 = arith.constant 3 : index
    %c0_14 = arith.constant 0 : index
    %43 = vector.load %arg6[%c3, %c0_14] : memref<16x256xf32, #tpu.memory_space<vmem>>, vector<1x128xf32>
    %c4 = arith.constant 4 : index
    %c0_15 = arith.constant 0 : index
    %44 = vector.load %arg6[%c4, %c0_15] : memref<16x256xf32, #tpu.memory_space<vmem>>, vector<1x128xf32>
    %c5 = arith.constant 5 : index
    %c0_16 = arith.constant 0 : index
    %45 = vector.load %arg6[%c5, %c0_16] : memref<16x256xf32, #tpu.memory_space<vmem>>, vector<1x128xf32>
    %c0_17 = arith.constant 0 : index
    %c0_18 = arith.constant 0 : index
    %46 = vector.load %arg3[%c0_17, %c0_18] : memref<256x128xbf16, #tpu.memory_space<vmem>>, vector<256x128xbf16>
    %cst_19 = arith.constant dense<0.000000e+00> : vector<208x128xf32>
    %47 = tpu.matmul %42, %46, %cst_19 {dimension_numbers = #tpu.dot_dimension_numbers<[1], [0], [0], [1], [0, 0, 1, 1], [], []>} : vector<208x256xbf16>, vector<256x128xbf16>, vector<208x128xf32> -> vector<208x128xf32>
    %48 = vector.broadcast %43 : vector<1x128xf32> to vector<208x128xf32>
    %49 = arith.addf %47, %48 : vector<208x128xf32>
    %cst_20 = arith.constant 0.000000e+00 : f32
    %50 = vector.broadcast %cst_20 : f32 to vector<208x128xf32>
    %51 = arith.maximumf %49, %50 : vector<208x128xf32>
    %52 = vector.broadcast %4 : vector<208x1xf32> to vector<208x128xf32>
    %53 = arith.mulf %51, %52 : vector<208x128xf32>
    %cst_21 = arith.constant dense<0.000000e+00> : vector<128xf32>
    %54 = vector.multi_reduction <add>, %53, %cst_21 [0] : vector<208x128xf32> to vector<128xf32>
    %55 = vector.shape_cast %54 : vector<128xf32> to vector<1x128xf32>
    %cst_22 = arith.constant 5.000000e-03 : f32
    %56 = vector.broadcast %cst_22 : f32 to vector<1x128xf32>
    %57 = arith.mulf %55, %56 : vector<1x128xf32>
    %58 = vector.broadcast %57 : vector<1x128xf32> to vector<208x128xf32>
    %59 = arith.subf %51, %58 : vector<208x128xf32>
    %60 = vector.broadcast %4 : vector<208x1xf32> to vector<208x128xf32>
    %61 = arith.mulf %59, %60 : vector<208x128xf32>
    %62 = arith.mulf %61, %61 : vector<208x128xf32>
    %cst_23 = arith.constant dense<0.000000e+00> : vector<128xf32>
    %63 = vector.multi_reduction <add>, %62, %cst_23 [0] : vector<208x128xf32> to vector<128xf32>
    %64 = vector.shape_cast %63 : vector<128xf32> to vector<1x128xf32>
    %cst_24 = arith.constant 5.000000e-03 : f32
    %65 = vector.broadcast %cst_24 : f32 to vector<1x128xf32>
    %66 = arith.mulf %64, %65 : vector<1x128xf32>
    %cst_25 = arith.constant 0.000000e+00 : f32
    %67 = vector.broadcast %cst_25 : f32 to vector<1x128xf32>
    %68 = arith.maximumf %66, %67 : vector<1x128xf32>
    %cst_26 = arith.constant 9.99999974E-6 : f32
    %69 = vector.broadcast %cst_26 : f32 to vector<1x128xf32>
    %70 = arith.addf %68, %69 : vector<1x128xf32>
    %71 = math.rsqrt %70 : vector<1x128xf32>
    %72 = arith.mulf %44, %71 : vector<1x128xf32>
    %73 = arith.mulf %57, %72 : vector<1x128xf32>
    %74 = arith.subf %45, %73 : vector<1x128xf32>
    %75 = vector.broadcast %72 : vector<1x128xf32> to vector<208x128xf32>
    %76 = arith.mulf %51, %75 : vector<208x128xf32>
    %77 = vector.broadcast %74 : vector<1x128xf32> to vector<208x128xf32>
    %78 = arith.addf %76, %77 : vector<208x128xf32>
    %79 = arith.truncf %78 : vector<208x128xf32> to vector<208x128xbf16>
    %c6 = arith.constant 6 : index
    %c0_27 = arith.constant 0 : index
    %80 = vector.load %arg6[%c6, %c0_27] : memref<16x256xf32, #tpu.memory_space<vmem>>, vector<1x64xf32>
    %c7 = arith.constant 7 : index
    %c0_28 = arith.constant 0 : index
    %81 = vector.load %arg6[%c7, %c0_28] : memref<16x256xf32, #tpu.memory_space<vmem>>, vector<1x64xf32>
    %c8 = arith.constant 8 : index
    %c0_29 = arith.constant 0 : index
    %82 = vector.load %arg6[%c8, %c0_29] : memref<16x256xf32, #tpu.memory_space<vmem>>, vector<1x64xf32>
    %c0_30 = arith.constant 0 : index
    %c0_31 = arith.constant 0 : index
    %83 = vector.load %arg4[%c0_30, %c0_31] : memref<128x64xbf16, #tpu.memory_space<vmem>>, vector<128x64xbf16>
    %cst_32 = arith.constant dense<0.000000e+00> : vector<208x64xf32>
    %84 = tpu.matmul %79, %83, %cst_32 {dimension_numbers = #tpu.dot_dimension_numbers<[1], [0], [0], [1], [0, 0, 1, 1], [], []>} : vector<208x128xbf16>, vector<128x64xbf16>, vector<208x64xf32> -> vector<208x64xf32>
    %85 = vector.broadcast %80 : vector<1x64xf32> to vector<208x64xf32>
    %86 = arith.addf %84, %85 : vector<208x64xf32>
    %cst_33 = arith.constant 0.000000e+00 : f32
    %87 = vector.broadcast %cst_33 : f32 to vector<208x64xf32>
    %88 = arith.maximumf %86, %87 : vector<208x64xf32>
    %89 = vector.broadcast %4 : vector<208x1xf32> to vector<208x64xf32>
    %90 = arith.mulf %88, %89 : vector<208x64xf32>
    %cst_34 = arith.constant dense<0.000000e+00> : vector<64xf32>
    %91 = vector.multi_reduction <add>, %90, %cst_34 [0] : vector<208x64xf32> to vector<64xf32>
    %92 = vector.shape_cast %91 : vector<64xf32> to vector<1x64xf32>
    %cst_35 = arith.constant 5.000000e-03 : f32
    %93 = vector.broadcast %cst_35 : f32 to vector<1x64xf32>
    %94 = arith.mulf %92, %93 : vector<1x64xf32>
    %95 = vector.broadcast %94 : vector<1x64xf32> to vector<208x64xf32>
    %96 = arith.subf %88, %95 : vector<208x64xf32>
    %97 = vector.broadcast %4 : vector<208x1xf32> to vector<208x64xf32>
    %98 = arith.mulf %96, %97 : vector<208x64xf32>
    %99 = arith.mulf %98, %98 : vector<208x64xf32>
    %cst_36 = arith.constant dense<0.000000e+00> : vector<64xf32>
    %100 = vector.multi_reduction <add>, %99, %cst_36 [0] : vector<208x64xf32> to vector<64xf32>
    %101 = vector.shape_cast %100 : vector<64xf32> to vector<1x64xf32>
    %cst_37 = arith.constant 5.000000e-03 : f32
    %102 = vector.broadcast %cst_37 : f32 to vector<1x64xf32>
    %103 = arith.mulf %101, %102 : vector<1x64xf32>
    %cst_38 = arith.constant 0.000000e+00 : f32
    %104 = vector.broadcast %cst_38 : f32 to vector<1x64xf32>
    %105 = arith.maximumf %103, %104 : vector<1x64xf32>
    %cst_39 = arith.constant 9.99999974E-6 : f32
    %106 = vector.broadcast %cst_39 : f32 to vector<1x64xf32>
    %107 = arith.addf %105, %106 : vector<1x64xf32>
    %108 = math.rsqrt %107 : vector<1x64xf32>
    %109 = arith.mulf %81, %108 : vector<1x64xf32>
    %110 = arith.mulf %94, %109 : vector<1x64xf32>
    %111 = arith.subf %82, %110 : vector<1x64xf32>
    %112 = vector.broadcast %109 : vector<1x64xf32> to vector<208x64xf32>
    %113 = arith.mulf %88, %112 : vector<208x64xf32>
    %114 = vector.broadcast %111 : vector<1x64xf32> to vector<208x64xf32>
    %115 = arith.addf %113, %114 : vector<208x64xf32>
    %116 = arith.truncf %115 : vector<208x64xf32> to vector<208x64xbf16>
    %c9 = arith.constant 9 : index
    %c0_40 = arith.constant 0 : index
    %117 = vector.load %arg6[%c9, %c0_40] : memref<16x256xf32, #tpu.memory_space<vmem>>, vector<1x16xf32>
    %c10 = arith.constant 10 : index
    %c0_41 = arith.constant 0 : index
    %118 = vector.load %arg6[%c10, %c0_41] : memref<16x256xf32, #tpu.memory_space<vmem>>, vector<1x16xf32>
    %c11 = arith.constant 11 : index
    %c0_42 = arith.constant 0 : index
    %119 = vector.load %arg6[%c11, %c0_42] : memref<16x256xf32, #tpu.memory_space<vmem>>, vector<1x16xf32>
    %c0_43 = arith.constant 0 : index
    %c0_44 = arith.constant 0 : index
    %120 = vector.load %arg5[%c0_43, %c0_44] : memref<64x16xbf16, #tpu.memory_space<vmem>>, vector<64x16xbf16>
    %cst_45 = arith.constant dense<0.000000e+00> : vector<208x16xf32>
    %121 = tpu.matmul %116, %120, %cst_45 {dimension_numbers = #tpu.dot_dimension_numbers<[1], [0], [0], [1], [0, 0, 1, 1], [], []>} : vector<208x64xbf16>, vector<64x16xbf16>, vector<208x16xf32> -> vector<208x16xf32>
    %122 = vector.broadcast %117 : vector<1x16xf32> to vector<208x16xf32>
    %123 = arith.addf %121, %122 : vector<208x16xf32>
    %cst_46 = arith.constant 0.000000e+00 : f32
    %124 = vector.broadcast %cst_46 : f32 to vector<208x16xf32>
    %125 = arith.maximumf %123, %124 : vector<208x16xf32>
    %126 = vector.broadcast %4 : vector<208x1xf32> to vector<208x16xf32>
    %127 = arith.mulf %125, %126 : vector<208x16xf32>
    %cst_47 = arith.constant dense<0.000000e+00> : vector<16xf32>
    %128 = vector.multi_reduction <add>, %127, %cst_47 [0] : vector<208x16xf32> to vector<16xf32>
    %129 = vector.shape_cast %128 : vector<16xf32> to vector<1x16xf32>
    %cst_48 = arith.constant 5.000000e-03 : f32
    %130 = vector.broadcast %cst_48 : f32 to vector<1x16xf32>
    %131 = arith.mulf %129, %130 : vector<1x16xf32>
    %132 = vector.broadcast %131 : vector<1x16xf32> to vector<208x16xf32>
    %133 = arith.subf %125, %132 : vector<208x16xf32>
    %134 = vector.broadcast %4 : vector<208x1xf32> to vector<208x16xf32>
    %135 = arith.mulf %133, %134 : vector<208x16xf32>
    %136 = arith.mulf %135, %135 : vector<208x16xf32>
    %cst_49 = arith.constant dense<0.000000e+00> : vector<16xf32>
    %137 = vector.multi_reduction <add>, %136, %cst_49 [0] : vector<208x16xf32> to vector<16xf32>
    %138 = vector.shape_cast %137 : vector<16xf32> to vector<1x16xf32>
    %cst_50 = arith.constant 5.000000e-03 : f32
    %139 = vector.broadcast %cst_50 : f32 to vector<1x16xf32>
    %140 = arith.mulf %138, %139 : vector<1x16xf32>
    %cst_51 = arith.constant 0.000000e+00 : f32
    %141 = vector.broadcast %cst_51 : f32 to vector<1x16xf32>
    %142 = arith.maximumf %140, %141 : vector<1x16xf32>
    %cst_52 = arith.constant 9.99999974E-6 : f32
    %143 = vector.broadcast %cst_52 : f32 to vector<1x16xf32>
    %144 = arith.addf %142, %143 : vector<1x16xf32>
    %145 = math.rsqrt %144 : vector<1x16xf32>
    %146 = arith.mulf %118, %145 : vector<1x16xf32>
    %147 = arith.mulf %131, %146 : vector<1x16xf32>
    %148 = arith.subf %119, %147 : vector<1x16xf32>
    %149 = vector.broadcast %146 : vector<1x16xf32> to vector<208x16xf32>
    %150 = arith.mulf %125, %149 : vector<208x16xf32>
    %151 = vector.broadcast %148 : vector<1x16xf32> to vector<208x16xf32>
    %152 = arith.addf %150, %151 : vector<208x16xf32>
    %c12 = arith.constant 12 : index
    %c0_53 = arith.constant 0 : index
    %153 = vector.load %arg6[%c12, %c0_53] : memref<16x256xf32, #tpu.memory_space<vmem>>, vector<1x16xf32>
    %c13 = arith.constant 13 : index
    %c0_54 = arith.constant 0 : index
    %154 = vector.load %arg6[%c13, %c0_54] : memref<16x256xf32, #tpu.memory_space<vmem>>, vector<1x1xf32>
    %155 = vector.broadcast %153 : vector<1x16xf32> to vector<208x16xf32>
    %156 = arith.mulf %152, %155 : vector<208x16xf32>
    %cst_55 = arith.constant dense<0.000000e+00> : vector<208xf32>
    %157 = vector.multi_reduction <add>, %156, %cst_55 [1] : vector<208x16xf32> to vector<208xf32>
    %158 = vector.shape_cast %157 : vector<208xf32> to vector<208x1xf32>
    %159 = vector.broadcast %154 : vector<1x1xf32> to vector<208x1xf32>
    %160 = arith.addf %158, %159 : vector<208x1xf32>
    %c0_56 = arith.constant 0 : index
    %c0_57 = arith.constant 0 : index
    %161 = vector.load %arg7[%c0_56, %c0_57] : memref<208x1xf32, #tpu.memory_space<vmem>>, vector<208x1xf32>
    tpu.vector_store %arg7[%c0_56, %c0_57], %160 {strides = array<i32>} : memref<208x1xf32, #tpu.memory_space<vmem>>, vector<208x1xf32>,
    return
  }
  func.func @transform_0(%arg0: i32) -> (i32, i32) {
    %c0_i32 = arith.constant 0 : i32
    %c0_i32_0 = arith.constant 0 : i32
    %c0_i32_1 = arith.constant 0 : i32
    return %c0_i32, %c0_i32_0 : i32, i32
  }
  func.func @transform_1(%arg0: i32) -> (i32, i32) {
    %c0_i32 = arith.constant 0 : i32
    %c0_i32_0 = arith.constant 0 : i32
    %c0_i32_1 = arith.constant 0 : i32
    return %c0_i32, %c0_i32_0 : i32, i32
  }
  func.func @transform_2(%arg0: i32) -> (i32, i32) {
    %c0_i32 = arith.constant 0 : i32
    %c0_i32_0 = arith.constant 0 : i32
    %c0_i32_1 = arith.constant 0 : i32
    return %c0_i32, %c0_i32_0 : i32, i32
  }
  func.func @transform_3(%arg0: i32) -> (i32, i32) {
    %c0_i32 = arith.constant 0 : i32
    %c0_i32_0 = arith.constant 0 : i32
    %c0_i32_1 = arith.constant 0 : i32
    return %c0_i32, %c0_i32_0 : i32, i32
  }
  func.func @transform_4(%arg0: i32) -> (i32, i32) {
    %c0_i32 = arith.constant 0 : i32
    %c0_i32_0 = arith.constant 0 : i32
    %c0_i32_1 = arith.constant 0 : i32
    return %c0_i32, %c0_i32_0 : i32, i32
  }
  func.func @transform_5(%arg0: i32) -> (i32, i32) {
    %c0_i32 = arith.constant 0 : i32
    %c0_i32_0 = arith.constant 0 : i32
    %c0_i32_1 = arith.constant 0 : i32
    return %c0_i32, %c0_i32_0 : i32, i32
  }
  func.func @transform_6(%arg0: i32) -> (i32, i32) {
    %c0_i32 = arith.constant 0 : i32
    %c0_i32_0 = arith.constant 0 : i32
    %c0_i32_1 = arith.constant 0 : i32
    return %c0_i32, %c0_i32_0 : i32, i32
  }
}

</mosaic_0001>

<bundles_post_ra>
// kernel: nyc_model_forward.1
= control target key start
LH: loop header
LB: loop body
LE: loop exit
PB: predicated region body
PF: predicated region fallthrough
CT: control target
= control target key end

     0   :  { %v3185_v1 = vmov 0   ;;  %vm260_vm0 = vcmask 261120   ;;  %v165_v37 = vlaneseq  ;;  %vm3188_vm1 = vmmov 0   ;;  %s5158_s1 = inlined_call_operand.vmem [shape: bf16[32,256], index: 1, kind: input, shape index: {}]   ;;  %s5159_s0 = inlined_call_operand.vmem [shape: bf16[208,32], index: 0, kind: input, shape index: {}]   ;;  %s5160_s5 = inlined_call_operand.vmem [shape: f32[16,256], index: 5, kind: input, shape index: {}]   ;;  %s5161_s2 = inlined_call_operand.vmem [shape: bf16[256,128], index: 2, kind: input, shape index: {}]   ;;  %s5162_s3 = inlined_call_operand.vmem [shape: bf16[128,64], index: 3, kind: input, shape index: {}]   ;;  %s5163_s4 = inlined_call_operand.vmem [shape: bf16[64,16], index: 4, kind: input, shape index: {}]   ;;  %s5164_s6 = inlined_call_operand.vmem [shape: f32[208,1], index: 6, kind: output, shape index: {}]  }
   0x1   :  { %v3128_v0 = vld [vmem:[%s5158_s1 + $0x14] ss:$8 sps:$4 sm:$0xff]   ;;  %332 = vmatprep.mubr.bf16.mxu0 %v3185_v1  ;;  %v3130_v2 = vld [vmem:[%s5158_s1 + $0x10] ss:$8 sps:$4 sm:$0xff]   ;;  %v3131_v3 = vld [vmem:[%s5158_s1 + $0x4] ss:$8 sps:$4 sm:$0xff]  }
   0x2   :  { %312 = vmatprep.subr.bf16.mxu0 %v3128_v0  ;;  %v3133_v4 = vld [vmem:[%s5158_s1] ss:$8 sps:$4 sm:$0xff]   ;;  %v3136_v7 = vld [vmem:[%s5159_s0 + $0x10] sm:$0xff]   ;;  %v3137_v8 = vld [vmem:[%s5159_s0 + $0x18] sm:$0xff]   ;;  %v3296_v40 = vshrl.u32 %v165_v37, 7  ;;  %vm1838_vm2 = vcmask 523264  }
   0x3   :  { %313 = vmatpush1.bf16.msra.mxu0 %v3130_v2  ;;  %v3134_v5 = vld [vmem:[%s5159_s0] sm:$0xff]   ;;  %v3135_v6 = vld [vmem:[%s5159_s0 + $0x8] sm:$0xff]   ;;  %v3140_v11 = vld [vmem:[%s5159_s0 + $0x30] sm:$0xff]   ;;  %vm2367_vm3 = vcmask 130048   ;;  %vm2752_vm4 = vcmask 7168  }
   0x4   :  { %314 = vmatprep.subr.bf16.mxu0 %v3131_v3  ;;  %v3138_v9 = vld [vmem:[%s5159_s0 + $0x20] sm:$0xff]   ;;  %v3139_v10 = vld [vmem:[%s5159_s0 + $0x28] sm:$0xff]   ;;  %v3141_v12 = vld [vmem:[%s5159_s0 + $0x38] sm:$0xff]   ;;  %5195 = vst [vmem:[#allocation2_spill] sm:$0xff] %v3296_v40  ;;  %v3303_v43 = vsub.s32 0, %v3296_v40  ;;  %v3316_v48 = vsub.s32 1, %v3296_v40 }
   0x5   :  { %v3142_v13 = vld [vmem:[%s5159_s0 + $0x40] sm:$0xff]   ;;  %v3143_v14 = vld [vmem:[%s5159_s0 + $0x48] sm:$0xff]   ;;  %v3144_v15 = vld [vmem:[%s5159_s0 + $0x50] sm:$0xff]  }
   0x6   :  { %v3145_v16 = vld [vmem:[%s5159_s0 + $0x58] sm:$0xff]   ;;  %v3146_v17 = vld [vmem:[%s5159_s0 + $0x60] sm:$0xff]   ;;  %5196 = vst [vmem:[#allocation3_spill] sm:$0xff] %v3303_v43  ;;  %5197 = vst [vmem:[#allocation4_spill] sm:$0xff] %v3316_v48 }
   0x7   :  { %315 = vmatpush1.bf16.msra.mxu0 %v3133_v4  ;;  %v155_v44 = vld [vmem:[%s5160_s5] ss:$8 sm:$0x3] }
   0x8   :  { %v3313_v47 = vrot.slane %v155_v44, %v3303_v43  ;;  %v3326_v54 = vrot.slane %v155_v44, %v3316_v48 }
   0xa   :  { %2802 = vmatmul.mubr.msk.bf16.vlgmr.msra.gmra.mxu0 %vm260_vm0, %v3134_v5 }
   0xb   :  { %342 = vmatprep.mubr.bf16.mxu0 %v3185_v1 }
  0x12   :  { %2803 = vmatmul.mubr.msk.bf16.gmra.mxu0 %vm260_vm0, %v3135_v6 }
  0x13   :  { %352 = vmatprep.mubr.bf16.mxu0 %v3185_v1 }
  0x1a   :  { %2804 = vmatmul.mubr.msk.bf16.gmra.mxu0 %vm260_vm0, %v3136_v7 }
  0x1b   :  { %362 = vmatprep.mubr.bf16.mxu0 %v3185_v1 }
  0x22   :  { %2805 = vmatmul.mubr.msk.bf16.gmra.mxu0 %vm260_vm0, %v3137_v8 }
  0x23   :  { %372 = vmatprep.mubr.bf16.mxu0 %v3185_v1 }
  0x2a   :  { %2806 = vmatmul.mubr.msk.bf16.gmra.mxu0 %vm260_vm0, %v3138_v9 }
  0x2b   :  { %382 = vmatprep.mubr.bf16.mxu0 %v3185_v1 }
  0x32   :  { %2807 = vmatmul.mubr.msk.bf16.gmra.mxu0 %vm260_vm0, %v3139_v10 }
  0x33   :  { %392 = vmatprep.mubr.bf16.mxu0 %v3185_v1 }
  0x3a   :  { %2808 = vmatmul.mubr.msk.bf16.gmra.mxu0 %vm260_vm0, %v3140_v11 }
  0x3b   :  { %402 = vmatprep.mubr.bf16.mxu0 %v3185_v1 }
  0x42   :  { %2809 = vmatmul.mubr.msk.bf16.gmra.mxu0 %vm260_vm0, %v3141_v12 }
  0x43   :  { %412 = vmatprep.mubr.bf16.mxu0 %v3185_v1 }
  0x4a   :  { %2810 = vmatmul.mubr.msk.bf16.gmra.mxu0 %vm260_vm0, %v3142_v13 }
  0x4b   :  { %422 = vmatprep.mubr.bf16.mxu0 %v3185_v1 }
  0x52   :  { %2811 = vmatmul.mubr.msk.bf16.gmra.mxu0 %vm260_vm0, %v3143_v14 }
  0x53   :  { %432 = vmatprep.mubr.bf16.mxu0 %v3185_v1 }
  0x5a   :  { %2812 = vmatmul.mubr.msk.bf16.gmra.mxu0 %vm260_vm0, %v3144_v15 }
  0x5b   :  { %442 = vmatprep.mubr.bf16.mxu0 %v3185_v1 }
  0x62   :  { %2813 = vmatmul.mubr.msk.bf16.gmra.mxu0 %vm260_vm0, %v3145_v16 }
  0x63   :  { %452 = vmatprep.mubr.bf16.mxu0 %v3185_v1 }
  0x6a   :  { %2814 = vmatmul.mubr.msk.bf16.gmra.mxu0 %vm260_vm0, %v3146_v17 }
  0xca   :  { %v334_v18 = vpop.f32.mrf.mxu0 }
  0xcb   :  { %v335_v52 = vadd.f32 %v334_v18, %v3313_v47 }
  0xcc   :  { %v336_v19 = vpop.f32.mrf.mxu0 }
  0xcd   :  { %v3336_v60 = vmax.f32 %v335_v52, 0.0  ;;  %v337_v63 = vadd.f32 %v336_v19, %v3326_v54 }
  0xce   :  { %v338_v20 = vpop.f32.mrf.mxu0 }
  0xcf   :  { %v339_v50 = vadd.f32 %v338_v20, %v3313_v47  ;;  %5199 = vst [vmem:[#allocation6_spill] sm:$0xff] %v3336_v60  ;;  %v3359_v11 = vmax.f32 %v337_v63, 0.0 }
  0xd0   :  { %v340_v21 = vpop.f32.mrf.mxu0 }
  0xd1   :  { %v3330_v56 = vmax.f32 %v339_v50, 0.0  ;;  %v341_v58 = vadd.f32 %v340_v21, %v3326_v54 }
  0xd2   :  { %v344_v22 = vpop.f32.mrf.mxu0 }
  0xd3   :  { %v345_v53 = vadd.f32 %v344_v22, %v3313_v47  ;;  %5198 = vst [vmem:[#allocation5_spill] sm:$0xff] %v3330_v56  ;;  %v567_v2 = vadd.f32 %v3330_v56, %v3336_v60  ;;  %v3350_v5 = vmax.f32 %v341_v58, 0.0 }
  0xd4   :  { %v346_v23 = vpop.f32.mrf.mxu0 }
  0xd5   :  { %v3338_v61 = vmax.f32 %v345_v53, 0.0  ;;  %v347_v0 = vadd.f32 %v346_v23, %v3326_v54  ;;  %v598_v18 = vadd.f32 %v3350_v5, %v3359_v11 }
  0xd6   :  { %v348_v24 = vpop.f32.mrf.mxu0 }
  0xd7   :  { %v349_v57 = vadd.f32 %v348_v24, %v3313_v47  ;;  %5200 = vst [vmem:[#allocation7_spill] sm:$0xff] %v3338_v61  ;;  %v568_v8 = vadd.f32 %v567_v2, %v3338_v61  ;;  %v3361_v12 = vmax.f32 %v347_v0, 0.0 }
  0xd8   :  { %v350_v25 = vpop.f32.mrf.mxu0 }
  0xd9   :  { %v3347_v3 = vmax.f32 %v349_v57, 0.0  ;;  %v351_v6 = vadd.f32 %v350_v25, %v3326_v54  ;;  %v599_v25 = vadd.f32 %v598_v18, %v3361_v12 }
  0xda   :  { %v354_v26 = vpop.f32.mrf.mxu0 }
  0xdb   :  { %v355_v62 = vadd.f32 %v354_v26, %v3313_v47  ;;  %5201 = vst [vmem:[#allocation8_spill] sm:$0xff] %v3347_v3  ;;  %v569_v15 = vadd.f32 %v568_v8, %v3347_v3  ;;  %v3372_v19 = vmax.f32 %v351_v6, 0.0 }
  0xdc   :  { %v356_v27 = vpop.f32.mrf.mxu0 }
  0xdd   :  { %v3356_v9 = vmax.f32 %v355_v62, 0.0  ;;  %v357_v13 = vadd.f32 %v356_v27, %v3326_v54  ;;  %v600_v37 = vadd.f32 %v599_v25, %v3372_v19 }
  0xde   :  { %v358_v28 = vpop.f32.mrf.mxu0 }
  0xdf   :  { %v359_v4 = vadd.f32 %v358_v28, %v3313_v47  ;;  %5202 = vst [vmem:[#allocation9_spill] sm:$0xff] %v3356_v9  ;;  %v570_v22 = vadd.f32 %v569_v15, %v3356_v9  ;;  %v3380_v26 = vmax.f32 %v357_v13, 0.0 }
  0xe0   :  { %v360_v29 = vpop.f32.mrf.mxu0 }
  0xe1   :  { %v3367_v16 = vmax.f32 %v359_v4, 0.0  ;;  %v361_v20 = vadd.f32 %v360_v29, %v3326_v54  ;;  %v601_v57 = vadd.f32 %v600_v37, %v3380_v26 }
  0xe2   :  { %v364_v30 = vpop.f32.mrf.mxu0 }
  0xe3   :  { %v365_v10 = vadd.f32 %v364_v30, %v3313_v47  ;;  %v571_v30 = vadd.f32 %v570_v22, %v3367_v16  ;;  %v3390_v44 = vmax.f32 %v361_v20, 0.0 }
  0xe4   :  { %v366_v31 = vpop.f32.mrf.mxu0 }
  0xe5   :  { %v3376_v23 = vmax.f32 %v365_v10, 0.0  ;;  %v367_v27 = vadd.f32 %v366_v31, %v3326_v54  ;;  %v602_v2 = vadd.f32 %v601_v57, %v3390_v44 }
  0xe6   :  { %v368_v32 = vpop.f32.mrf.mxu0 }
  0xe7   :  { %v369_v17 = vadd.f32 %v368_v32, %v3313_v47  ;;  %v572_v52 = vadd.f32 %v571_v30, %v3376_v23  ;;  %v3400_v58 = vmax.f32 %v367_v27, 0.0 }
  0xe8   :  { %v3288_v33 = vpop.f32.mrf.mxu0 }
  0xe9   :  { %v3386_v32 = vmax.f32 %v369_v17, 0.0  ;;  %v603_v13 = vadd.f32 %v602_v2, %v3400_v58 }
  0xea   :  { %v374_v34 = vpop.f32.mrf.mxu0 }
  0xeb   :  { %v375_v24 = vadd.f32 %v374_v34, %v3313_v47  ;;  %v371_v34 = vadd.f32 %v3288_v33, %v3326_v54  ;;  %v573_v63 = vadd.f32 %v572_v52, %v3386_v32 }
  0xec   :  { %v3290_v35 = vpop.f32.mrf.mxu0 }
  0xed   :  { %v3395_v53 = vmax.f32 %v375_v24, 0.0  ;;  %v3410_v4 = vmax.f32 %v371_v34, 0.0 }
  0xee   :  { %v378_v36 = vpop.f32.mrf.mxu0 }
  0xef   :  { %v379_v29 = vadd.f32 %v378_v36, %v3313_v47  ;;  %v377_v36 = vadd.f32 %v3290_v35, %v3326_v54  ;;  %v574_v8 = vadd.f32 %v573_v63, %v3395_v53  ;;  %v604_v22 = vadd.f32 %v603_v13, %v3410_v4 }
  0xf0   :  { %v3292_v38 = vpop.f32.mrf.mxu0 }
  0xf1   :  { %v3405_v0 = vmax.f32 %v379_v29, 0.0  ;;  %v3420_v15 = vmax.f32 %v377_v36, 0.0 }
  0xf2   :  { %v3294_v39 = vpop.f32.mrf.mxu0 }
  0xf3   :  { %v385_v31 = vadd.f32 %v3294_v39, %v3313_v47  ;;  %v381_v39 = vadd.f32 %v3292_v38, %v3326_v54  ;;  %v575_v18 = vadd.f32 %v574_v8, %v3405_v0  ;;  %v605_v29 = vadd.f32 %v604_v22, %v3420_v15 }
  0xf4   :  { %v3298_v41 = vpop.f32.mrf.mxu0 }
  0xf5   :  { %v3415_v10 = vmax.f32 %v385_v31, 0.0  ;;  %v3430_v24 = vmax.f32 %v381_v39, 0.0 }
  0xf6   :  { %v3300_v42 = vpop.f32.mrf.mxu0 }
  0xf7   :  { %v389_v33 = vadd.f32 %v3300_v42, %v3313_v47  ;;  %5203 = vst [vmem:[#allocation10_spill] sm:$0xff] %v3415_v10  ;;  %v387_v42 = vadd.f32 %v3298_v41, %v3326_v54  ;;  %v576_v27 = vadd.f32 %v575_v18, %v3415_v10  ;;  %v606_v57 = vadd.f32 %v605_v29, %v3430_v24 }
  0xf8   :  { %v3308_v45 = vpop.f32.mrf.mxu0 }
  0xf9   :  { %v3425_v20 = vmax.f32 %v389_v33, 0.0  ;;  %v3440_v37 = vmax.f32 %v387_v42, 0.0 }
  0xfa   :  { %v3310_v46 = vpop.f32.mrf.mxu0 }
  0xfb   :  { %v395_v35 = vadd.f32 %v3310_v46, %v3313_v47  ;;  %5204 = vst [vmem:[#allocation11_spill] sm:$0xff] %v3425_v20  ;;  %v391_v46 = vadd.f32 %v3308_v45, %v3326_v54  ;;  %v577_v52 = vadd.f32 %v576_v27, %v3425_v20  ;;  %v607_v39 = vadd.f32 %v606_v57, %v3440_v37 }
  0xfc   :  { %v3318_v49 = vpop.f32.mrf.mxu0 }
  0xfd   :  { %v3435_v30 = vmax.f32 %v395_v35, 0.0  ;;  %v3450_v36 = vmax.f32 %v391_v46, 0.0 }
  0xfe   :  { %v3321_v51 = vpop.f32.mrf.mxu0 }
  0xff   :  { %v399_v38 = vadd.f32 %v3321_v51, %v3313_v47  ;;  %5205 = vst [vmem:[#allocation12_spill] sm:$0xff] %v3435_v30  ;;  %v397_v51 = vadd.f32 %v3318_v49, %v3326_v54  ;;  %5207 = vst [vmem:[#allocation14_spill] sm:$0xff] %v3450_v36  ;;  %v578_v33 = vadd.f32 %v577_v52, %v3435_v30 }
 0x100   :  { %v3328_v55 = vpop.f32.mrf.mxu0  ;;  %v608_v18 = vadd.f32 %v607_v39, %v3450_v36 }
 0x101   :  { %v3445_v31 = vmax.f32 %v399_v38, 0.0  ;;  %v3459_v8 = vmax.f32 %v397_v51, 0.0 }
 0x102   :  { %v3334_v59 = vpop.f32.mrf.mxu0 }
 0x103   :  { %v405_v41 = vadd.f32 %v3334_v59, %v3313_v47  ;;  %5206 = vst [vmem:[#allocation13_spill] sm:$0xff] %v3445_v31  ;;  %v401_v59 = vadd.f32 %v3328_v55, %v3326_v54  ;;  %5209 = vst [vmem:[#allocation16_spill] sm:$0xff] %v3459_v8  ;;  %v579_v13 = vadd.f32 %v578_v33, %v3445_v31 }
 0x104   :  { %v3343_v1 = vpop.f32.mrf.mxu0 }
 0x105   :  { %v3455_v2 = vmax.f32 %v405_v41, 0.0  ;;  %v3468_v38 = vmax.f32 %v401_v59, 0.0  ;;  %v609_v41 = vadd.f32 %v608_v18, %v3459_v8 }
 0x106   :  { %v3353_v7 = vpop.f32.mrf.mxu0 }
 0x107   :  { %v409_v45 = vadd.f32 %v3353_v7, %v3313_v47  ;;  %5208 = vst [vmem:[#allocation15_spill] sm:$0xff] %v3455_v2  ;;  %v407_v7 = vadd.f32 %v3343_v1, %v3326_v54  ;;  %5211 = vst [vmem:[#allocation18_spill] sm:$0xff] %v3468_v38  ;;  %v580_v46 = vadd.f32 %v579_v13, %v3455_v2 }
 0x108   :  { %v3364_v14 = vpop.f32.mrf.mxu0  ;;  %v610_v57 = vadd.f32 %v609_v41, %v3468_v38 }
 0x109   :  { %v3464_v42 = vmax.f32 %v409_v45, 0.0  ;;  %v3477_v29 = vmax.f32 %v407_v7, 0.0 }
 0x10a   :  { %v414_v21 = vpop.f32.mrf.mxu0 }
 0x10b   :  { %v415_v49 = vadd.f32 %v414_v21, %v3313_v47  ;;  %5210 = vst [vmem:[#allocation17_spill] sm:$0xff] %v3464_v42  ;;  %v411_v21 = vadd.f32 %v3364_v14, %v3326_v54  ;;  %5212 = vst [vmem:[#allocation19_spill] sm:$0xff] %v3477_v29  ;;  %v581_v52 = vadd.f32 %v580_v46, %v3464_v42 }
 0x10c   :  { %v3383_v28 = vpop.f32.mrf.mxu0  ;;  %v611_v7 = vadd.f32 %v610_v57, %v3477_v29 }
 0x10d   :  { %v3473_v27 = vmax.f32 %v415_v49, 0.0  ;;  %v3486_v59 = vmax.f32 %v411_v21, 0.0 }
 0x10e   :  { %v418_v50 = vpop.f32.mrf.mxu0 }
 0x10f   :  { %v419_v55 = vadd.f32 %v418_v50, %v3313_v47  ;;  %v417_v50 = vadd.f32 %v3383_v28, %v3326_v54  ;;  %5213 = vst [vmem:[#allocation20_spill] sm:$0xff] %v3486_v59  ;;  %v582_v49 = vadd.f32 %v581_v52, %v3473_v27  ;;  %v612_v46 = vadd.f32 %v611_v7, %v3486_v59 }
 0x110   :  { %v420_v62 = vpop.f32.mrf.mxu0 }
 0x111   :  { %v3482_v45 = vmax.f32 %v419_v55, 0.0  ;;  %v3494_v13 = vmax.f32 %v417_v50, 0.0 }
 0x112   :  { %v424_v6 = vpop.f32.mrf.mxu0 }
 0x113   :  { %v425_v1 = vadd.f32 %v424_v6, %v3313_v47  ;;  %v421_v6 = vadd.f32 %v420_v62, %v3326_v54  ;;  %5214 = vst [vmem:[#allocation21_spill] sm:$0xff] %v3494_v13  ;;  %v583_v18 = vadd.f32 %v582_v49, %v3482_v45  ;;  %v613_v57 = vadd.f32 %v612_v46, %v3494_v13 }
 0x114   :  { %v426_v17 = vpop.f32.mrf.mxu0 }
 0x115   :  { %v3490_v39 = vmax.f32 %v425_v1, 0.0  ;;  %v427_v55 = vadd.f32 %v426_v17, %v3326_v54  ;;  %v3502_v41 = vmax.f32 %v421_v6, 0.0 }
 0x116   :  { %v428_v25 = vpop.f32.mrf.mxu0 }
 0x117   :  { %v429_v14 = vadd.f32 %v428_v25, %v3313_v47  ;;  %5215 = vst [vmem:[#allocation22_spill] sm:$0xff] %v3502_v41  ;;  %v584_v52 = vadd.f32 %v583_v18, %v3490_v39  ;;  %v3510_v49 = vmax.f32 %v427_v55, 0.0  ;;  %v614_v48 = vadd.f32 %v613_v57, %v3502_v41 }
 0x118   :  { %v430_v34 = vpop.f32.mrf.mxu0 }
 0x119   :  { %v3498_v21 = vmax.f32 %v429_v14, 0.0  ;;  %v431_v1 = vadd.f32 %v430_v34, %v3326_v54  ;;  %v615_v43 = vadd.f32 %v614_v48, %v3510_v49 }
 0x11a   :  { %v434_v63 = vpop.f32.mrf.mxu0 }
 0x11b   :  { %v435_v28 = vadd.f32 %v434_v63, %v3313_v47  ;;  %v585_v7 = vadd.f32 %v584_v52, %v3498_v21  ;;  %v3518_v18 = vmax.f32 %v431_v1, 0.0 }
 0x11c   :  { %v436_v35 = vpop.f32.mrf.mxu0 }
 0x11d   :  { %v3506_v50 = vmax.f32 %v435_v28, 0.0  ;;  %v437_v14 = vadd.f32 %v436_v35, %v3326_v54 }
 0x11e   :  { %v438_v22 = vpop.f32.mrf.mxu0 }
 0x11f   :  { %v439_v62 = vadd.f32 %v438_v22, %v3313_v47  ;;  %v586_v46 = vadd.f32 %v585_v7, %v3506_v50  ;;  %v3526_v52 = vmax.f32 %v437_v14, 0.0 }
 0x120   :  { %v440_v51 = vpop.f32.mrf.mxu0 }
 0x121   :  { %v3514_v6 = vmax.f32 %v439_v62, 0.0  ;;  %v441_v28 = vadd.f32 %v440_v51, %v3326_v54  ;;  %5216 = vst [vmem:[#allocation23_spill] sm:$0xff] %v3526_v52  ;;  %v616_v51 = vadd.f32 %v615_v43, %v3518_v18 }
 0x122   :  { %v444_v33 = vpop.f32.mrf.mxu0 }
 0x123   :  { %v445_v17 = vadd.f32 %v444_v33, %v3313_v47  ;;  %v587_v57 = vadd.f32 %v586_v46, %v3514_v6  ;;  %v3533_v40 = vmax.f32 %v441_v28, 0.0  ;;  %v617_v14 = vadd.f32 %v616_v51, %v3526_v52  ;;  %v3148_v28 = vld [vmem:[%s5161_s2 + $0x38] sm:$0xff]  }
 0x124   :  { %v446_v25 = vpop.f32.mrf.mxu0 }
 0x125   :  { %v3522_v55 = vmax.f32 %v445_v17, 0.0  ;;  %v447_v62 = vadd.f32 %v446_v25, %v3326_v54  ;;  %v3147_v25 = vld [vmem:[%s5161_s2 + $0x78] sm:$0xff]  }
 0x126   :  { %v448_v63 = vpop.f32.mrf.mxu0  ;;  %2856 = vmatprep.subr.bf16.mxu1 %v3147_v25 }
 0x127   :  { %v449_v34 = vadd.f32 %v448_v63, %v3313_v47  ;;  %v588_v17 = vadd.f32 %v587_v57, %v3522_v55  ;;  %v618_v57 = vadd.f32 %v617_v14, %v3533_v40  ;;  %2857 = vmatpush3.bf16.msra.mxu1 %v3148_v28  ;;  %v3151_v28 = vld [vmem:[%s5161_s2 + $0x68] sm:$0xff]  }
 0x128   :  { %v450_v22 = vpop.f32.mrf.mxu0 }
 0x129   :  { %v3530_v1 = vmax.f32 %v449_v34, 0.0  ;;  %v3544_v34 = vmax.f32 %v447_v62, 0.0 }
 0x12a   :  { %v454_v33 = vpop.f32.mrf.mxu0 }
 0x12b   :  { %v455_v35 = vadd.f32 %v454_v33, %v3313_v47  ;;  %v451_v33 = vadd.f32 %v450_v22, %v3326_v54  ;;  %v589_v46 = vadd.f32 %v588_v17, %v3530_v1  ;;  %v619_v17 = vadd.f32 %v618_v57, %v3544_v34 }
 0x12c   :  { %v456_v63 = vpop.f32.mrf.mxu0 }
 0x12d   :  { %v3537_v41 = vmax.f32 %v455_v35, 0.0  ;;  %v457_v22 = vadd.f32 %v456_v63, %v3326_v54  ;;  %v3555_v51 = vmax.f32 %v451_v33, 0.0  ;;  %v3149_v63 = vld [vmem:[%s5161_s2 + $0x70] sm:$0xff]  }
 0x12e   :  { %v458_v7 = vpop.f32.mrf.mxu0  ;;  %2858 = vmatprep.subr.bf16.mxu1 %v3149_v63  ;;  %v3154_v63 = vld [vmem:[%s5161_s2 + $0x20] sm:$0xff]  }
 0x12f   :  { %v459_v48 = vadd.f32 %v458_v7, %v3313_v47  ;;  %v590_v62 = vadd.f32 %v589_v46, %v3537_v41  ;;  %v620_v14 = vadd.f32 %v619_v17, %v3555_v51  ;;  %v3152_v46 = vld [vmem:[%s5161_s2 + $0x28] sm:$0xff]  }
 0x130   :  { %v460_v43 = vpop.f32.mrf.mxu0 }
 0x131   :  { %v3551_v35 = vmax.f32 %v459_v48, 0.0  ;;  %v461_v47 = vadd.f32 %v460_v43, %v3326_v54  ;;  %v3150_v54 = vld [vmem:[%s5161_s2 + $0x30] sm:$0xff]   ;;  %v3568_v48 = vmax.f32 %v457_v22, 0.0 }
 0x132   :  { %2859 = vmatpush3.bf16.msra.mxu1 %v3150_v54 }
 0x133   :  { %v565_v7 = vmul.f32 0.0, %v3551_v35  ;;  %v3559_v52 = vmax.f32 %v461_v47, 0.0  ;;  %5218 = vst [vmem:[#allocation25_spill] sm:$0xff] %v3568_v48  ;;  %v621_v47 = vadd.f32 %v620_v14, %v3568_v48  ;;  %2860 = vmatprep.subr.bf16.mxu1 %v3151_v28  ;;  %v3157_v28 = vld [vmem:[%s5161_s2 + $0x50] sm:$0xff]  }
 0x135   :  { %5217 = vst [vmem:[#allocation24_spill] sm:$0xff] %v3559_v52  ;;  %v591_v33 = vadd.f32 %v590_v62, %v565_v7  ;;  %v566_v25 = vmul.f32 0.0, %v3559_v52  ;;  %v3153_v7 = vld [vmem:[%s5161_s2 + $0x60] sm:$0xff]  }
 0x136   :  { %2861 = vmatpush3.bf16.msra.mxu1 %v3152_v46  ;;  %v3158_v46 = vld [vmem:[%s5161_s2 + $0x10] sm:$0xff]  }
 0x137   :  { %v592_v43 = vrot.slane %v591_v33, 4  ;;  %v622_v62 = vadd.f32 %v621_v47, %v566_v25  ;;  %2862 = vmatprep.subr.bf16.mxu1 %v3153_v7  ;;  %v3156_v25 = vld [vmem:[%s5161_s2 + $0x18] sm:$0xff]  }
 0x139   :  { %v593_v22 = vadd.f32 %v592_v43, %v591_v33  ;;  %v623_v52 = vrot.slane %v622_v62, 4  ;;  %v3155_v33 = vld [vmem:[%s5161_s2 + $0x58] sm:$0xff]  }
 0x13a   :  { %2863 = vmatpush3.bf16.msra.mxu1 %v3154_v63 }
 0x13b   :  { %v594_v57 = vrot.slane %v593_v22, 2  ;;  %2864 = vmatprep.subr.bf16.mxu1 %v3155_v33  ;;  %v624_v43 = vadd.f32 %v623_v52, %v622_v62  ;;  %v3160_v52 = vld [vmem:[%s5161_s2 + $0x8] sm:$0xff]   ;;  %v3161_v62 = vld [vmem:[%s5161_s2 + $0x40] sm:$0xff]  }
 0x13d   :  { %v595_v54 = vadd.f32 %v594_v57, %v593_v22  ;;  %v625_v22 = vrot.slane %v624_v43, 2  ;;  %v3159_v57 = vld [vmem:[%s5161_s2 + $0x48] sm:$0xff]  }
 0x13e   :  { %2865 = vmatpush3.bf16.msra.mxu1 %v3156_v25 }
 0x13f   :  { %v596_v17 = vrot.slane %v595_v54, 1  ;;  %2866 = vmatprep.subr.bf16.mxu1 %v3157_v28 }
 0x141   :  { %v597_v14 = vadd.f32 %v596_v17, %v595_v54  ;;  %v3162_v54 = vld [vmem:[%s5161_s2] sm:$0xff]   ;;  %v626_v17 = vadd.f32 %v625_v22, %v624_v43 }
 0x142   :  { %2867 = vmatpush3.bf16.msra.mxu1 %v3158_v46 }
 0x143   :  { %v3597_v47 = vmul.f32 0.005, %v597_v14  ;;  %2868 = vmatprep.subr.bf16.mxu1 %v3159_v57  ;;  %v627_v28 = vrot.slane %v626_v17, 1 }
 0x145   :  { %v631_v7 = vsub.f32 %v3336_v60, %v3597_v47  ;;  %v633_v63 = vsub.f32 %v3330_v56, %v3597_v47  ;;  %v635_v33 = vsub.f32 %v3338_v61, %v3597_v47  ;;  %v637_v46 = vsub.f32 %v3347_v3, %v3597_v47 }
 0x146   :  { %2869 = vmatpush3.bf16.msra.mxu1 %v3160_v52  ;;  %v639_v57 = vsub.f32 %v3356_v9, %v3597_v47  ;;  %v628_v60 = vadd.f32 %v627_v28, %v626_v17  ;;  %v641_v43 = vsub.f32 %v3367_v16, %v3597_v47  ;;  %v645_v3 = vsub.f32 %v3386_v32, %v3597_v47 }
 0x147   :  { %2870 = vmatprep.subr.bf16.mxu1 %v3161_v62  ;;  %v735_v25 = vmul.f32 %v631_v7, %v631_v7  ;;  %v737_v14 = vmul.f32 %v633_v63, %v633_v63  ;;  %v739_v52 = vmul.f32 %v635_v33, %v635_v33  ;;  %v741_v22 = vmul.f32 %v637_v46, %v637_v46 }
 0x148   :  { %v643_v7 = vsub.f32 %v3376_v23, %v3597_v47  ;;  %v743_v63 = vmul.f32 %v639_v57, %v639_v57  ;;  %v3625_v61 = vmul.f32 0.005, %v628_v60  ;;  %v745_v48 = vmul.f32 %v641_v43, %v641_v43 }
 0x149   :  { %v787_v56 = vadd.f32 %v737_v14, %v735_v25  ;;  %v647_v17 = vsub.f32 %v3395_v53, %v3597_v47  ;;  %v649_v60 = vsub.f32 %v3405_v0, %v3597_v47  ;;  %v749_v28 = vmul.f32 %v645_v3, %v645_v3 }
 0x14a   :  { %2871 = vmatpush3.bf16.msra.mxu1 %v3162_v54  ;;  %v747_v33 = vmul.f32 %v643_v7, %v643_v7  ;;  %v634_v14 = vsub.f32 %v3350_v5, %v3625_v61  ;;  %v651_v57 = vsub.f32 %v3415_v10, %v3597_v47  ;;  %v655_v3 = vsub.f32 %v3435_v30, %v3597_v47 }
 0x14b   :  { %v788_v62 = vadd.f32 %v787_v56, %v739_v52  ;;  %v632_v56 = vsub.f32 %v3359_v11, %v3625_v61  ;;  %v751_v52 = vmul.f32 %v647_v17, %v647_v17  ;;  %v753_v7 = vmul.f32 %v649_v60, %v649_v60 }
 0x14c   :  { %v640_v17 = vsub.f32 %v3380_v26, %v3625_v61  ;;  %v642_v60 = vsub.f32 %v3390_v44, %v3625_v61  ;;  %v659_v30 = vsub.f32 %v3455_v2, %v3597_v47 }
 0x14d   :  { %v789_v54 = vadd.f32 %v788_v62, %v741_v22  ;;  %v636_v22 = vsub.f32 %v3361_v12, %v3625_v61  ;;  %v653_v62 = vsub.f32 %v3425_v20, %v3597_v47 }
 0x14f   :  { %v790_v9 = vadd.f32 %v789_v54, %v743_v63  ;;  %v638_v54 = vsub.f32 %v3372_v19, %v3625_v61 }
 0x151   :  { %v791_v25 = vadd.f32 %v790_v9, %v745_v48  ;;  %v736_v9 = vmul.f32 %v632_v56, %v632_v56  ;;  %v738_v48 = vmul.f32 %v634_v14, %v634_v14  ;;  %v657_v56 = vsub.f32 %v3445_v31, %v3597_v47 }
 0x152   :  { %v757_v14 = vmul.f32 %v653_v62, %v653_v62 }
 0x153   :  { %v792_v46 = vadd.f32 %v791_v25, %v747_v33  ;;  %v755_v33 = vmul.f32 %v651_v57, %v651_v57  ;;  %v759_v57 = vmul.f32 %v655_v3, %v655_v3  ;;  %v761_v62 = vmul.f32 %v657_v56, %v657_v56 }
 0x154   :  { %v763_v3 = vmul.f32 %v659_v30, %v659_v30 }
 0x155   :  { %v793_v43 = vadd.f32 %v792_v46, %v749_v28  ;;  %v740_v28 = vmul.f32 %v636_v22, %v636_v22  ;;  %v818_v46 = vadd.f32 %v738_v48, %v736_v9  ;;  %v744_v22 = vmul.f32 %v640_v17, %v640_v17 }
 0x156   :  { %v661_v48 = vsub.f32 %v3464_v42, %v3597_v47 }
 0x157   :  { %v794_v63 = vadd.f32 %v793_v43, %v751_v52  ;;  %v742_v52 = vmul.f32 %v638_v54, %v638_v54  ;;  %v819_v43 = vadd.f32 %v818_v46, %v740_v28  ;;  %v746_v54 = vmul.f32 %v642_v60, %v642_v60 }
 0x158   :  { %v663_v46 = vsub.f32 %v3473_v27, %v3597_v47  ;;  %v765_v56 = vmul.f32 %v661_v48, %v661_v48 }
 0x159   :  { %v795_v25 = vadd.f32 %v794_v63, %v753_v7  ;;  %v644_v63 = vsub.f32 %v3400_v58, %v3625_v61  ;;  %v820_v9 = vadd.f32 %v819_v43, %v742_v52  ;;  %v665_v43 = vsub.f32 %v3482_v45, %v3597_v47 }
 0x15a   :  { %v767_v30 = vmul.f32 %v663_v46, %v663_v46 }
 0x15b   :  { %v796_v20 = vadd.f32 %v795_v25, %v755_v33  ;;  %v646_v25 = vsub.f32 %v3410_v4, %v3625_v61  ;;  %v821_v28 = vadd.f32 %v820_v9, %v744_v22  ;;  %v748_v17 = vmul.f32 %v644_v63, %v644_v63 }
 0x15c   :  { %v667_v9 = vsub.f32 %v3490_v39, %v3597_v47  ;;  %v769_v48 = vmul.f32 %v665_v43, %v665_v43 }
 0x15d   :  { %v797_v7 = vadd.f32 %v796_v20, %v757_v14  ;;  %v648_v14 = vsub.f32 %v3420_v15, %v3625_v61  ;;  %v822_v52 = vadd.f32 %v821_v28, %v746_v54  ;;  %v750_v60 = vmul.f32 %v646_v25, %v646_v25 }
 0x15e   :  { %v669_v28 = vsub.f32 %v3498_v21, %v3597_v47  ;;  %v771_v46 = vmul.f32 %v667_v9, %v667_v9 }
 0x15f   :  { %v798_v33 = vadd.f32 %v797_v7, %v759_v57  ;;  %v650_v7 = vsub.f32 %v3430_v24, %v3625_v61  ;;  %v823_v22 = vadd.f32 %v822_v52, %v748_v17  ;;  %v752_v63 = vmul.f32 %v648_v14, %v648_v14 }
 0x160   :  { %v671_v52 = vsub.f32 %v3506_v50, %v3597_v47  ;;  %v773_v43 = vmul.f32 %v669_v28, %v669_v28  ;;  %v681_v28 = vsub.f32 %v3551_v35, %v3597_v47 }
 0x161   :  { %v799_v20 = vadd.f32 %v798_v33, %v761_v62  ;;  %v652_v33 = vsub.f32 %v3440_v37, %v3625_v61  ;;  %v824_v54 = vadd.f32 %v823_v22, %v750_v60  ;;  %v754_v25 = vmul.f32 %v650_v7, %v650_v7 }
 0x162   :  { %v673_v22 = vsub.f32 %v3514_v6, %v3597_v47  ;;  %v775_v9 = vmul.f32 %v671_v52, %v671_v52  ;;  %v679_v52 = vsub.f32 %v3537_v41, %v3597_v47  ;;  %v733_v42 = vmul.f32 0.0, %v681_v28 }
 0x163   :  { %v800_v57 = vadd.f32 %v799_v20, %v763_v3  ;;  %v654_v20 = vsub.f32 %v3450_v36, %v3625_v61  ;;  %v825_v17 = vadd.f32 %v824_v54, %v752_v63  ;;  %v756_v14 = vmul.f32 %v652_v33, %v652_v33 }
 0x164   :  { %v675_v54 = vsub.f32 %v3522_v55, %v3597_v47 }
 0x165   :  { %v801_v62 = vadd.f32 %v800_v57, %v765_v56  ;;  %v656_v57 = vsub.f32 %v3459_v8, %v3625_v61  ;;  %v826_v60 = vadd.f32 %v825_v17, %v754_v25  ;;  %v758_v7 = vmul.f32 %v654_v20, %v654_v20 }
 0x166   :  { %v677_v17 = vsub.f32 %v3530_v1, %v3597_v47  ;;  %v662_v20 = vsub.f32 %v3486_v59, %v3625_v61 }
 0x167   :  { %v802_v3 = vadd.f32 %v801_v62, %v767_v30  ;;  %v658_v62 = vsub.f32 %v3468_v38, %v3625_v61  ;;  %v827_v63 = vadd.f32 %v826_v60, %v756_v14  ;;  %v760_v33 = vmul.f32 %v656_v57, %v656_v57 }
 0x168   :  { %v664_v57 = vsub.f32 %v3494_v13, %v3625_v61  ;;  %v781_v2 = vmul.f32 %v677_v17, %v677_v17 }
 0x169   :  { %v803_v56 = vadd.f32 %v802_v3, %v769_v48  ;;  %v660_v3 = vsub.f32 %v3477_v29, %v3625_v61  ;;  %v828_v25 = vadd.f32 %v827_v63, %v758_v7  ;;  %v762_v14 = vmul.f32 %v658_v62, %v658_v62 }
 0x16a   :  { %v783_v62 = vmul.f32 %v679_v52, %v679_v52 }
 0x16b   :  { %v804_v30 = vadd.f32 %v803_v56, %v771_v46  ;;  %v777_v46 = vmul.f32 %v673_v22, %v673_v22  ;;  %v829_v60 = vadd.f32 %v828_v25, %v760_v33  ;;  %v764_v7 = vmul.f32 %v660_v3, %v660_v3  ;;  %v5219_v22 = vld [vmem:[#allocation22_spill] sm:$0xff] }
 0x16c   :  { %v668_v25 = vsub.f32 %v3510_v49, %v3625_v61  ;;  %v670_v3 = vsub.f32 %v3518_v18, %v3625_v61 }
 0x16d   :  { %v805_v48 = vadd.f32 %v804_v30, %v773_v43  ;;  %v779_v43 = vmul.f32 %v675_v54, %v675_v54  ;;  %v830_v63 = vadd.f32 %v829_v60, %v762_v14  ;;  %v768_v54 = vmul.f32 %v664_v57, %v664_v57  ;;  %v5220_v60 = vld [vmem:[#allocation23_spill] sm:$0xff] }
 0x16f   :  { %v806_v56 = vadd.f32 %v805_v48, %v775_v9  ;;  %v666_v9 = vsub.f32 %v5219_v22, %v3625_v61  ;;  %v766_v48 = vmul.f32 %v662_v20, %v662_v20  ;;  %v831_v59 = vadd.f32 %v830_v63, %v764_v7 }
 0x170   :  { %v772_v20 = vmul.f32 %v668_v25, %v668_v25 }
 0x171   :  { %v807_v30 = vadd.f32 %v806_v56, %v777_v46  ;;  %v832_v46 = vadd.f32 %v831_v59, %v766_v48  ;;  %v785_v56 = vmul.f32 %v733_v42, %v733_v42  ;;  %v770_v28 = vmul.f32 %v666_v9, %v666_v9  ;;  %v5221_v9 = vld [vmem:[#allocation24_spill] sm:$0xff] }
 0x172   :  { %v676_v42 = vsub.f32 %v3544_v34, %v3625_v61  ;;  %v682_v48 = vsub.f32 %v5221_v9, %v3625_v61 }
 0x173   :  { %v808_v29 = vadd.f32 %v807_v30, %v779_v43  ;;  %v833_v17 = vadd.f32 %v832_v46, %v768_v54  ;;  %v672_v43 = vsub.f32 %v5220_v60, %v3625_v61  ;;  %v5222_v54 = vld [vmem:[#allocation25_spill] sm:$0xff] }
 0x174   :  { %v680_v46 = vsub.f32 %v5222_v54, %v3625_v61 }
 0x175   :  { %v809_v33 = vadd.f32 %v808_v29, %v781_v2  ;;  %v834_v30 = vadd.f32 %v833_v17, %v770_v28  ;;  %v674_v2 = vsub.f32 %v3533_v40, %v3625_v61  ;;  %v774_v29 = vmul.f32 %v670_v3, %v670_v3 }
 0x176   :  { %v776_v7 = vmul.f32 %v672_v43, %v672_v43  ;;  %v734_v28 = vmul.f32 0.0, %v682_v48  ;;  %v784_v43 = vmul.f32 %v680_v46, %v680_v46 }
 0x177   :  { %v810_v31 = vadd.f32 %v809_v33, %v783_v62  ;;  %v835_v57 = vadd.f32 %v834_v30, %v772_v20  ;;  %v778_v62 = vmul.f32 %v674_v2, %v674_v2 }
 0x179   :  { %v811_v14 = vadd.f32 %v810_v31, %v785_v56  ;;  %v836_v63 = vadd.f32 %v835_v57, %v774_v29  ;;  %v678_v31 = vsub.f32 %v3555_v51, %v3625_v61  ;;  %v780_v56 = vmul.f32 %v676_v42, %v676_v42 }
 0x17b   :  { %v812_v52 = vrot.slane %v811_v14, 4  ;;  %v837_v33 = vadd.f32 %v836_v63, %v776_v7  ;;  %v782_v17 = vmul.f32 %v678_v31, %v678_v31 }
 0x17d   :  { %v813_v59 = vadd.f32 %v812_v52, %v811_v14  ;;  %v838_v3 = vadd.f32 %v837_v33, %v778_v62  ;;  %v786_v52 = vmul.f32 %v734_v28, %v734_v28 }
 0x17f   :  { %v814_v25 = vrot.slane %v813_v59, 2  ;;  %v839_v14 = vadd.f32 %v838_v3, %v780_v56  ;;  %v5223_v3 = vld [vmem:[#allocation2_spill] sm:$0xff] }
 0x181   :  { %v815_v20 = vadd.f32 %v814_v25, %v813_v59  ;;  %v840_v30 = vadd.f32 %v839_v14, %v782_v17  ;;  %v3186_v59 = vmov 1966171168  }
 0x182   :  { %v861_v25 = vunpack.c.l.s4 %v3186_v59 }
 0x183   :  { %v841_v29 = vadd.f32 %v840_v30, %v784_v43  ;;  %v816_v57 = vrot.slane %v815_v20, 1 }
 0x184   :  { %v862_v46 = vunpack.c.0.s8 %v861_v25 }
 0x185   :  { %v842_v22 = vadd.f32 %v841_v29, %v786_v52  ;;  %v817_v38 = vadd.f32 %v816_v57, %v815_v20  ;;  %v5225_v20 = vld [vmem:[#allocation4_spill] sm:$0xff] }
 0x186   :  { %v865_v28 = vsub.s32 %v862_v46, %v5223_v3 }
 0x187   :  { %v843_v13 = vrot.slane %v842_v22, 4  ;;  %v849_v63 = vmul.f32 0.005, %v817_v38  ;;  %v2783_v38 = vld [vmem:[%s5160_s5 + $0x1] ss:$8 sm:$0x3] }
 0x189   :  { %v844_v2 = vadd.f32 %v843_v13, %v842_v22  ;;  %v851_v36 = vmax.f32 %v849_v63, 0.0 }
 0x18b   :  { %v845_v7 = vrot.slane %v844_v2, 2  ;;  %v853_v48 = vadd.f32 1e-05, %v851_v36  ;;  %v5224_v36 = vld [vmem:[#allocation3_spill] sm:$0xff] }
 0x18d   :  { %v846_v8 = vadd.f32 %v845_v7, %v844_v2  ;;  %3175 = vrsqrt.f32 %v853_v48  ;;  %v2784_v2 = vld [vmem:[%s5160_s5 + $0x2] ss:$8 sm:$0x3] }
 0x18f   :  { %v847_v10 = vrot.slane %v846_v8, 1 }
 0x191   :  { %v848_v42 = vadd.f32 %v847_v10, %v846_v8 }
 0x193   :  { %v850_v62 = vmul.f32 0.005, %v848_v42 }
 0x195   :  { %v852_v31 = vmax.f32 %v850_v62, 0.0 }
 0x197   :  { %v854_v33 = vadd.f32 1e-05, %v852_v31 }
 0x199   :  { %3177 = vrsqrt.f32 %v854_v33  ;;  %v5227_v33 = vld [vmem:[#allocation5_spill] sm:$0xff] }
 0x19a   :  { %v3176_v56 = vpop.eup %3175 }
 0x1a6   :  { %v3178_v17 = vpop.eup %3177 }
 0x1a7   :  { %v859_v13 = vcombine.low %v3176_v56, %v3178_v17 }
 0x1a9   :  { %v866_v22 = vrot.slane %v859_v13, %v865_v28 }
 0x1ab   :  { %v873_v10 = vrot.slane %v866_v22, %v865_v28 }
 0x1ad   :  { %v875_v8 = vmul.f32 %v2783_v38, %v873_v10  ;;  %v5229_v10 = vld [vmem:[#allocation8_spill] sm:$0xff] }
 0x1af   :  { %v3722_v14 = vrot.slane %v875_v8, %v5224_v36  ;;  %v3725_v43 = vrot.slane %v875_v8, %v5225_v20 }
 0x1b1   :  { %v887_v30 = vmul.f32 %v3722_v14, %v3597_v47  ;;  %v888_v52 = vmul.f32 %v3725_v43, %v3625_v61  ;;  %v909_v42 = vmul.f32 %v3725_v43, %v3359_v11  ;;  %v911_v62 = vmul.f32 %v3725_v43, %v3350_v5  ;;  %v5226_v61 = vld [vmem:[#allocation6_spill] sm:$0xff] }
 0x1b2   :  { %v908_v31 = vmul.f32 %v3722_v14, %v5226_v61  ;;  %v910_v59 = vmul.f32 %v3722_v14, %v5227_v33  ;;  %v913_v25 = vmul.f32 %v3725_v43, %v3361_v12  ;;  %v915_v11 = vmul.f32 %v3725_v43, %v3372_v19  ;;  %v5228_v12 = vld [vmem:[#allocation7_spill] sm:$0xff] }
 0x1b3   :  { %v891_v29 = vcombine.low %v887_v30, %v888_v52  ;;  %v912_v19 = vmul.f32 %v3722_v14, %v5228_v12  ;;  %v914_v8 = vmul.f32 %v3722_v14, %v5229_v10  ;;  %v5230_v30 = vld [vmem:[#allocation9_spill] sm:$0xff]  ;;  %v959_v33 = vmul.f32 %v3725_v43, %v5221_v9 }
 0x1b4   :  { %v916_v52 = vmul.f32 %v3722_v14, %v5230_v30 }
 0x1b5   :  { %v898_v57 = vrot.slane %v891_v29, %v865_v28  ;;  %v918_v29 = vmul.f32 %v3722_v14, %v3367_v16 }
 0x1b7   :  { %v905_v7 = vrot.slane %v898_v57, %v865_v28 }
 0x1b9   :  { %v907_v63 = vsub.f32 %v2784_v2, %v905_v7  ;;  %v921_v7 = vmul.f32 %v3725_v43, %v3400_v58  ;;  %v942_v58 = vmul.f32 %v3722_v14, %v3482_v45 }
 0x1bb   :  { %v3739_v48 = vrot.slane %v907_v63, %v5224_v36  ;;  %v3742_v47 = vrot.slane %v907_v63, %v5225_v20  ;;  %v917_v36 = vmul.f32 %v3725_v43, %v3380_v26  ;;  %v919_v20 = vmul.f32 %v3725_v43, %v3390_v44 }
 0x1bc   :  { %v923_v63 = vmul.f32 %v3725_v43, %v3410_v4  ;;  %v945_v4 = vmul.f32 %v3725_v43, %v3510_v49 }
 0x1bd   :  { %v972_v5 = vadd.f32 %v3742_v47, %v909_v42  ;;  %v974_v46 = vadd.f32 %v3742_v47, %v911_v62  ;;  %v971_v56 = vadd.f32 %v3739_v48, %v908_v31  ;;  %v973_v3 = vadd.f32 %v3739_v48, %v910_v59 }
 0x1be   :  { %v976_v28 = vadd.f32 %v3742_v47, %v913_v25  ;;  %v978_v17 = vadd.f32 %v3742_v47, %v915_v11  ;;  %v975_v57 = vadd.f32 %v3739_v48, %v912_v19  ;;  %v977_v2 = vadd.f32 %v3739_v48, %v914_v8 }
 0x1bf   :  { %v1024_v13 = vpack.c.bf16 %v974_v46, %v972_v5  ;;  %v1023_v22 = vpack.c.bf16 %v973_v3, %v971_v56  ;;  %v980_v26 = vadd.f32 %v3742_v47, %v917_v36  ;;  %v982_v44 = vadd.f32 %v3742_v47, %v919_v20 }
 0x1c0   :  { %v1026_v38 = vpack.c.bf16 %v978_v17, %v976_v28  ;;  %v979_v42 = vadd.f32 %v3739_v48, %v916_v52  ;;  %v981_v62 = vadd.f32 %v3739_v48, %v918_v29  ;;  %v984_v16 = vadd.f32 %v3742_v47, %v921_v7 }
 0x1c1   :  { %1212 = vmatprep.mubr.bf16.mxu1 %v1024_v13  ;;  %v986_v61 = vadd.f32 %v3742_v47, %v923_v63  ;;  %v940_v31 = vmul.f32 %v3722_v14, %v3473_v27  ;;  %v1025_v59 = vpack.c.bf16 %v977_v2, %v975_v57  ;;  %v947_v25 = vmul.f32 %v3725_v43, %v3518_v18 }
 0x1c2   :  { %1213 = vmatmul.mubr.bf16.vlgmr.msra.gmra.mxu1 %v1023_v22  ;;  %v944_v11 = vmul.f32 %v3722_v14, %v3490_v39  ;;  %v1028_v5 = vpack.c.bf16 %v982_v44, %v980_v26  ;;  %v3798_v27 = vadd.f32 %v3739_v48, %v942_v58  ;;  %v3801_v45 = vadd.f32 %v3742_v47, %v945_v4 }
 0x1c3   :  { %1220 = vmatprep.mubr.bf16.mxu1 %v1026_v38  ;;  %v3795_v46 = vadd.f32 %v3739_v48, %v940_v31  ;;  %v1027_v49 = vpack.c.bf16 %v981_v62, %v979_v42  ;;  %v1030_v9 = vpack.c.bf16 %v986_v61, %v984_v16  ;;  %v3804_v56 = vadd.f32 %v3742_v47, %v947_v25  ;;  %v5231_v25 = vld [vmem:[#allocation14_spill] sm:$0xff] }
 0x1c4   :  { %v946_v18 = vmul.f32 %v3722_v14, %v3498_v21  ;;  %v3811_v3 = vadd.f32 %v3739_v48, %v944_v11  ;;  %v949_v28 = vmul.f32 %v3725_v43, %v5220_v60  ;;  %v951_v17 = vmul.f32 %v3725_v43, %v3533_v40 }
 0x1c5   :  { %v1039_v39 = vpack.c.bf16 %v3798_v27, %v3795_v46  ;;  %v1042_v13 = vpack.c.bf16 %v3804_v56, %v3801_v45  ;;  %v948_v21 = vmul.f32 %v3722_v14, %v3506_v50  ;;  %v950_v38 = vmul.f32 %v3722_v14, %v3514_v6 }
 0x1c6   :  { %v3820_v22 = vadd.f32 %v3739_v48, %v946_v18  ;;  %v3827_v12 = vadd.f32 %v3742_v47, %v949_v28  ;;  %v3830_v60 = vadd.f32 %v3742_v47, %v951_v17  ;;  %v953_v40 = vmul.f32 %v3725_v43, %v3544_v34  ;;  %v5232_v17 = vld [vmem:[#allocation10_spill] sm:$0xff] }
 0x1c7   :  { %v955_v19 = vmul.f32 %v3725_v43, %v3555_v51  ;;  %v3839_v50 = vadd.f32 %v3739_v48, %v948_v21  ;;  %v3842_v6 = vadd.f32 %v3739_v48, %v950_v38  ;;  %v952_v8 = vmul.f32 %v3722_v14, %v3522_v55  ;;  %v5233_v21 = vld [vmem:[#allocation11_spill] sm:$0xff]  ;;  %v5234_v38 = vld [vmem:[#allocation16_spill] sm:$0xff] }
 0x1c8   :  { %v1041_v10 = vpack.c.bf16 %v3820_v22, %v3811_v3  ;;  %v1044_v36 = vpack.c.bf16 %v3830_v60, %v3827_v12  ;;  %v3849_v34 = vadd.f32 %v3742_v47, %v953_v40  ;;  %v954_v20 = vmul.f32 %v3722_v14, %v3530_v1 }
 0x1c9   :  { %v3852_v51 = vadd.f32 %v3742_v47, %v955_v19  ;;  %v1043_v30 = vpack.c.bf16 %v3842_v6, %v3839_v50  ;;  %v3859_v52 = vadd.f32 %v3739_v48, %v952_v8  ;;  %v957_v55 = vmul.f32 %v3725_v43, %v5222_v54  ;;  %v5235_v19 = vld [vmem:[#allocation18_spill] sm:$0xff] }
 0x1ca   :  { %1221 = vmatmul.mubr.bf16.gmra.mxu1 %v1025_v59  ;;  %v3864_v29 = vadd.f32 %v3742_v47, %v959_v33  ;;  %v3869_v2 = vadd.f32 %v3739_v48, %v954_v20  ;;  %v956_v1 = vmul.f32 %v3722_v14, %v3537_v41  ;;  %v958_v7 = vmul.f32 %v3722_v14, %v3551_v35 }
 0x1cb   :  { %1228 = vmatprep.mubr.bf16.mxu1 %v1028_v5  ;;  %v1046_v57 = vpack.c.bf16 %v3852_v51, %v3849_v34  ;;  %v920_v63 = vmul.f32 %v3722_v14, %v3376_v23  ;;  %v922_v54 = vmul.f32 %v3722_v14, %v3386_v32  ;;  %v925_v26 = vmul.f32 %v3725_v43, %v3420_v15 }
 0x1cc   :  { %v3882_v44 = vadd.f32 %v3742_v47, %v957_v55  ;;  %v927_v41 = vmul.f32 %v3725_v43, %v3430_v24  ;;  %v1045_v35 = vpack.c.bf16 %v3869_v2, %v3859_v52  ;;  %v3889_v42 = vadd.f32 %v3739_v48, %v956_v1 }
 0x1cd   :  { %v3892_v23 = vadd.f32 %v3739_v48, %v958_v7  ;;  %v983_v32 = vadd.f32 %v3739_v48, %v920_v63  ;;  %v985_v15 = vadd.f32 %v3739_v48, %v922_v54  ;;  %v988_v16 = vadd.f32 %v3742_v47, %v925_v26  ;;  %v5236_v54 = vld [vmem:[#allocation12_spill] sm:$0xff] }
 0x1ce   :  { %v1048_v62 = vpack.c.bf16 %v3864_v29, %v3882_v44  ;;  %v990_v24 = vadd.f32 %v3742_v47, %v927_v41  ;;  %v924_v4 = vmul.f32 %v3722_v14, %v3395_v53  ;;  %v926_v33 = vmul.f32 %v3722_v14, %v3405_v0  ;;  %v5237_v44 = vld [vmem:[#allocation13_spill] sm:$0xff] }
 0x1cf   :  { %v1047_v61 = vpack.c.bf16 %v3892_v23, %v3889_v42  ;;  %v1029_v31 = vpack.c.bf16 %v985_v15, %v983_v32  ;;  %v929_v59 = vmul.f32 %v3725_v43, %v3440_v37  ;;  %v931_v11 = vmul.f32 %v3725_v43, %v5231_v25  ;;  %v5238_v42 = vld [vmem:[#allocation19_spill] sm:$0xff]  ;;  %v5239_v32 = vld [vmem:[#allocation20_spill] sm:$0xff] }
 0x1d0   :  { %v1032_v58 = vpack.c.bf16 %v990_v24, %v988_v16  ;;  %v987_v5 = vadd.f32 %v3739_v48, %v924_v4  ;;  %v928_v0 = vmul.f32 %v3722_v14, %v5232_v17  ;;  %v930_v37 = vmul.f32 %v3722_v14, %v5233_v21 }
 0x1d1   :  { %v994_v18 = vadd.f32 %v3742_v47, %v931_v11  ;;  %v933_v40 = vmul.f32 %v3725_v43, %v5234_v38  ;;  %v935_v8 = vmul.f32 %v3725_v43, %v5235_v19  ;;  %v932_v26 = vmul.f32 %v3722_v14, %v5236_v54  ;;  %v5241_v11 = vld [vmem:[#allocation17_spill] sm:$0xff] }
 0x1d2   :  { %1229 = vmatmul.mubr.bf16.gmra.mxu1 %v1027_v49  ;;  %v989_v49 = vadd.f32 %v3739_v48, %v926_v33  ;;  %v991_v20 = vadd.f32 %v3739_v48, %v928_v0  ;;  %v993_v55 = vadd.f32 %v3739_v48, %v930_v37  ;;  %v934_v41 = vmul.f32 %v3722_v14, %v5237_v44 }
 0x1d3   :  { %1236 = vmatprep.mubr.bf16.mxu1 %v1030_v9  ;;  %v992_v9 = vadd.f32 %v3742_v47, %v929_v59  ;;  %v996_v29 = vadd.f32 %v3742_v47, %v933_v40  ;;  %v998_v1 = vadd.f32 %v3742_v47, %v935_v8  ;;  %v937_v23 = vmul.f32 %v3725_v43, %v5238_v42  ;;  %v5240_v59 = vld [vmem:[#allocation15_spill] sm:$0xff] }
 0x1d4   :  { %v1031_v28 = vpack.c.bf16 %v989_v49, %v987_v5  ;;  %v1033_v7 = vpack.c.bf16 %v993_v55, %v991_v20  ;;  %v939_v15 = vmul.f32 %v3725_v43, %v5239_v32  ;;  %v995_v16 = vadd.f32 %v3739_v48, %v932_v26  ;;  %v5242_v49 = vld [vmem:[#allocation21_spill] sm:$0xff]  ;;  %v3974_v20 = vld [vmem:[%s5160_s5 + $0x3] ss:$0 sm:$0xff] }
 0x1d5   :  { %v1034_v53 = vpack.c.bf16 %v994_v18, %v992_v9  ;;  %v1036_v63 = vpack.c.bf16 %v998_v1, %v996_v29  ;;  %v997_v24 = vadd.f32 %v3739_v48, %v934_v41  ;;  %v936_v25 = vmul.f32 %v3722_v14, %v5240_v59  ;;  %v5243_v18 = vld [vmem:[#allocation22_spill] sm:$0xff] }
 0x1d6   :  { %v938_v5 = vmul.f32 %v3722_v14, %v5241_v11  ;;  %v941_v9 = vmul.f32 %v3725_v43, %v5242_v49 }
 0x1d7   :  { %v1035_v4 = vpack.c.bf16 %v997_v24, %v995_v16 }
 0x1d8   :  { %v1001_v17 = vadd.f32 %v3739_v48, %v938_v5  ;;  %v1004_v0 = vadd.f32 %v3742_v47, %v941_v9 }
 0x1da   :  { %1237 = vmatmul.mubr.bf16.gmra.mxu1 %v1029_v31  ;;  %v1000_v31 = vadd.f32 %v3742_v47, %v937_v23 }
 0x1db   :  { %1244 = vmatprep.mubr.bf16.mxu1 %v1032_v58  ;;  %v1002_v58 = vadd.f32 %v3742_v47, %v939_v15 }
 0x1dd   :  { %v1038_v33 = vpack.c.bf16 %v1002_v58, %v1000_v31 }
 0x1e2   :  { %1245 = vmatmul.mubr.bf16.gmra.mxu1 %v1031_v28  ;;  %v943_v28 = vmul.f32 %v3725_v43, %v5243_v18 }
 0x1e3   :  { %1252 = vmatprep.mubr.bf16.mxu1 %v1034_v53  ;;  %v999_v53 = vadd.f32 %v3739_v48, %v936_v25 }
 0x1e4   :  { %v1006_v21 = vadd.f32 %v3742_v47, %v943_v28 }
 0x1e5   :  { %v1037_v37 = vpack.c.bf16 %v1001_v17, %v999_v53 }
 0x1e6   :  { %v1040_v38 = vpack.c.bf16 %v1006_v21, %v1004_v0 }
 0x1ea   :  { %1253 = vmatmul.mubr.bf16.gmra.mxu1 %v1033_v7 }
 0x1eb   :  { %1260 = vmatprep.mubr.bf16.mxu1 %v1036_v63 }
 0x1f2   :  { %1261 = vmatmul.mubr.bf16.gmra.mxu1 %v1035_v4 }
 0x1f3   :  { %1268 = vmatprep.mubr.bf16.mxu1 %v1038_v33 }
 0x1fa   :  { %1269 = vmatmul.mubr.bf16.gmra.mxu1 %v1037_v37 }
 0x1fb   :  { %1276 = vmatprep.mubr.bf16.mxu1 %v1040_v38 }
 0x202   :  { %1277 = vmatmul.mubr.bf16.gmra.mxu1 %v1039_v39 }
 0x203   :  { %1284 = vmatprep.mubr.bf16.mxu1 %v1042_v13 }
 0x20a   :  { %1285 = vmatmul.mubr.bf16.gmra.mxu1 %v1041_v10 }
 0x20b   :  { %1292 = vmatprep.mubr.bf16.mxu1 %v1044_v36 }
 0x212   :  { %1293 = vmatmul.mubr.bf16.gmra.mxu1 %v1043_v30 }
 0x213   :  { %1300 = vmatprep.mubr.bf16.mxu1 %v1046_v57 }
 0x21a   :  { %1301 = vmatmul.mubr.bf16.gmra.mxu1 %v1045_v35 }
 0x21b   :  { %1308 = vmatprep.mubr.bf16.mxu1 %v1048_v62 }
 0x222   :  { %1309 = vmatmul.mubr.bf16.gmra.mxu1 %v1047_v61 }
 0x282   :  { %v2872_v14 = vpop.f32.mrf.mxu1 }
 0x284   :  { %v2873_v43 = vpop.f32.mrf.mxu1 }
 0x285   :  { %v2874_v19 = vadd.f32 %v2873_v43, %v2872_v14 }
 0x286   :  { %v2875_v48 = vpop.f32.mrf.mxu1 }
 0x287   :  { %v1215_v63 = vadd.f32 %v2874_v19, %v3974_v20 }
 0x288   :  { %v2876_v47 = vpop.f32.mrf.mxu1 }
 0x289   :  { %v2877_v61 = vadd.f32 %v2876_v47, %v2875_v48  ;;  %v3982_v15 = vmax.f32 %v1215_v63, 0.0 }
 0x28a   :  { %v2878_v46 = vpop.f32.mrf.mxu1 }
 0x28b   :  { %v1218_v29 = vadd.f32 %v2877_v61, %v3974_v20 }
 0x28c   :  { %v2879_v27 = vpop.f32.mrf.mxu1 }
 0x28d   :  { %v2880_v8 = vadd.f32 %v2879_v27, %v2878_v46  ;;  %v3979_v41 = vmax.f32 %v1218_v29, 0.0 }
 0x28e   :  { %v2881_v45 = vpop.f32.mrf.mxu1 }
 0x28f   :  { %v1223_v54 = vadd.f32 %v2880_v8, %v3974_v20  ;;  %v1369_v4 = vadd.f32 %v3979_v41, %v3982_v15 }
 0x290   :  { %v2882_v56 = vpop.f32.mrf.mxu1 }
 0x291   :  { %v2883_v1 = vadd.f32 %v2882_v56, %v2881_v45  ;;  %v3984_v16 = vmax.f32 %v1223_v54, 0.0 }
 0x292   :  { %v2884_v39 = vpop.f32.mrf.mxu1 }
 0x293   :  { %v1226_v42 = vadd.f32 %v2883_v1, %v3974_v20  ;;  %v1370_v5 = vadd.f32 %v1369_v4, %v3984_v16 }
 0x294   :  { %v2885_v3 = vpop.f32.mrf.mxu1 }
 0x295   :  { %v2886_v26 = vadd.f32 %v2885_v3, %v2884_v39  ;;  %v3989_v33 = vmax.f32 %v1226_v42, 0.0 }
 0x296   :  { %v2887_v13 = vpop.f32.mrf.mxu1 }
 0x297   :  { %v1231_v24 = vadd.f32 %v2886_v26, %v3974_v20  ;;  %v1371_v53 = vadd.f32 %v1370_v5, %v3989_v33 }
 0x298   :  { %v2888_v22 = vpop.f32.mrf.mxu1 }
 0x299   :  { %v2889_v23 = vadd.f32 %v2888_v22, %v2887_v13  ;;  %v3993_v49 = vmax.f32 %v1231_v24, 0.0 }
 0x29a   :  { %v2890_v12 = vpop.f32.mrf.mxu1 }
 0x29b   :  { %v1234_v59 = vadd.f32 %v2889_v23, %v3974_v20  ;;  %v1372_v38 = vadd.f32 %v1371_v53, %v3993_v49 }
 0x29c   :  { %v2891_v60 = vpop.f32.mrf.mxu1 }
 0x29d   :  { %v2892_v31 = vadd.f32 %v2891_v60, %v2890_v12  ;;  %v3997_v17 = vmax.f32 %v1234_v59, 0.0 }
 0x29e   :  { %v2893_v10 = vpop.f32.mrf.mxu1 }
 0x29f   :  { %v1239_v9 = vadd.f32 %v2892_v31, %v3974_v20  ;;  %v1373_v46 = vadd.f32 %v1372_v38, %v3997_v17 }
 0x2a0   :  { %v2894_v50 = vpop.f32.mrf.mxu1 }
 0x2a1   :  { %v2895_v25 = vadd.f32 %v2894_v50, %v2893_v10  ;;  %v4001_v14 = vmax.f32 %v1239_v9, 0.0 }
 0x2a2   :  { %v2896_v6 = vpop.f32.mrf.mxu1 }
 0x2a3   :  { %v1242_v0 = vadd.f32 %v2895_v25, %v3974_v20  ;;  %v1374_v3 = vadd.f32 %v1373_v46, %v4001_v14 }
 0x2a4   :  { %v2897_v36 = vpop.f32.mrf.mxu1 }
 0x2a5   :  { %v2898_v18 = vadd.f32 %v2897_v36, %v2896_v6  ;;  %v4005_v27 = vmax.f32 %v1242_v0, 0.0 }
 0x2a6   :  { %v2899_v34 = vpop.f32.mrf.mxu1 }
 0x2a7   :  { %v1247_v43 = vadd.f32 %v2898_v18, %v3974_v20  ;;  %v1375_v10 = vadd.f32 %v1374_v3, %v4005_v27  ;;  %v3163_v3 = vld [vmem:[%s5162_s3 + $0x38] sm:$0xff]  }
 0x2a8   :  { %v2900_v51 = vpop.f32.mrf.mxu1 }
 0x2a9   :  { %v2901_v21 = vadd.f32 %v2900_v51, %v2899_v34  ;;  %v4009_v13 = vmax.f32 %v1247_v43, 0.0 }
 0x2aa   :  { %v2902_v30 = vpop.f32.mrf.mxu1 }
 0x2ab   :  { %v1250_v45 = vadd.f32 %v2901_v21, %v3974_v20  ;;  %v1376_v51 = vadd.f32 %v1375_v10, %v4009_v13 }
 0x2ac   :  { %v2903_v52 = vpop.f32.mrf.mxu1 }
 0x2ad   :  { %v2904_v48 = vadd.f32 %v2903_v52, %v2902_v30  ;;  %v4013_v50 = vmax.f32 %v1250_v45, 0.0 }
 0x2ae   :  { %v2905_v57 = vpop.f32.mrf.mxu1 }
 0x2af   :  { %v1255_v22 = vadd.f32 %v2904_v48, %v3974_v20  ;;  %v1377_v61 = vadd.f32 %v1376_v51, %v4013_v50 }
 0x2b0   :  { %v2906_v2 = vpop.f32.mrf.mxu1 }
 0x2b1   :  { %v2907_v56 = vadd.f32 %v2906_v2, %v2905_v57  ;;  %v4017_v30 = vmax.f32 %v1255_v22, 0.0 }
 0x2b2   :  { %v2908_v35 = vpop.f32.mrf.mxu1 }
 0x2b3   :  { %v1258_v6 = vadd.f32 %v2907_v56, %v3974_v20  ;;  %v1378_v29 = vadd.f32 %v1377_v61, %v4017_v30 }
 0x2b4   :  { %v2909_v62 = vpop.f32.mrf.mxu1 }
 0x2b5   :  { %v2910_v12 = vadd.f32 %v2909_v62, %v2908_v35  ;;  %v4021_v35 = vmax.f32 %v1258_v6, 0.0  ;;  %v3187_v6 = vmov 0.0  }
 0x2b6   :  { %v2911_v40 = vpop.f32.mrf.mxu1  ;;  %2988 = vmatprep.subr.bf16.mxu0 %v3187_v6  ;;  %3116 = vmatprep.subr.bf16.mxu1 %v3187_v6 }
 0x2b7   :  { %v1263_v52 = vadd.f32 %v2910_v12, %v3974_v20  ;;  %v1379_v54 = vadd.f32 %v1378_v29, %v4021_v35  ;;  %2989 = vmatpush3.bf16.msra.mxu0 %v3163_v3  ;;  %3004 = vmatprep.mubr.msk.bf16.mxu0 %vm3188_vm1, %v3187_v6 }
 0x2b8   :  { %v2912_v55 = vpop.f32.mrf.mxu1  ;;  %2990 = vmatprep.subr.bf16.mxu0 %v3187_v6  ;;  %3068 = vmatprep.mubr.msk.bf16.mxu1 %vm3188_vm1, %v3187_v6 }
 0x2b9   :  { %v2913_v36 = vadd.f32 %v2912_v55, %v2911_v40  ;;  %v4025_v40 = vmax.f32 %v1263_v52, 0.0 }
 0x2ba   :  { %v2914_v7 = vpop.f32.mrf.mxu1 }
 0x2bb   :  { %v1266_v62 = vadd.f32 %v2913_v36, %v3974_v20  ;;  %v1380_v23 = vadd.f32 %v1379_v54, %v4025_v40 }
 0x2bc   :  { %v2915_v44 = vpop.f32.mrf.mxu1 }
 0x2bd   :  { %v2916_v57 = vadd.f32 %v2915_v44, %v2914_v7  ;;  %v4029_v7 = vmax.f32 %v1266_v62, 0.0 }
 0x2be   :  { %v2917_v32 = vpop.f32.mrf.mxu1 }
 0x2bf   :  { %v1271_v55 = vadd.f32 %v2916_v57, %v3974_v20  ;;  %v1381_v4 = vadd.f32 %v1380_v23, %v4029_v7 }
 0x2c0   :  { %v2918_v58 = vpop.f32.mrf.mxu1 }
 0x2c1   :  { %v2919_v19 = vadd.f32 %v2918_v58, %v2917_v32  ;;  %v4033_v32 = vmax.f32 %v1271_v55, 0.0  ;;  %v3165_v55 = vld [vmem:[%s5162_s3 + $0x28] sm:$0xff]  }
 0x2c2   :  { %v2920_v11 = vpop.f32.mrf.mxu1 }
 0x2c3   :  { %v1274_v26 = vadd.f32 %v2919_v19, %v3974_v20  ;;  %v1382_v9 = vadd.f32 %v1381_v4, %v4033_v32 }
 0x2c4   :  { %v2921_v28 = vpop.f32.mrf.mxu1 }
 0x2c5   :  { %v2922_v1 = vadd.f32 %v2921_v28, %v2920_v11  ;;  %v4037_v59 = vmax.f32 %v1274_v26, 0.0 }
 0x2c6   :  { %v2923_v37 = vpop.f32.mrf.mxu1 }
 0x2c7   :  { %v1279_v24 = vadd.f32 %v2922_v1, %v3974_v20  ;;  %v1383_v21 = vadd.f32 %v1382_v9, %v4037_v59 }
 0x2c8   :  { %v2924_v47 = vpop.f32.mrf.mxu1 }
 0x2c9   :  { %v2925_v44 = vadd.f32 %v2924_v47, %v2923_v37  ;;  %v4041_v18 = vmax.f32 %v1279_v24, 0.0  ;;  %v3166_v24 = vld [vmem:[%s5162_s3 + $0x20] sm:$0xff]  }
 0x2ca   :  { %v2926_v39 = vpop.f32.mrf.mxu1 }
 0x2cb   :  { %v1282_v25 = vadd.f32 %v2925_v44, %v3974_v20  ;;  %v1384_v47 = vadd.f32 %v1383_v21, %v4041_v18 }
 0x2cc   :  { %v2927_v60 = vpop.f32.mrf.mxu1 }
 0x2cd   :  { %v2928_v31 = vadd.f32 %v2927_v60, %v2926_v39  ;;  %v4045_v37 = vmax.f32 %v1282_v25, 0.0 }
 0x2ce   :  { %v2929_v34 = vpop.f32.mrf.mxu1 }
 0x2cf   :  { %v1287_v28 = vadd.f32 %v2928_v31, %v3974_v20  ;;  %v1385_v22 = vadd.f32 %v1384_v47, %v4045_v37  ;;  %v3170_v47 = vld [vmem:[%s5162_s3] sm:$0xff]  }
 0x2d0   :  { %v2930_v2 = vpop.f32.mrf.mxu1 }
 0x2d1   :  { %v2931_v11 = vadd.f32 %v2930_v2, %v2929_v34  ;;  %v4049_v46 = vmax.f32 %v1287_v28, 0.0  ;;  %v3164_v34 = vld [vmem:[%s5162_s3 + $0x30] sm:$0xff]  }
 0x2d2   :  { %v2932_v8 = vpop.f32.mrf.mxu1  ;;  %2991 = vmatpush3.bf16.msra.mxu0 %v3164_v34 }
 0x2d3   :  { %v1290_v38 = vadd.f32 %v2931_v11, %v3974_v20  ;;  %v1386_v51 = vadd.f32 %v1385_v22, %v4049_v46  ;;  %2992 = vmatprep.subr.bf16.mxu0 %v3187_v6 }
 0x2d4   :  { %v2933_v63 = vpop.f32.mrf.mxu1 }
 0x2d5   :  { %v2934_v53 = vadd.f32 %v2933_v63, %v2932_v8  ;;  %v4056_v12 = vmax.f32 %v1290_v38, 0.0  ;;  %v3169_v38 = vld [vmem:[%s5162_s3 + $0x8] sm:$0xff]  }
 0x2d6   :  { %v2935_v42 = vpop.f32.mrf.mxu1  ;;  %2993 = vmatpush3.bf16.msra.mxu0 %v3165_v55 }
 0x2d7   :  { %v1295_v45 = vadd.f32 %v2934_v53, %v3974_v20  ;;  %v1387_v61 = vadd.f32 %v1386_v51, %v4056_v12  ;;  %2994 = vmatprep.subr.bf16.mxu0 %v3187_v6 }
 0x2d8   :  { %v2936_v58 = vpop.f32.mrf.mxu1 }
 0x2d9   :  { %v2937_v43 = vadd.f32 %v2936_v58, %v2935_v42  ;;  %v4065_v52 = vmax.f32 %v1295_v45, 0.0 }
 0x2da   :  { %v2938_v5 = vpop.f32.mrf.mxu1  ;;  %2995 = vmatpush3.bf16.msra.mxu0 %v3166_v24 }
 0x2db   :  { %v1298_v60 = vadd.f32 %v2937_v43, %v3974_v20  ;;  %v1388_v1 = vadd.f32 %v1387_v61, %v4065_v52  ;;  %2996 = vmatprep.subr.bf16.mxu0 %v3187_v6 }
 0x2dc   :  { %v2939_v0 = vpop.f32.mrf.mxu1 }
 0x2dd   :  { %v2940_v56 = vadd.f32 %v2939_v0, %v2938_v5  ;;  %v4074_v62 = vmax.f32 %v1298_v60, 0.0  ;;  %v3167_v5 = vld [vmem:[%s5162_s3 + $0x18] sm:$0xff]  }
 0x2de   :  { %v2941_v48 = vpop.f32.mrf.mxu1  ;;  %2997 = vmatpush3.bf16.msra.mxu0 %v3167_v5 }
 0x2df   :  { %v1303_v57 = vadd.f32 %v2940_v56, %v3974_v20  ;;  %v1389_v44 = vadd.f32 %v1388_v1, %v4074_v62  ;;  %2998 = vmatprep.subr.bf16.mxu0 %v3187_v6 }
 0x2e0   :  { %v2942_v39 = vpop.f32.mrf.mxu1 }
 0x2e1   :  { %v2943_v10 = vadd.f32 %v2942_v39, %v2941_v48  ;;  %v4081_v63 = vmax.f32 %v1303_v57, 0.0 }
 0x2e2   :  { %v2944_v36 = vpop.f32.mrf.mxu1 }
 0x2e3   :  { %v1306_v19 = vadd.f32 %v2943_v10, %v3974_v20  ;;  %v1390_v31 = vadd.f32 %v1389_v44, %v4081_v63 }
 0x2e4   :  { %v2945_v2 = vpop.f32.mrf.mxu1 }
 0x2e5   :  { %v2946_v8 = vadd.f32 %v2945_v2, %v2944_v36  ;;  %v4086_v42 = vmax.f32 %v1306_v19, 0.0 }
 0x2e6   :  { %v2947_v29 = vpop.f32.mrf.mxu1 }
 0x2e7   :  { %v1311_v54 = vadd.f32 %v2946_v8, %v3974_v20  ;;  %v1391_v25 = vadd.f32 %v1390_v31, %v4086_v42 }
 0x2e8   :  { %v2948_v26 = vpop.f32.mrf.mxu1 }
 0x2e9   :  { %v2949_v23 = vadd.f32 %v2948_v26, %v2947_v29  ;;  %v4092_v58 = vmax.f32 %v1311_v54, 0.0 }
 0x2eb   :  { %v1314_v4 = vadd.f32 %v2949_v23, %v3974_v20  ;;  %v1392_v9 = vadd.f32 %v1391_v25, %v4092_v58  ;;  %v3168_v20 = vld [vmem:[%s5162_s3 + $0x10] sm:$0xff]  }
 0x2ec   :  { %2999 = vmatpush3.bf16.msra.mxu0 %v3168_v20 }
 0x2ed   :  { %v4097_v11 = vmax.f32 %v1314_v4, 0.0  ;;  %3000 = vmatprep.subr.bf16.mxu0 %v3187_v6 }
 0x2ef   :  { %v1368_v28 = vmul.f32 0.0, %v4097_v11 }
 0x2f0   :  { %3001 = vmatpush3.bf16.msra.mxu0 %v3169_v38 }
 0x2f1   :  { %v1393_v53 = vadd.f32 %v1392_v9, %v1368_v28  ;;  %3002 = vmatprep.subr.bf16.mxu0 %v3187_v6 }
 0x2f3   :  { %v1394_v0 = vrot.slane %v1393_v53, 4 }
 0x2f4   :  { %3003 = vmatpush3.bf16.msra.mxu0 %v3170_v47 }
 0x2f5   :  { %v1395_v21 = vadd.f32 %v1394_v0, %v1393_v53  ;;  %3056 = vmatprep.subr.bf16.mxu0 %v3187_v6 }
 0x2f7   :  { %v1396_v43 = vrot.slane %v1395_v21, 2 }
 0x2f9   :  { %v1397_v48 = vadd.f32 %v1396_v43, %v1395_v21 }
 0x2fb   :  { %v1398_v45 = vrot.slane %v1397_v48, 1 }
 0x2fd   :  { %v1399_v56 = vadd.f32 %v1398_v45, %v1397_v48 }
 0x2ff   :  { %v4118_v39 = vmul.f32 0.005, %v1399_v56 }
 0x301   :  { %v1401_v3 = vsub.f32 %v3982_v15, %v4118_v39  ;;  %v1402_v22 = vsub.f32 %v3979_v41, %v4118_v39  ;;  %v1403_v60 = vsub.f32 %v3984_v16, %v4118_v39  ;;  %v1404_v34 = vsub.f32 %v3989_v33, %v4118_v39 }
 0x302   :  { %v1405_v51 = vsub.f32 %v3993_v49, %v4118_v39  ;;  %v1406_v61 = vsub.f32 %v3997_v17, %v4118_v39  ;;  %v1407_v29 = vsub.f32 %v4001_v14, %v4118_v39  ;;  %v1408_v54 = vsub.f32 %v4005_v27, %v4118_v39 }
 0x303   :  { %v1453_v10 = vmul.f32 %v1401_v3, %v1401_v3  ;;  %v1454_v36 = vmul.f32 %v1402_v22, %v1402_v22  ;;  %v1455_v57 = vmul.f32 %v1403_v60, %v1403_v60  ;;  %v1456_v19 = vmul.f32 %v1404_v34, %v1404_v34 }
 0x304   :  { %v1457_v55 = vmul.f32 %v1405_v51, %v1405_v51  ;;  %v1458_v26 = vmul.f32 %v1406_v61, %v1406_v61  ;;  %v1409_v23 = vsub.f32 %v4009_v13, %v4118_v39  ;;  %v1459_v24 = vmul.f32 %v1407_v29, %v1407_v29 }
 0x305   :  { %v1479_v2 = vadd.f32 %v1454_v36, %v1453_v10  ;;  %v1410_v4 = vsub.f32 %v4013_v50, %v4118_v39  ;;  %v1460_v25 = vmul.f32 %v1408_v54, %v1408_v54  ;;  %v1411_v9 = vsub.f32 %v4017_v30, %v4118_v39 }
 0x306   :  { %v1461_v28 = vmul.f32 %v1409_v23, %v1409_v23  ;;  %v1412_v20 = vsub.f32 %v4021_v35, %v4118_v39  ;;  %v1413_v38 = vsub.f32 %v4025_v40, %v4118_v39  ;;  %v1414_v47 = vsub.f32 %v4029_v7, %v4118_v39 }
 0x307   :  { %v1480_v8 = vadd.f32 %v1479_v2, %v1455_v57  ;;  %v1462_v0 = vmul.f32 %v1410_v4, %v1410_v4  ;;  %v1463_v43 = vmul.f32 %v1411_v9, %v1411_v9  ;;  %v1415_v3 = vsub.f32 %v4033_v32, %v4118_v39 }
 0x308   :  { %v1464_v45 = vmul.f32 %v1412_v20, %v1412_v20  ;;  %v1465_v22 = vmul.f32 %v1413_v38, %v1413_v38  ;;  %v1416_v10 = vsub.f32 %v4037_v59, %v4118_v39  ;;  %v1466_v36 = vmul.f32 %v1414_v47, %v1414_v47 }
 0x309   :  { %v1481_v1 = vadd.f32 %v1480_v8, %v1456_v19  ;;  %v1417_v51 = vsub.f32 %v4041_v18, %v4118_v39  ;;  %v1467_v57 = vmul.f32 %v1415_v3, %v1415_v3  ;;  %v1418_v61 = vsub.f32 %v4045_v37, %v4118_v39 }
 0x30a   :  { %v1468_v19 = vmul.f32 %v1416_v10, %v1416_v10  ;;  %v1419_v29 = vsub.f32 %v4049_v46, %v4118_v39  ;;  %v1420_v54 = vsub.f32 %v4056_v12, %v4118_v39  ;;  %v1421_v23 = vsub.f32 %v4065_v52, %v4118_v39 }
 0x30b   :  { %v1482_v44 = vadd.f32 %v1481_v1, %v1457_v55  ;;  %v1469_v55 = vmul.f32 %v1417_v51, %v1417_v51  ;;  %v1422_v4 = vsub.f32 %v4074_v62, %v4118_v39  ;;  %v1423_v9 = vsub.f32 %v4081_v63, %v4118_v39 }
 0x30c   :  { %v1424_v20 = vsub.f32 %v4086_v42, %v4118_v39 }
 0x30d   :  { %v1483_v31 = vadd.f32 %v1482_v44, %v1458_v26  ;;  %v1470_v26 = vmul.f32 %v1418_v61, %v1418_v61 }
 0x30f   :  { %v1484_v5 = vadd.f32 %v1483_v31, %v1459_v24  ;;  %v1471_v24 = vmul.f32 %v1419_v29, %v1419_v29 }
 0x311   :  { %v1485_v53 = vadd.f32 %v1484_v5, %v1460_v25  ;;  %v1472_v25 = vmul.f32 %v1420_v54, %v1420_v54  ;;  %v1050_v54 = vld [vmem:[%s5160_s5 + $0x4] ss:$0 sm:$0xff] }
 0x313   :  { %v1486_v21 = vadd.f32 %v1485_v53, %v1461_v28  ;;  %v1473_v28 = vmul.f32 %v1421_v23, %v1421_v23  ;;  %v1051_v23 = vld [vmem:[%s5160_s5 + $0x5] ss:$0 sm:$0xff] }
 0x315   :  { %v1487_v48 = vadd.f32 %v1486_v21, %v1462_v0  ;;  %v1426_v0 = vsub.f32 %v4097_v11, %v4118_v39  ;;  %v1474_v21 = vmul.f32 %v1422_v4, %v1422_v4 }
 0x317   :  { %v1488_v56 = vadd.f32 %v1487_v48, %v1463_v43  ;;  %v1425_v43 = vsub.f32 %v4092_v58, %v4118_v39  ;;  %v1475_v48 = vmul.f32 %v1423_v9, %v1423_v9 }
 0x319   :  { %v1489_v60 = vadd.f32 %v1488_v56, %v1464_v45  ;;  %v1452_v45 = vmul.f32 0.0, %v1426_v0  ;;  %v1476_v56 = vmul.f32 %v1424_v20, %v1424_v20 }
 0x31b   :  { %v1490_v34 = vadd.f32 %v1489_v60, %v1465_v22  ;;  %v1477_v22 = vmul.f32 %v1425_v43, %v1425_v43  ;;  %v1478_v10 = vmul.f32 %v1452_v45, %v1452_v45 }
 0x31d   :  { %v1491_v2 = vadd.f32 %v1490_v34, %v1466_v36 }
 0x31f   :  { %v1492_v8 = vadd.f32 %v1491_v2, %v1467_v57 }
 0x321   :  { %v1493_v1 = vadd.f32 %v1492_v8, %v1468_v19 }
 0x323   :  { %v1494_v44 = vadd.f32 %v1493_v1, %v1469_v55 }
 0x325   :  { %v1495_v31 = vadd.f32 %v1494_v44, %v1470_v26 }
 0x327   :  { %v1496_v5 = vadd.f32 %v1495_v31, %v1471_v24 }
 0x329   :  { %v1497_v53 = vadd.f32 %v1496_v5, %v1472_v25 }
 0x32b   :  { %v1498_v38 = vadd.f32 %v1497_v53, %v1473_v28 }
 0x32d   :  { %v1499_v47 = vadd.f32 %v1498_v38, %v1474_v21 }
 0x32f   :  { %v1500_v3 = vadd.f32 %v1499_v47, %v1475_v48 }
 0x331   :  { %v1501_v60 = vadd.f32 %v1500_v3, %v1476_v56 }
 0x333   :  { %v1502_v36 = vadd.f32 %v1501_v60, %v1477_v22 }
 0x335   :  { %v1503_v34 = vadd.f32 %v1502_v36, %v1478_v10 }
 0x337   :  { %v1504_v51 = vrot.slane %v1503_v34, 4 }
 0x339   :  { %v1505_v57 = vadd.f32 %v1504_v51, %v1503_v34 }
 0x33b   :  { %v1506_v2 = vrot.slane %v1505_v57, 2 }
 0x33d   :  { %v1507_v61 = vadd.f32 %v1506_v2, %v1505_v57 }
 0x33f   :  { %v1508_v19 = vrot.slane %v1507_v61, 1 }
 0x341   :  { %v1509_v8 = vadd.f32 %v1508_v19, %v1507_v61 }
 0x343   :  { %v1510_v29 = vmul.f32 0.005, %v1509_v8 }
 0x345   :  { %v1511_v55 = vmax.f32 %v1510_v29, 0.0 }
 0x347   :  { %v1512_v1 = vadd.f32 1e-05, %v1511_v55 }
 0x349   :  { %3179 = vrsqrt.f32 %v1512_v1 }
 0x356   :  { %v3180_v26 = vpop.eup %3179 }
 0x357   :  { %v4175_v44 = vmul.f32 %v3180_v26, %v1050_v54 }
 0x359   :  { %v1515_v24 = vmul.f32 %v4175_v44, %v4118_v39  ;;  %v1517_v4 = vmul.f32 %v4175_v44, %v3982_v15  ;;  %v1518_v25 = vmul.f32 %v4175_v44, %v3979_v41  ;;  %v1519_v53 = vmul.f32 %v4175_v44, %v3984_v16 }
 0x35a   :  { %v1520_v20 = vmul.f32 %v4175_v44, %v3989_v33  ;;  %v1533_v41 = vmul.f32 %v4175_v44, %v4041_v18  ;;  %v1534_v0 = vmul.f32 %v4175_v44, %v4045_v37  ;;  %v1535_v16 = vmul.f32 %v4175_v44, %v4049_v46 }
 0x35b   :  { %v4182_v31 = vsub.f32 %v1051_v23, %v1515_v24  ;;  %v1536_v33 = vmul.f32 %v4175_v44, %v4056_v12  ;;  %v1537_v43 = vmul.f32 %v4175_v44, %v4065_v52  ;;  %v1542_v18 = vmul.f32 %v4175_v44, %v4097_v11 }
 0x35c   :  { %v1538_v12 = vmul.f32 %v4175_v44, %v4074_v62  ;;  %v1539_v52 = vmul.f32 %v4175_v44, %v4081_v63  ;;  %v1540_v3 = vmul.f32 %v4175_v44, %v4086_v42  ;;  %v1541_v62 = vmul.f32 %v4175_v44, %v4092_v58 }
 0x35d   :  { %v1543_v5 = vadd.f32 %v1517_v4, %v4182_v31  ;;  %v1544_v9 = vadd.f32 %v1518_v25, %v4182_v31  ;;  %v1545_v15 = vadd.f32 %v1519_v53, %v4182_v31  ;;  %v1546_v39 = vadd.f32 %v1520_v20, %v4182_v31 }
 0x35e   :  { %v4207_v21 = vadd.f32 %v1533_v41, %v4182_v31  ;;  %v4210_v38 = vadd.f32 %v1534_v0, %v4182_v31  ;;  %v4217_v37 = vadd.f32 %v1535_v16, %v4182_v31  ;;  %v4220_v46 = vadd.f32 %v1536_v33, %v4182_v31 }
 0x35f   :  { %v1569_v28 = vpack.c.bf16 %v1544_v9, %v1543_v5  ;;  %v1570_v48 = vpack.c.bf16 %v1546_v39, %v1545_v15  ;;  %v1563_v45 = vadd.f32 %v1537_v43, %v4182_v31  ;;  %v1564_v56 = vadd.f32 %v1538_v12, %v4182_v31 }
 0x360   :  { %v1577_v47 = vpack.c.bf16 %v4210_v38, %v4207_v21  ;;  %v1578_v11 = vpack.c.bf16 %v4220_v46, %v4217_v37  ;;  %v1521_v22 = vmul.f32 %v4175_v44, %v3993_v49  ;;  %v1565_v60 = vadd.f32 %v1539_v52, %v4182_v31 }
 0x361   :  { %3005 = vmatmul.mubr.bf16.vlgmr.msra.gmra.mxu0 %v1569_v28  ;;  %v1568_v10 = vadd.f32 %v1542_v18, %v4182_v31  ;;  %v1522_v63 = vmul.f32 %v4175_v44, %v3997_v17  ;;  %v1579_v36 = vpack.c.bf16 %v1564_v56, %v1563_v45  ;;  %v1566_v34 = vadd.f32 %v1540_v3, %v4182_v31  ;;  %v4303_v3 = vld [vmem:[%s5160_s5 + $0x6] ss:$0 sm:$0xff] }
 0x362   :  { %3008 = vmatprep.mubr.msk.bf16.mxu0 %vm3188_vm1, %v3187_v6  ;;  %v1567_v51 = vadd.f32 %v1541_v62, %v4182_v31  ;;  %v1547_v42 = vadd.f32 %v1521_v22, %v4182_v31  ;;  %v1523_v61 = vmul.f32 %v4175_v44, %v4001_v14  ;;  %v1524_v17 = vmul.f32 %v4175_v44, %v4005_v27 }
 0x363   :  { %v1548_v49 = vadd.f32 %v1522_v63, %v4182_v31  ;;  %v1580_v58 = vpack.c.bf16 %v1566_v34, %v1565_v60  ;;  %v1525_v55 = vmul.f32 %v4175_v44, %v4009_v13  ;;  %v1526_v1 = vmul.f32 %v4175_v44, %v4013_v50 }
 0x364   :  { %v1581_v57 = vpack.c.bf16 %v1568_v10, %v1567_v51  ;;  %v1549_v19 = vadd.f32 %v1523_v61, %v4182_v31  ;;  %v1550_v8 = vadd.f32 %v1524_v17, %v4182_v31  ;;  %v1527_v26 = vmul.f32 %v4175_v44, %v4017_v30 }
 0x365   :  { %v1571_v2 = vpack.c.bf16 %v1548_v49, %v1547_v42  ;;  %v1551_v14 = vadd.f32 %v1525_v55, %v4182_v31  ;;  %v1552_v27 = vadd.f32 %v1526_v1, %v4182_v31  ;;  %v1528_v23 = vmul.f32 %v4175_v44, %v4021_v35 }
 0x366   :  { %v1572_v29 = vpack.c.bf16 %v1550_v8, %v1549_v19  ;;  %v1553_v13 = vadd.f32 %v1527_v26, %v4182_v31  ;;  %v1529_v4 = vmul.f32 %v4175_v44, %v4025_v40  ;;  %v1530_v25 = vmul.f32 %v4175_v44, %v4029_v7 }
 0x367   :  { %v1573_v54 = vpack.c.bf16 %v1552_v27, %v1551_v14  ;;  %v1554_v50 = vadd.f32 %v1528_v23, %v4182_v31  ;;  %v1531_v9 = vmul.f32 %v4175_v44, %v4033_v32  ;;  %v1532_v28 = vmul.f32 %v4175_v44, %v4037_v59 }
 0x368   :  { %v1555_v30 = vadd.f32 %v1529_v4, %v4182_v31  ;;  %v1556_v35 = vadd.f32 %v1530_v25, %v4182_v31 }
 0x369   :  { %3009 = vmatmul.mubr.bf16.gmra.mxu0 %v1570_v48  ;;  %v1574_v24 = vpack.c.bf16 %v1554_v50, %v1553_v13  ;;  %v1557_v40 = vadd.f32 %v1531_v9, %v4182_v31  ;;  %v1558_v7 = vadd.f32 %v1532_v28, %v4182_v31 }
 0x36a   :  { %3012 = vmatprep.mubr.msk.bf16.mxu0 %vm3188_vm1, %v3187_v6  ;;  %v1575_v5 = vpack.c.bf16 %v1556_v35, %v1555_v30 }
 0x36b   :  { %v1576_v53 = vpack.c.bf16 %v1558_v7, %v1557_v40 }
 0x371   :  { %3013 = vmatmul.mubr.bf16.gmra.mxu0 %v1571_v2 }
 0x372   :  { %3016 = vmatprep.mubr.msk.bf16.mxu0 %vm3188_vm1, %v3187_v6 }
 0x379   :  { %3017 = vmatmul.mubr.bf16.gmra.mxu0 %v1572_v29 }
 0x37a   :  { %3020 = vmatprep.mubr.msk.bf16.mxu0 %vm3188_vm1, %v3187_v6 }
 0x381   :  { %3021 = vmatmul.mubr.bf16.gmra.mxu0 %v1573_v54 }
 0x382   :  { %3024 = vmatprep.mubr.msk.bf16.mxu0 %vm3188_vm1, %v3187_v6 }
 0x389   :  { %3025 = vmatmul.mubr.bf16.gmra.mxu0 %v1574_v24 }
 0x38a   :  { %3028 = vmatprep.mubr.msk.bf16.mxu0 %vm3188_vm1, %v3187_v6 }
 0x391   :  { %3029 = vmatmul.mubr.bf16.gmra.mxu0 %v1575_v5 }
 0x392   :  { %3032 = vmatprep.mubr.msk.bf16.mxu0 %vm3188_vm1, %v3187_v6 }
 0x399   :  { %3033 = vmatmul.mubr.bf16.gmra.mxu0 %v1576_v53 }
 0x39a   :  { %3036 = vmatprep.mubr.msk.bf16.mxu0 %vm3188_vm1, %v3187_v6 }
 0x3a1   :  { %3037 = vmatmul.mubr.bf16.gmra.mxu0 %v1577_v47 }
 0x3a2   :  { %3040 = vmatprep.mubr.msk.bf16.mxu0 %vm3188_vm1, %v3187_v6 }
 0x3a9   :  { %3041 = vmatmul.mubr.bf16.gmra.mxu0 %v1578_v11 }
 0x3aa   :  { %3044 = vmatprep.mubr.msk.bf16.mxu0 %vm3188_vm1, %v3187_v6 }
 0x3b1   :  { %3045 = vmatmul.mubr.bf16.gmra.mxu0 %v1579_v36 }
 0x3b2   :  { %3048 = vmatprep.mubr.msk.bf16.mxu0 %vm3188_vm1, %v3187_v6 }
 0x3b9   :  { %3049 = vmatmul.mubr.bf16.gmra.mxu0 %v1580_v58 }
 0x3ba   :  { %3052 = vmatprep.mubr.msk.bf16.mxu0 %vm3188_vm1, %v3187_v6 }
 0x3c1   :  { %3053 = vmatmul.mubr.bf16.gmra.mxu0 %v1581_v57 }
 0x3c2   :  { %3064 = vmatprep.mubr.msk.bf16.mxu0 %vm3188_vm1, %v3187_v6 }
 0x421   :  { %v1683_v32 = vpop.f32.mrf.mxu0 }
 0x422   :  { %v1684_v10 = vadd.f32 %v1683_v32, %v4303_v3 }
 0x423   :  { %v3006_v59 = vpop.f32.mrf.mxu0 }
 0x424   :  { %v4311_v49 = vmax.f32 %v1684_v10, 0.0 }
 0x425   :  { %v1686_v44 = vpop.f32.mrf.mxu0 }
 0x426   :  { %v1687_v22 = vadd.f32 %v1686_v44, %v4303_v3  ;;  %v1839_v29 = vsel %vm1838_vm2, %v4311_v49, 0.0 }
 0x427   :  { %v3007_v31 = vpop.f32.mrf.mxu0 }
 0x428   :  { %v4308_v34 = vmax.f32 %v1687_v22, 0.0 }
 0x429   :  { %v1691_v20 = vpop.f32.mrf.mxu0 }
 0x42a   :  { %v1692_v63 = vadd.f32 %v1691_v20, %v4303_v3  ;;  %v1840_v61 = vsel %vm1838_vm2, %v4308_v34, 0.0 }
 0x42b   :  { %v3010_v15 = vpop.f32.mrf.mxu0  ;;  %v1841_v27 = vadd.f32 %v1840_v61, %v1839_v29 }
 0x42c   :  { %v4313_v58 = vmax.f32 %v1692_v63, 0.0 }
 0x42d   :  { %v1694_v39 = vpop.f32.mrf.mxu0 }
 0x42e   :  { %v1695_v51 = vadd.f32 %v1694_v39, %v4303_v3  ;;  %v1842_v55 = vsel %vm1838_vm2, %v4313_v58, 0.0 }
 0x42f   :  { %v3011_v41 = vpop.f32.mrf.mxu0  ;;  %v1843_v50 = vadd.f32 %v1842_v55, %v1841_v27 }
 0x430   :  { %v4318_v17 = vmax.f32 %v1695_v51, 0.0 }
 0x431   :  { %v1699_v0 = vpop.f32.mrf.mxu0 }
 0x432   :  { %v1700_v57 = vadd.f32 %v1699_v0, %v4303_v3  ;;  %v1844_v26 = vsel %vm1838_vm2, %v4318_v17, 0.0 }
 0x433   :  { %v3014_v16 = vpop.f32.mrf.mxu0  ;;  %v1845_v35 = vadd.f32 %v1844_v26, %v1843_v50 }
 0x434   :  { %v4325_v1 = vmax.f32 %v1700_v57, 0.0 }
 0x435   :  { %v1702_v33 = vpop.f32.mrf.mxu0 }
 0x436   :  { %v1703_v19 = vadd.f32 %v1702_v33, %v4303_v3  ;;  %v1846_v4 = vsel %vm1838_vm2, %v4325_v1, 0.0 }
 0x437   :  { %v3015_v21 = vpop.f32.mrf.mxu0  ;;  %v1847_v7 = vadd.f32 %v1846_v4, %v1845_v35 }
 0x438   :  { %v4330_v23 = vmax.f32 %v1703_v19, 0.0 }
 0x439   :  { %v1707_v38 = vpop.f32.mrf.mxu0 }
 0x43a   :  { %v1708_v14 = vadd.f32 %v1707_v38, %v4303_v3  ;;  %v1848_v9 = vsel %vm1838_vm2, %v4330_v23, 0.0 }
 0x43b   :  { %v3018_v43 = vpop.f32.mrf.mxu0  ;;  %v1849_v31 = vadd.f32 %v1848_v9, %v1847_v7 }
 0x43c   :  { %v4335_v25 = vmax.f32 %v1708_v14, 0.0 }
 0x43d   :  { %v1710_v18 = vpop.f32.mrf.mxu0 }
 0x43e   :  { %v1711_v13 = vadd.f32 %v1710_v18, %v4303_v3  ;;  %v1850_v32 = vsel %vm1838_vm2, %v4335_v25, 0.0 }
 0x43f   :  { %v3019_v37 = vpop.f32.mrf.mxu0  ;;  %v1851_v0 = vadd.f32 %v1850_v32, %v1849_v31 }
 0x440   :  { %v4340_v28 = vmax.f32 %v1711_v13, 0.0 }
 0x441   :  { %v1715_v46 = vpop.f32.mrf.mxu0 }
 0x442   :  { %v1716_v30 = vadd.f32 %v1715_v46, %v4303_v3  ;;  %v1852_v15 = vsel %vm1838_vm2, %v4340_v28, 0.0 }
 0x443   :  { %v3022_v12 = vpop.f32.mrf.mxu0  ;;  %v1853_v43 = vadd.f32 %v1852_v15, %v1851_v0 }
 0x444   :  { %v4345_v59 = vmax.f32 %v1716_v30, 0.0 }
 0x445   :  { %v1718_v48 = vpop.f32.mrf.mxu0 }
 0x446   :  { %v1719_v40 = vadd.f32 %v1718_v48, %v4303_v3  ;;  %v1854_v33 = vsel %vm1838_vm2, %v4345_v59, 0.0 }
 0x447   :  { %v3023_v47 = vpop.f32.mrf.mxu0  ;;  %v1855_v48 = vadd.f32 %v1854_v33, %v1853_v43 }
 0x448   :  { %v4350_v39 = vmax.f32 %v1719_v40, 0.0 }
 0x449   :  { %v1723_v45 = vpop.f32.mrf.mxu0 }
 0x44a   :  { %v1724_v44 = vadd.f32 %v1723_v45, %v4303_v3  ;;  %v1856_v37 = vsel %vm1838_vm2, %v4350_v39, 0.0 }
 0x44b   :  { %v3026_v52 = vpop.f32.mrf.mxu0 }
 0x44c   :  { %v4355_v21 = vmax.f32 %v1724_v44, 0.0 }
 0x44d   :  { %v1726_v11 = vpop.f32.mrf.mxu0 }
 0x44e   :  { %v1727_v41 = vadd.f32 %v1726_v11, %v4303_v3  ;;  %v1858_v45 = vsel %vm1838_vm2, %v4355_v21, 0.0 }
 0x44f   :  { %v3027_v56 = vpop.f32.mrf.mxu0 }
 0x450   :  { %v4360_v46 = vmax.f32 %v1727_v41, 0.0  ;;  %v1857_v56 = vadd.f32 %v1856_v37, %v1855_v48 }
 0x451   :  { %v1731_v62 = vpop.f32.mrf.mxu0 }
 0x452   :  { %v1732_v38 = vadd.f32 %v1731_v62, %v4303_v3  ;;  %v1860_v22 = vsel %vm1838_vm2, %v4360_v46, 0.0  ;;  %v1859_v63 = vadd.f32 %v1858_v45, %v1857_v56 }
 0x453   :  { %v3030_v60 = vpop.f32.mrf.mxu0 }
 0x454   :  { %v4365_v52 = vmax.f32 %v1732_v38, 0.0  ;;  %v1861_v61 = vadd.f32 %v1860_v22, %v1859_v63 }
 0x455   :  { %v1734_v36 = vpop.f32.mrf.mxu0 }
 0x456   :  { %v1735_v12 = vadd.f32 %v1734_v36, %v4303_v3  ;;  %v1862_v51 = vsel %vm1838_vm2, %v4365_v52, 0.0 }
 0x457   :  { %v3031_v42 = vpop.f32.mrf.mxu0  ;;  %v1863_v55 = vadd.f32 %v1862_v51, %v1861_v61 }
 0x458   :  { %v4370_v60 = vmax.f32 %v1735_v12, 0.0 }
 0x459   :  { %v1739_v2 = vpop.f32.mrf.mxu0 }
 0x45a   :  { %v1740_v11 = vadd.f32 %v1739_v2, %v4303_v3  ;;  %v1864_v19 = vsel %vm1838_vm2, %v4370_v60, 0.0 }
 0x45b   :  { %v3034_v8 = vpop.f32.mrf.mxu0  ;;  %v1865_v13 = vadd.f32 %v1864_v19, %v1863_v55 }
 0x45c   :  { %v4375_v42 = vmax.f32 %v1740_v11, 0.0 }
 0x45d   :  { %v1742_v54 = vpop.f32.mrf.mxu0 }
 0x45e   :  { %v1743_v10 = vadd.f32 %v1742_v54, %v4303_v3  ;;  %v1866_v27 = vsel %vm1838_vm2, %v4375_v42, 0.0 }
 0x45f   :  { %v3035_v24 = vpop.f32.mrf.mxu0  ;;  %v1867_v35 = vadd.f32 %v1866_v27, %v1865_v13  ;;  %v3172_v27 = vld [vmem:[%s5163_s4 + $0x10] sm:$0xff]  }
 0x460   :  { %v4380_v8 = vmax.f32 %v1743_v10, 0.0 }
 0x461   :  { %v1747_v5 = vpop.f32.mrf.mxu0 }
 0x462   :  { %v1748_v57 = vadd.f32 %v1747_v5, %v4303_v3  ;;  %v1868_v24 = vsel %vm1838_vm2, %v4380_v8, 0.0 }
 0x463   :  { %v3038_v53 = vpop.f32.mrf.mxu0 }
 0x464   :  { %v4385_v54 = vmax.f32 %v1748_v57, 0.0  ;;  %v1869_v53 = vadd.f32 %v1868_v24, %v1867_v35  ;;  %v3173_v35 = vld [vmem:[%s5163_s4 + $0x8] sm:$0xff]  }
 0x465   :  { %v1750_v20 = vpop.f32.mrf.mxu0 }
 0x466   :  { %v1751_v29 = vadd.f32 %v1750_v20, %v4303_v3  ;;  %v1870_v9 = vsel %vm1838_vm2, %v4385_v54, 0.0 }
 0x467   :  { %v3039_v16 = vpop.f32.mrf.mxu0  ;;  %v1871_v15 = vadd.f32 %v1870_v9, %v1869_v53  ;;  %v3174_v53 = vld [vmem:[%s5163_s4] sm:$0xff]  }
 0x468   :  { %v4390_v4 = vmax.f32 %v1751_v29, 0.0 }
 0x469   :  { %v1755_v18 = vpop.f32.mrf.mxu0 }
 0x46a   :  { %v1756_v26 = vadd.f32 %v1755_v18, %v4303_v3  ;;  %v1872_v44 = vsel %vm1838_vm2, %v4390_v4, 0.0 }
 0x46b   :  { %v3042_v47 = vpop.f32.mrf.mxu0  ;;  %v1873_v38 = vadd.f32 %v1872_v44, %v1871_v15 }
 0x46c   :  { %v4395_v40 = vmax.f32 %v1756_v26, 0.0 }
 0x46d   :  { %v1758_v62 = vpop.f32.mrf.mxu0 }
 0x46e   :  { %v1759_v30 = vadd.f32 %v1758_v62, %v4303_v3  ;;  %v1874_v16 = vsel %vm1838_vm2, %v4395_v40, 0.0 }
 0x46f   :  { %v3043_v36 = vpop.f32.mrf.mxu0  ;;  %v1875_v48 = vadd.f32 %v1874_v16, %v1873_v38 }
 0x470   :  { %v4400_v31 = vmax.f32 %v1759_v30, 0.0 }
 0x471   :  { %v1763_v2 = vpop.f32.mrf.mxu0 }
 0x472   :  { %v1764_v7 = vadd.f32 %v1763_v2, %v4303_v3  ;;  %v1876_v18 = vsel %vm1838_vm2, %v4400_v31, 0.0  ;;  %v3171_v2 = vld [vmem:[%s5163_s4 + $0x18] sm:$0xff]  }
 0x473   :  { %v3046_v14 = vpop.f32.mrf.mxu0  ;;  %v1877_v56 = vadd.f32 %v1876_v18, %v1875_v48  ;;  %3120 = vmatpush3.bf16.msra.mxu1 %v3171_v2  ;;  %3057 = vmatpush3.bf16.msra.mxu0 %v3171_v2 }
 0x474   :  { %v4406_v33 = vmax.f32 %v1764_v7, 0.0  ;;  %3117 = vmatprep.subr.bf16.mxu1 %v3187_v6  ;;  %3058 = vmatprep.subr.bf16.mxu0 %v3187_v6 }
 0x475   :  { %v1766_v50 = vpop.f32.mrf.mxu0 }
 0x476   :  { %v1767_v20 = vadd.f32 %v1766_v50, %v4303_v3  ;;  %v1878_v11 = vsel %vm1838_vm2, %v4406_v33, 0.0 }
 0x477   :  { %v3047_v5 = vpop.f32.mrf.mxu0  ;;  %v1879_v36 = vadd.f32 %v1878_v11, %v1877_v56  ;;  %3121 = vmatpush3.bf16.msra.mxu1 %v3172_v27  ;;  %3059 = vmatpush3.bf16.msra.mxu0 %v3172_v27 }
 0x478   :  { %v4410_v37 = vmax.f32 %v1767_v20, 0.0  ;;  %3118 = vmatprep.subr.bf16.mxu1 %v3187_v6  ;;  %3060 = vmatprep.subr.bf16.mxu0 %v3187_v6 }
 0x479   :  { %v1771_v32 = vpop.f32.mrf.mxu0 }
 0x47a   :  { %v1772_v41 = vadd.f32 %v1771_v32, %v4303_v3  ;;  %v1880_v22 = vsel %vm1838_vm2, %v4410_v37, 0.0 }
 0x47b   :  { %v3050_v0 = vpop.f32.mrf.mxu0  ;;  %v1881_v19 = vadd.f32 %v1880_v22, %v1879_v36  ;;  %3122 = vmatpush3.bf16.msra.mxu1 %v3173_v35  ;;  %3061 = vmatpush3.bf16.msra.mxu0 %v3173_v35 }
 0x47c   :  { %v4413_v47 = vmax.f32 %v1772_v41, 0.0  ;;  %3119 = vmatprep.subr.bf16.mxu1 %v3187_v6  ;;  %3062 = vmatprep.subr.bf16.mxu0 %v3187_v6 }
 0x47d   :  { %v1774_v43 = vpop.f32.mrf.mxu0 }
 0x47e   :  { %v1775_v12 = vadd.f32 %v1774_v43, %v4303_v3  ;;  %v1882_v51 = vsel %vm1838_vm2, %v4413_v47, 0.0 }
 0x47f   :  { %v3051_v45 = vpop.f32.mrf.mxu0  ;;  %v1883_v26 = vadd.f32 %v1882_v51, %v1881_v19  ;;  %3123 = vmatpush3.bf16.msra.mxu1 %v3174_v53  ;;  %3063 = vmatpush3.bf16.msra.mxu0 %v3174_v53 }
 0x480   :  { %v4419_v10 = vmax.f32 %v1775_v12, 0.0 }
 0x481   :  { %v1779_v62 = vpop.f32.mrf.mxu0 }
 0x482   :  { %v1780_v63 = vadd.f32 %v1779_v62, %v4303_v3  ;;  %v1884_v55 = vsel %vm1838_vm2, %v4419_v10, 0.0 }
 0x483   :  { %v3054_v57 = vpop.f32.mrf.mxu0  ;;  %v1885_v30 = vadd.f32 %v1884_v55, %v1883_v26 }
 0x484   :  { %v4424_v61 = vmax.f32 %v1780_v63, 0.0 }
 0x485   :  { %v1782_v29 = vpop.f32.mrf.mxu0 }
 0x486   :  { %v1783_v14 = vadd.f32 %v1782_v29, %v4303_v3  ;;  %v1886_v50 = vsel %vm1838_vm2, %v4424_v61, 0.0 }
 0x487   :  { %v3055_v13 = vpop.f32.mrf.mxu0  ;;  %v1887_v5 = vadd.f32 %v1886_v50, %v1885_v30 }
 0x488   :  { %v4439_v24 = vmax.f32 %v1783_v14, 0.0 }
 0x48a   :  { %v1837_v3 = vmul.f32 0.0, %v4439_v24 }
 0x48c   :  { %v1888_v9 = vsel %vm1838_vm2, %v1837_v3, 0.0 }
 0x48d   :  { %v1889_v7 = vadd.f32 %v1888_v9, %v1887_v5 }
 0x48f   :  { %v1890_v32 = vrot.slane %v1889_v7, 4 }
 0x491   :  { %v1891_v44 = vadd.f32 %v1890_v32, %v1889_v7 }
 0x493   :  { %v1892_v20 = vrot.slane %v1891_v44, 2 }
 0x495   :  { %v1893_v15 = vadd.f32 %v1892_v20, %v1891_v44 }
 0x497   :  { %v1894_v41 = vrot.slane %v1893_v15, 1 }
 0x499   :  { %v1895_v0 = vadd.f32 %v1894_v41, %v1893_v15 }
 0x49b   :  { %v4453_v16 = vmul.f32 0.005, %v1895_v0 }
 0x49d   :  { %v1897_v38 = vsub.f32 %v4311_v49, %v4453_v16  ;;  %v1898_v43 = vsub.f32 %v4308_v34, %v4453_v16  ;;  %v1899_v18 = vsub.f32 %v4313_v58, %v4453_v16  ;;  %v1900_v12 = vsub.f32 %v4318_v17, %v4453_v16 }
 0x49e   :  { %v1901_v11 = vsub.f32 %v4325_v1, %v4453_v16  ;;  %v1902_v62 = vsub.f32 %v4330_v23, %v4453_v16  ;;  %v1903_v57 = vsub.f32 %v4335_v25, %v4453_v16  ;;  %v1904_v55 = vsub.f32 %v4340_v28, %v4453_v16 }
 0x49f   :  { %v1949_v48 = vmul.f32 %v1897_v38, %v1897_v38  ;;  %v1950_v45 = vmul.f32 %v1898_v43, %v1898_v43  ;;  %v1951_v56 = vmul.f32 %v1899_v18, %v1899_v18  ;;  %v1952_v22 = vmul.f32 %v1900_v12, %v1900_v12 }
 0x4a0   :  { %v1953_v2 = vmul.f32 %v1901_v11, %v1901_v11  ;;  %v1954_v14 = vmul.f32 %v1902_v62, %v1902_v62  ;;  %v1905_v13 = vsub.f32 %v4345_v59, %v4453_v16  ;;  %v1955_v50 = vmul.f32 %v1903_v57, %v1903_v57 }
 0x4a1   :  { %v1975_v63 = vsel %vm1838_vm2, %v1949_v48, 0.0  ;;  %v1976_v36 = vsel %vm1838_vm2, %v1950_v45, 0.0  ;;  %v1978_v19 = vsel %vm1838_vm2, %v1951_v56, 0.0  ;;  %v1980_v27 = vsel %vm1838_vm2, %v1952_v22, 0.0 }
 0x4a2   :  { %v1977_v51 = vadd.f32 %v1976_v36, %v1975_v63  ;;  %v1982_v30 = vsel %vm1838_vm2, %v1953_v2, 0.0  ;;  %v1906_v35 = vsub.f32 %v4350_v39, %v4453_v16  ;;  %v1956_v5 = vmul.f32 %v1904_v55, %v1904_v55 }
 0x4a3   :  { %v1984_v9 = vsel %vm1838_vm2, %v1954_v14, 0.0  ;;  %v1907_v53 = vsub.f32 %v4355_v21, %v4453_v16  ;;  %v1957_v32 = vmul.f32 %v1905_v13, %v1905_v13  ;;  %v1986_v44 = vsel %vm1838_vm2, %v1955_v50, 0.0 }
 0x4a4   :  { %v1979_v29 = vadd.f32 %v1978_v19, %v1977_v51  ;;  %v1908_v15 = vsub.f32 %v4360_v46, %v4453_v16  ;;  %v1958_v41 = vmul.f32 %v1906_v35, %v1906_v35  ;;  %v1988_v0 = vsel %vm1838_vm2, %v1956_v5, 0.0 }
 0x4a5   :  { %v1909_v43 = vsub.f32 %v4365_v52, %v4453_v16  ;;  %v1959_v18 = vmul.f32 %v1907_v53, %v1907_v53  ;;  %v1990_v12 = vsel %vm1838_vm2, %v1957_v32, 0.0  ;;  %v1910_v45 = vsub.f32 %v4370_v60, %v4453_v16 }
 0x4a6   :  { %v1981_v26 = vadd.f32 %v1980_v27, %v1979_v29  ;;  %v1960_v11 = vmul.f32 %v1908_v15, %v1908_v15  ;;  %v1992_v56 = vsel %vm1838_vm2, %v1958_v41, 0.0  ;;  %v1911_v22 = vsub.f32 %v4375_v42, %v4453_v16 }
 0x4a7   :  { %v1961_v63 = vmul.f32 %v1909_v43, %v1909_v43  ;;  %v1994_v36 = vsel %vm1838_vm2, %v1959_v18, 0.0  ;;  %v1912_v57 = vsub.f32 %v4380_v8, %v4453_v16  ;;  %v1962_v2 = vmul.f32 %v1910_v45, %v1910_v45 }
 0x4a8   :  { %v1983_v3 = vadd.f32 %v1982_v30, %v1981_v26  ;;  %v1996_v19 = vsel %vm1838_vm2, %v1960_v11, 0.0  ;;  %v1913_v55 = vsub.f32 %v4385_v54, %v4453_v16  ;;  %v1963_v14 = vmul.f32 %v1911_v22, %v1911_v22 }
 0x4a9   :  { %v1998_v27 = vsel %vm1838_vm2, %v1961_v63, 0.0  ;;  %v1914_v13 = vsub.f32 %v4390_v4, %v4453_v16  ;;  %v1964_v50 = vmul.f32 %v1912_v57, %v1912_v57  ;;  %v2000_v30 = vsel %vm1838_vm2, %v1962_v2, 0.0 }
 0x4aa   :  { %v1985_v7 = vadd.f32 %v1984_v9, %v1983_v3  ;;  %v1915_v35 = vsub.f32 %v4395_v40, %v4453_v16  ;;  %v1965_v5 = vmul.f32 %v1913_v55, %v1913_v55  ;;  %v2002_v9 = vsel %vm1838_vm2, %v1963_v14, 0.0 }
 0x4ab   :  { %v1916_v53 = vsub.f32 %v4400_v31, %v4453_v16  ;;  %v1966_v32 = vmul.f32 %v1914_v13, %v1914_v13  ;;  %v1917_v15 = vsub.f32 %v4406_v33, %v4453_v16  ;;  %v1918_v43 = vsub.f32 %v4410_v37, %v4453_v16 }
 0x4ac   :  { %v1987_v20 = vadd.f32 %v1986_v44, %v1985_v7  ;;  %v2004_v44 = vsel %vm1838_vm2, %v1964_v50, 0.0  ;;  %v1967_v41 = vmul.f32 %v1915_v35, %v1915_v35  ;;  %v1919_v45 = vsub.f32 %v4413_v47, %v4453_v16 }
 0x4ad   :  { %v1968_v18 = vmul.f32 %v1916_v53, %v1916_v53  ;;  %v1969_v11 = vmul.f32 %v1917_v15, %v1917_v15  ;;  %v1920_v22 = vsub.f32 %v4419_v10, %v4453_v16  ;;  %v1922_v63 = vsub.f32 %v4439_v24, %v4453_v16 }
 0x4ae   :  { %v1989_v38 = vadd.f32 %v1988_v0, %v1987_v20  ;;  %v2006_v0 = vsel %vm1838_vm2, %v1965_v5, 0.0  ;;  %v1921_v2 = vsub.f32 %v4424_v61, %v4453_v16 }
 0x4af   :  { %v1948_v14 = vmul.f32 0.0, %v1922_v63 }
 0x4b0   :  { %v1991_v48 = vadd.f32 %v1990_v12, %v1989_v38  ;;  %v2008_v12 = vsel %vm1838_vm2, %v1966_v32, 0.0  ;;  %v1973_v50 = vmul.f32 %v1921_v2, %v1921_v2 }
 0x4b1   :  { %v1974_v35 = vmul.f32 %v1948_v14, %v1948_v14 }
 0x4b2   :  { %v1993_v62 = vadd.f32 %v1992_v56, %v1991_v48  ;;  %v2010_v56 = vsel %vm1838_vm2, %v1967_v41, 0.0 }
 0x4b3   :  { %v2024_v32 = vsel %vm1838_vm2, %v1974_v35, 0.0 }
 0x4b4   :  { %v1995_v51 = vadd.f32 %v1994_v36, %v1993_v62  ;;  %v1970_v36 = vmul.f32 %v1918_v43, %v1918_v43 }
 0x4b6   :  { %v1997_v29 = vadd.f32 %v1996_v19, %v1995_v51  ;;  %v2012_v51 = vsel %vm1838_vm2, %v1968_v18, 0.0  ;;  %v1971_v19 = vmul.f32 %v1919_v45, %v1919_v45  ;;  %v1583_v45 = vld [vmem:[%s5160_s5 + $0x7] ss:$0 sm:$0xff] }
 0x4b8   :  { %v1999_v26 = vadd.f32 %v1998_v27, %v1997_v29  ;;  %v2014_v29 = vsel %vm1838_vm2, %v1969_v11, 0.0  ;;  %v1972_v27 = vmul.f32 %v1920_v22, %v1920_v22 }
 0x4ba   :  { %v2001_v3 = vadd.f32 %v2000_v30, %v1999_v26  ;;  %v2016_v26 = vsel %vm1838_vm2, %v1970_v36, 0.0  ;;  %v2018_v30 = vsel %vm1838_vm2, %v1971_v19, 0.0  ;;  %v2020_v5 = vsel %vm1838_vm2, %v1972_v27, 0.0 }
 0x4bc   :  { %v2003_v7 = vadd.f32 %v2002_v9, %v2001_v3 }
 0x4be   :  { %v2005_v20 = vadd.f32 %v2004_v44, %v2003_v7  ;;  %v2022_v7 = vsel %vm1838_vm2, %v1973_v50, 0.0 }
 0x4c0   :  { %v2007_v38 = vadd.f32 %v2006_v0, %v2005_v20 }
 0x4c2   :  { %v2009_v48 = vadd.f32 %v2008_v12, %v2007_v38 }
 0x4c4   :  { %v2011_v62 = vadd.f32 %v2010_v56, %v2009_v48 }
 0x4c6   :  { %v2013_v57 = vadd.f32 %v2012_v51, %v2011_v62  ;;  %v1584_v62 = vld [vmem:[%s5160_s5 + $0x10] ss:$0 sm:$0xff] }
 0x4c8   :  { %v2015_v55 = vadd.f32 %v2014_v29, %v2013_v57 }
 0x4ca   :  { %v2017_v13 = vadd.f32 %v2016_v26, %v2015_v55 }
 0x4cc   :  { %v2019_v3 = vadd.f32 %v2018_v30, %v2017_v13 }
 0x4ce   :  { %v2021_v9 = vadd.f32 %v2020_v5, %v2019_v3 }
 0x4d0   :  { %v2023_v53 = vadd.f32 %v2022_v7, %v2021_v9 }
 0x4d2   :  { %v2025_v44 = vadd.f32 %v2024_v32, %v2023_v53 }
 0x4d4   :  { %v2026_v20 = vrot.slane %v2025_v44, 4 }
 0x4d6   :  { %v2027_v15 = vadd.f32 %v2026_v20, %v2025_v44 }
 0x4d8   :  { %v2028_v41 = vrot.slane %v2027_v15, 2 }
 0x4da   :  { %v2029_v0 = vadd.f32 %v2028_v41, %v2027_v15 }
 0x4dc   :  { %v2030_v38 = vrot.slane %v2029_v0, 1 }
 0x4de   :  { %v2031_v43 = vadd.f32 %v2030_v38, %v2029_v0 }
 0x4e0   :  { %v2032_v18 = vmul.f32 0.005, %v2031_v43 }
 0x4e2   :  { %v2033_v12 = vmax.f32 %v2032_v18, 0.0 }
 0x4e4   :  { %v2034_v48 = vadd.f32 1e-05, %v2033_v12 }
 0x4e6   :  { %3181 = vrsqrt.f32 %v2034_v48 }
 0x4f3   :  { %v3182_v11 = vpop.eup %3181 }
 0x4f4   :  { %v4536_v56 = vmul.f32 %v3182_v11, %v1583_v45 }
 0x4f6   :  { %v2037_v22 = vmul.f32 %v4536_v56, %v4453_v16  ;;  %v2064_v63 = vmul.f32 %v4536_v56, %v4439_v24  ;;  %v2039_v51 = vmul.f32 %v4536_v56, %v4311_v49  ;;  %v2040_v57 = vmul.f32 %v4536_v56, %v4308_v34 }
 0x4f7   :  { %v2041_v2 = vmul.f32 %v4536_v56, %v4313_v58  ;;  %v2042_v19 = vmul.f32 %v4536_v56, %v4318_v17  ;;  %v2043_v34 = vmul.f32 %v4536_v56, %v4325_v1  ;;  %v2044_v58 = vmul.f32 %v4536_v56, %v4330_v23 }
 0x4f8   :  { %v4545_v36 = vsub.f32 %v1584_v62, %v2037_v22  ;;  %v2057_v17 = vmul.f32 %v4536_v56, %v4395_v40  ;;  %v2058_v26 = vmul.f32 %v4536_v56, %v4400_v31  ;;  %v2059_v30 = vmul.f32 %v4536_v56, %v4406_v33 }
 0x4f9   :  { %v2060_v3 = vmul.f32 %v4536_v56, %v4410_v37  ;;  %v2061_v40 = vmul.f32 %v4536_v56, %v4413_v47  ;;  %v2062_v5 = vmul.f32 %v4536_v56, %v4419_v10  ;;  %v2063_v9 = vmul.f32 %v4536_v56, %v4424_v61 }
 0x4fa   :  { %v4556_v29 = vadd.f32 %v2064_v63, %v4545_v36  ;;  %v2065_v16 = vadd.f32 %v2039_v51, %v4545_v36  ;;  %v2066_v24 = vadd.f32 %v2040_v57, %v4545_v36  ;;  %v2067_v55 = vadd.f32 %v2041_v2, %v4545_v36 }
 0x4fb   :  { %v2068_v49 = vadd.f32 %v2042_v19, %v4545_v36  ;;  %v2069_v13 = vadd.f32 %v2043_v34, %v4545_v36  ;;  %v2070_v50 = vadd.f32 %v2044_v58, %v4545_v36  ;;  %v2083_v1 = vadd.f32 %v2057_v17, %v4545_v36 }
 0x4fc   :  { %v2091_v14 = vpack.c.bf16 %v2066_v24, %v2065_v16  ;;  %v2084_v23 = vadd.f32 %v2058_v26, %v4545_v36  ;;  %v2085_v35 = vadd.f32 %v2059_v30, %v4545_v36  ;;  %v2086_v7 = vadd.f32 %v2060_v3, %v4545_v36  ;;  %v4664_v3 = vld [vmem:[%s5160_s5 + $0x11] ss:$0 sm:$0xff] }
 0x4fd   :  { %v2092_v27 = vpack.c.bf16 %v2068_v49, %v2067_v55  ;;  %v2093_v33 = vpack.c.bf16 %v2070_v50, %v2069_v13  ;;  %v2087_v53 = vadd.f32 %v2061_v40, %v4545_v36  ;;  %v2088_v32 = vadd.f32 %v2062_v5, %v4545_v36 }
 0x4fe   :  { %3065 = vmatmul.mubr.msk.bf16.vlgmr.msra.gmra.mxu0 %vm1838_vm2, %v2091_v14  ;;  %v2100_v31 = vpack.c.bf16 %v2084_v23, %v2083_v1  ;;  %v2089_v37 = vadd.f32 %v2063_v9, %v4545_v36  ;;  %v2045_v47 = vmul.f32 %v4536_v56, %v4335_v25  ;;  %v2046_v10 = vmul.f32 %v4536_v56, %v4340_v28 }
 0x4ff   :  { %3069 = vmatmul.mubr.msk.bf16.vlgmr.msra.gmra.mxu1 %vm1838_vm2, %v2092_v27  ;;  %v2101_v44 = vpack.c.bf16 %v2086_v7, %v2085_v35  ;;  %v2102_v61 = vpack.c.bf16 %v2088_v32, %v2087_v53  ;;  %v2047_v25 = vmul.f32 %v4536_v56, %v4345_v59  ;;  %v2048_v28 = vmul.f32 %v4536_v56, %v4350_v39 }
 0x500   :  { %3072 = vmatprep.mubr.msk.bf16.mxu1 %vm3188_vm1, %v3187_v6  ;;  %v2103_v20 = vpack.c.bf16 %v4556_v29, %v2089_v37  ;;  %v2071_v15 = vadd.f32 %v2045_v47, %v4545_v36  ;;  %v2072_v41 = vadd.f32 %v2046_v10, %v4545_v36  ;;  %v2049_v12 = vmul.f32 %v4536_v56, %v4355_v21 }
 0x501   :  { %v2073_v38 = vadd.f32 %v2047_v25, %v4545_v36  ;;  %v2074_v43 = vadd.f32 %v2048_v28, %v4545_v36  ;;  %v2050_v48 = vmul.f32 %v4536_v56, %v4360_v46  ;;  %v2051_v11 = vmul.f32 %v4536_v56, %v4365_v52 }
 0x502   :  { %v2094_v0 = vpack.c.bf16 %v2072_v41, %v2071_v15  ;;  %v2075_v59 = vadd.f32 %v2049_v12, %v4545_v36  ;;  %v2052_v62 = vmul.f32 %v4536_v56, %v4370_v60  ;;  %v2053_v63 = vmul.f32 %v4536_v56, %v4375_v42 }
 0x503   :  { %v2095_v18 = vpack.c.bf16 %v2074_v43, %v2073_v38  ;;  %v2076_v39 = vadd.f32 %v2050_v48, %v4545_v36  ;;  %v2077_v21 = vadd.f32 %v2051_v11, %v4545_v36  ;;  %v2054_v51 = vmul.f32 %v4536_v56, %v4380_v8 }
 0x504   :  { %v2078_v46 = vadd.f32 %v2052_v62, %v4545_v36  ;;  %v2079_v52 = vadd.f32 %v2053_v63, %v4545_v36  ;;  %v2055_v2 = vmul.f32 %v4536_v56, %v4385_v54  ;;  %v2056_v19 = vmul.f32 %v4536_v56, %v4390_v4 }
 0x505   :  { %v2096_v45 = vpack.c.bf16 %v2076_v39, %v2075_v59  ;;  %v2080_v60 = vadd.f32 %v2054_v51, %v4545_v36 }
 0x506   :  { %v2097_v22 = vpack.c.bf16 %v2078_v46, %v2077_v21  ;;  %v2081_v42 = vadd.f32 %v2055_v2, %v4545_v36  ;;  %v2082_v8 = vadd.f32 %v2056_v19, %v4545_v36 }
 0x507   :  { %3073 = vmatmul.mubr.msk.bf16.gmra.mxu1 %vm1838_vm2, %v2093_v33  ;;  %v2098_v57 = vpack.c.bf16 %v2080_v60, %v2079_v52 }
 0x508   :  { %3076 = vmatprep.mubr.msk.bf16.mxu1 %vm3188_vm1, %v3187_v6  ;;  %v2099_v29 = vpack.c.bf16 %v2082_v8, %v2081_v42 }
 0x50f   :  { %3077 = vmatmul.mubr.msk.bf16.gmra.mxu1 %vm1838_vm2, %v2094_v0 }
 0x510   :  { %3080 = vmatprep.mubr.msk.bf16.mxu1 %vm3188_vm1, %v3187_v6 }
 0x517   :  { %3081 = vmatmul.mubr.msk.bf16.gmra.mxu1 %vm1838_vm2, %v2095_v18 }
 0x518   :  { %3084 = vmatprep.mubr.msk.bf16.mxu1 %vm3188_vm1, %v3187_v6 }
 0x51f   :  { %3085 = vmatmul.mubr.msk.bf16.gmra.mxu1 %vm1838_vm2, %v2096_v45 }
 0x520   :  { %3088 = vmatprep.mubr.msk.bf16.mxu1 %vm3188_vm1, %v3187_v6 }
 0x527   :  { %3089 = vmatmul.mubr.msk.bf16.gmra.mxu1 %vm1838_vm2, %v2097_v22 }
 0x528   :  { %3092 = vmatprep.mubr.msk.bf16.mxu1 %vm3188_vm1, %v3187_v6 }
 0x52f   :  { %3093 = vmatmul.mubr.msk.bf16.gmra.mxu1 %vm1838_vm2, %v2098_v57 }
 0x530   :  { %3096 = vmatprep.mubr.msk.bf16.mxu1 %vm3188_vm1, %v3187_v6 }
 0x537   :  { %3097 = vmatmul.mubr.msk.bf16.gmra.mxu1 %vm1838_vm2, %v2099_v29 }
 0x538   :  { %3100 = vmatprep.mubr.msk.bf16.mxu1 %vm3188_vm1, %v3187_v6 }
 0x53f   :  { %3101 = vmatmul.mubr.msk.bf16.gmra.mxu1 %vm1838_vm2, %v2100_v31 }
 0x540   :  { %3104 = vmatprep.mubr.msk.bf16.mxu1 %vm3188_vm1, %v3187_v6 }
 0x547   :  { %3105 = vmatmul.mubr.msk.bf16.gmra.mxu1 %vm1838_vm2, %v2101_v44 }
 0x548   :  { %3108 = vmatprep.mubr.msk.bf16.mxu1 %vm3188_vm1, %v3187_v6 }
 0x54f   :  { %3109 = vmatmul.mubr.msk.bf16.gmra.mxu1 %vm1838_vm2, %v2102_v61 }
 0x550   :  { %3112 = vmatprep.mubr.msk.bf16.mxu1 %vm3188_vm1, %v3187_v6 }
 0x557   :  { %3113 = vmatmul.mubr.msk.bf16.gmra.mxu1 %vm1838_vm2, %v2103_v20 }
 0x5be   :  { %v2212_v54 = vpop.f32.mrf.mxu0 }
 0x5bf   :  { %v2220_v4 = vpop.f32.mrf.mxu1  ;;  %v2213_v5 = vadd.f32 %v2212_v54, %v4664_v3 }
 0x5c0   :  { %v3066_v56 = vpop.f32.mrf.mxu0  ;;  %v2221_v32 = vadd.f32 %v2220_v4, %v4664_v3 }
 0x5c1   :  { %v3070_v36 = vpop.f32.mrf.mxu1  ;;  %v4670_v53 = vmax.f32 %v2213_v5, 0.0 }
 0x5c2   :  { %v2215_v16 = vpop.f32.mrf.mxu0  ;;  %v4677_v61 = vmax.f32 %v2221_v32, 0.0 }
 0x5c3   :  { %v2223_v24 = vpop.f32.mrf.mxu1  ;;  %v2216_v40 = vadd.f32 %v2215_v16, %v4664_v3  ;;  %v2368_v44 = vsel %vm2367_vm3, %v4670_v53, 0.0 }
 0x5c4   :  { %v3067_v55 = vpop.f32.mrf.mxu0  ;;  %v2224_v20 = vadd.f32 %v2223_v24, %v4664_v3  ;;  %v2371_v25 = vsel %vm2367_vm3, %v4677_v61, 0.0 }
 0x5c5   :  { %v3071_v49 = vpop.f32.mrf.mxu1  ;;  %v4668_v33 = vmax.f32 %v2216_v40, 0.0 }
 0x5c6   :  { %v4682_v28 = vmax.f32 %v2224_v20, 0.0 }
 0x5c7   :  { %v2228_v14 = vpop.f32.mrf.mxu1  ;;  %v2369_v47 = vsel %vm2367_vm3, %v4668_v33, 0.0 }
 0x5c8   :  { %v2370_v15 = vadd.f32 %v2369_v47, %v2368_v44  ;;  %v2229_v38 = vadd.f32 %v2228_v14, %v4664_v3  ;;  %v2373_v59 = vsel %vm2367_vm3, %v4682_v28, 0.0 }
 0x5c9   :  { %v3074_v27 = vpop.f32.mrf.mxu1 }
 0x5ca   :  { %v2372_v43 = vadd.f32 %v2371_v25, %v2370_v15  ;;  %v4688_v39 = vmax.f32 %v2229_v38, 0.0 }
 0x5cb   :  { %v2231_v34 = vpop.f32.mrf.mxu1 }
 0x5cc   :  { %v2232_v12 = vadd.f32 %v2231_v34, %v4664_v3  ;;  %v2374_v11 = vadd.f32 %v2373_v59, %v2372_v43  ;;  %v2375_v63 = vsel %vm2367_vm3, %v4688_v39, 0.0 }
 0x5cd   :  { %v3075_v58 = vpop.f32.mrf.mxu1 }
 0x5ce   :  { %v4691_v21 = vmax.f32 %v2232_v12, 0.0  ;;  %v2376_v60 = vadd.f32 %v2375_v63, %v2374_v11 }
 0x5cf   :  { %v2236_v17 = vpop.f32.mrf.mxu1 }
 0x5d0   :  { %v2237_v45 = vadd.f32 %v2236_v17, %v4664_v3  ;;  %v2377_v2 = vsel %vm2367_vm3, %v4691_v21, 0.0 }
 0x5d1   :  { %v3078_v26 = vpop.f32.mrf.mxu1  ;;  %v2378_v56 = vadd.f32 %v2377_v2, %v2376_v60 }
 0x5d2   :  { %v4696_v51 = vmax.f32 %v2237_v45, 0.0 }
 0x5d3   :  { %v2239_v13 = vpop.f32.mrf.mxu1 }
 0x5d4   :  { %v2240_v46 = vadd.f32 %v2239_v13, %v4664_v3  ;;  %v2379_v29 = vsel %vm2367_vm3, %v4696_v51, 0.0 }
 0x5d5   :  { %v3079_v50 = vpop.f32.mrf.mxu1  ;;  %v2380_v49 = vadd.f32 %v2379_v29, %v2378_v56 }
 0x5d6   :  { %v4701_v19 = vmax.f32 %v2240_v46, 0.0 }
 0x5d7   :  { %v2244_v30 = vpop.f32.mrf.mxu1 }
 0x5d8   :  { %v2245_v52 = vadd.f32 %v2244_v30, %v4664_v3  ;;  %v2381_v16 = vsel %vm2367_vm3, %v4701_v19, 0.0 }
 0x5d9   :  { %v3082_v6 = vpop.f32.mrf.mxu1  ;;  %v2382_v17 = vadd.f32 %v2381_v16, %v2380_v49 }
 0x5da   :  { %v4706_v54 = vmax.f32 %v2245_v52, 0.0 }
 0x5db   :  { %v2247_v1 = vpop.f32.mrf.mxu1 }
 0x5dc   :  { %v2248_v42 = vadd.f32 %v2247_v1, %v4664_v3  ;;  %v2383_v27 = vsel %vm2367_vm3, %v4706_v54, 0.0 }
 0x5dd   :  { %v3083_v23 = vpop.f32.mrf.mxu1  ;;  %v2384_v6 = vadd.f32 %v2383_v27, %v2382_v17 }
 0x5de   :  { %v4711_v24 = vmax.f32 %v2248_v42, 0.0 }
 0x5df   :  { %v2252_v35 = vpop.f32.mrf.mxu1 }
 0x5e0   :  { %v2253_v4 = vadd.f32 %v2252_v35, %v4664_v3  ;;  %v2385_v13 = vsel %vm2367_vm3, %v4711_v24, 0.0 }
 0x5e1   :  { %v3086_v31 = vpop.f32.mrf.mxu1 }
 0x5e2   :  { %v4716_v34 = vmax.f32 %v2253_v4, 0.0  ;;  %v2386_v31 = vadd.f32 %v2385_v13, %v2384_v6 }
 0x5e3   :  { %v2255_v9 = vpop.f32.mrf.mxu1 }
 0x5e4   :  { %v2256_v55 = vadd.f32 %v2255_v9, %v4664_v3  ;;  %v2387_v23 = vsel %vm2367_vm3, %v4716_v34, 0.0 }
 0x5e5   :  { %v3087_v7 = vpop.f32.mrf.mxu1 }
 0x5e6   :  { %v4721_v50 = vmax.f32 %v2256_v55, 0.0 }
 0x5e7   :  { %v2260_v37 = vpop.f32.mrf.mxu1 }
 0x5e8   :  { %v2261_v58 = vadd.f32 %v2260_v37, %v4664_v3  ;;  %v2389_v9 = vsel %vm2367_vm3, %v4721_v50, 0.0  ;;  %v2388_v37 = vadd.f32 %v2387_v23, %v2386_v31 }
 0x5e9   :  { %v3090_v10 = vpop.f32.mrf.mxu1 }
 0x5ea   :  { %v4726_v35 = vmax.f32 %v2261_v58, 0.0  ;;  %v2390_v15 = vadd.f32 %v2389_v9, %v2388_v37 }
 0x5eb   :  { %v2263_v41 = vpop.f32.mrf.mxu1 }
 0x5ec   :  { %v2264_v30 = vadd.f32 %v2263_v41, %v4664_v3  ;;  %v2391_v10 = vsel %vm2367_vm3, %v4726_v35, 0.0 }
 0x5ed   :  { %v3091_v0 = vpop.f32.mrf.mxu1  ;;  %v2392_v43 = vadd.f32 %v2391_v10, %v2390_v15 }
 0x5ee   :  { %v4731_v7 = vmax.f32 %v2264_v30, 0.0 }
 0x5ef   :  { %v2268_v18 = vpop.f32.mrf.mxu1 }
 0x5f0   :  { %v2269_v40 = vadd.f32 %v2268_v18, %v4664_v3  ;;  %v2393_v0 = vsel %vm2367_vm3, %v4731_v7, 0.0 }
 0x5f1   :  { %v3094_v48 = vpop.f32.mrf.mxu1  ;;  %v2394_v45 = vadd.f32 %v2393_v0, %v2392_v43 }
 0x5f2   :  { %v4736_v44 = vmax.f32 %v2269_v40, 0.0 }
 0x5f3   :  { %v2271_v62 = vpop.f32.mrf.mxu1 }
 0x5f4   :  { %v2272_v32 = vadd.f32 %v2271_v62, %v4664_v3  ;;  %v2395_v12 = vsel %vm2367_vm3, %v4736_v44, 0.0 }
 0x5f5   :  { %v3095_v22 = vpop.f32.mrf.mxu1  ;;  %v2396_v63 = vadd.f32 %v2395_v12, %v2394_v45 }
 0x5f6   :  { %v4741_v25 = vmax.f32 %v2272_v32, 0.0 }
 0x5f7   :  { %v2276_v57 = vpop.f32.mrf.mxu1 }
 0x5f8   :  { %v2277_v20 = vadd.f32 %v2276_v57, %v4664_v3  ;;  %v2397_v62 = vsel %vm2367_vm3, %v4741_v25, 0.0 }
 0x5f9   :  { %v3098_v8 = vpop.f32.mrf.mxu1  ;;  %v2398_v42 = vadd.f32 %v2397_v62, %v2396_v63 }
 0x5fa   :  { %v4746_v48 = vmax.f32 %v2277_v20, 0.0 }
 0x5fb   :  { %v2279_v36 = vpop.f32.mrf.mxu1 }
 0x5fc   :  { %v2280_v38 = vadd.f32 %v2279_v36, %v4664_v3  ;;  %v2399_v60 = vsel %vm2367_vm3, %v4746_v48, 0.0 }
 0x5fd   :  { %v3099_v14 = vpop.f32.mrf.mxu1  ;;  %v2400_v36 = vadd.f32 %v2399_v60, %v2398_v42 }
 0x5fe   :  { %v4751_v46 = vmax.f32 %v2280_v38, 0.0 }
 0x5ff   :  { %v2284_v26 = vpop.f32.mrf.mxu1 }
 0x600   :  { %v2285_v59 = vadd.f32 %v2284_v26, %v4664_v3  ;;  %v2401_v29 = vsel %vm2367_vm3, %v4751_v46, 0.0 }
 0x601   :  { %v3102_v1 = vpop.f32.mrf.mxu1  ;;  %v2402_v27 = vadd.f32 %v2401_v29, %v2400_v36 }
 0x602   :  { %v4756_v57 = vmax.f32 %v2285_v59, 0.0 }
 0x603   :  { %v2287_v5 = vpop.f32.mrf.mxu1 }
 0x604   :  { %v2288_v22 = vadd.f32 %v2287_v5, %v4664_v3  ;;  %v2403_v55 = vsel %vm2367_vm3, %v4756_v57, 0.0 }
 0x605   :  { %v3103_v47 = vpop.f32.mrf.mxu1  ;;  %v2404_v30 = vadd.f32 %v2403_v55, %v2402_v27 }
 0x606   :  { %v4761_v4 = vmax.f32 %v2288_v22, 0.0 }
 0x607   :  { %v2292_v41 = vpop.f32.mrf.mxu1 }
 0x608   :  { %v2293_v2 = vadd.f32 %v2292_v41, %v4664_v3  ;;  %v2405_v17 = vsel %vm2367_vm3, %v4761_v4, 0.0 }
 0x609   :  { %v3106_v18 = vpop.f32.mrf.mxu1  ;;  %v2406_v40 = vadd.f32 %v2405_v17, %v2404_v30 }
 0x60a   :  { %v4766_v49 = vmax.f32 %v2293_v2, 0.0 }
 0x60b   :  { %v2295_v11 = vpop.f32.mrf.mxu1 }
 0x60c   :  { %v2296_v56 = vadd.f32 %v2295_v11, %v4664_v3  ;;  %v2407_v1 = vsel %vm2367_vm3, %v4766_v49, 0.0 }
 0x60d   :  { %v3107_v52 = vpop.f32.mrf.mxu1  ;;  %v2408_v37 = vadd.f32 %v2407_v1, %v2406_v40 }
 0x60e   :  { %v4771_v26 = vmax.f32 %v2296_v56, 0.0 }
 0x60f   :  { %v2300_v8 = vpop.f32.mrf.mxu1 }
 0x610   :  { %v2301_v14 = vadd.f32 %v2300_v8, %v4664_v3  ;;  %v2409_v5 = vsel %vm2367_vm3, %v4771_v26, 0.0 }
 0x611   :  { %v3110_v16 = vpop.f32.mrf.mxu1  ;;  %v2410_v15 = vadd.f32 %v2409_v5, %v2408_v37 }
 0x612   :  { %v4776_v23 = vmax.f32 %v2301_v14, 0.0 }
 0x613   :  { %v2303_v58 = vpop.f32.mrf.mxu1 }
 0x614   :  { %v2304_v13 = vadd.f32 %v2303_v58, %v4664_v3  ;;  %v2411_v10 = vsel %vm2367_vm3, %v4776_v23, 0.0 }
 0x615   :  { %v3111_v6 = vpop.f32.mrf.mxu1  ;;  %v2412_v43 = vadd.f32 %v2411_v10, %v2410_v15 }
 0x616   :  { %v4780_v9 = vmax.f32 %v2304_v13, 0.0 }
 0x617   :  { %v2308_v31 = vpop.f32.mrf.mxu1 }
 0x618   :  { %v2309_v32 = vadd.f32 %v2308_v31, %v4664_v3  ;;  %v2413_v0 = vsel %vm2367_vm3, %v4780_v9, 0.0 }
 0x619   :  { %v3114_v47 = vpop.f32.mrf.mxu1  ;;  %v2414_v45 = vadd.f32 %v2413_v0, %v2412_v43 }
 0x61a   :  { %v4785_v20 = vmax.f32 %v2309_v32, 0.0 }
 0x61b   :  { %v2311_v41 = vpop.f32.mrf.mxu1 }
 0x61c   :  { %v2312_v38 = vadd.f32 %v2311_v41, %v4664_v3  ;;  %v2415_v12 = vsel %vm2367_vm3, %v4785_v20, 0.0 }
 0x61d   :  { %v3115_v18 = vpop.f32.mrf.mxu1  ;;  %v2416_v62 = vadd.f32 %v2415_v12, %v2414_v45 }
 0x61e   :  { %v4792_v59 = vmax.f32 %v2312_v38, 0.0 }
 0x620   :  { %v2366_v11 = vmul.f32 0.0, %v4792_v59 }
 0x622   :  { %v2417_v22 = vsel %vm2367_vm3, %v2366_v11, 0.0 }
 0x623   :  { %v2418_v63 = vadd.f32 %v2417_v22, %v2416_v62 }
 0x625   :  { %v2419_v52 = vrot.slane %v2418_v63, 4 }
 0x627   :  { %v2420_v60 = vadd.f32 %v2419_v52, %v2418_v63 }
 0x629   :  { %v2421_v2 = vrot.slane %v2420_v60, 2 }
 0x62b   :  { %v2422_v42 = vadd.f32 %v2421_v2, %v2420_v60 }
 0x62d   :  { %v2423_v8 = vrot.slane %v2422_v42, 1 }
 0x62f   :  { %v2424_v3 = vadd.f32 %v2423_v8, %v2422_v42 }
 0x631   :  { %v4796_v29 = vmul.f32 0.005, %v2424_v3 }
 0x633   :  { %v2426_v56 = vsub.f32 %v4670_v53, %v4796_v29  ;;  %v2427_v36 = vsub.f32 %v4668_v33, %v4796_v29  ;;  %v2428_v16 = vsub.f32 %v4677_v61, %v4796_v29  ;;  %v2429_v55 = vsub.f32 %v4682_v28, %v4796_v29 }
 0x634   :  { %v2430_v58 = vsub.f32 %v4688_v39, %v4796_v29  ;;  %v2431_v13 = vsub.f32 %v4691_v21, %v4796_v29  ;;  %v2432_v31 = vsub.f32 %v4696_v51, %v4796_v29  ;;  %v2433_v47 = vsub.f32 %v4701_v19, %v4796_v29 }
 0x635   :  { %v2478_v14 = vmul.f32 %v2426_v56, %v2426_v56  ;;  %v2479_v27 = vmul.f32 %v2427_v36, %v2427_v36  ;;  %v2480_v17 = vmul.f32 %v2428_v16, %v2428_v16  ;;  %v2481_v30 = vmul.f32 %v2429_v55, %v2429_v55 }
 0x636   :  { %v2482_v5 = vmul.f32 %v2430_v58, %v2430_v58  ;;  %v2483_v10 = vmul.f32 %v2431_v13, %v2431_v13  ;;  %v2434_v0 = vsub.f32 %v4706_v54, %v4796_v29  ;;  %v2484_v38 = vmul.f32 %v2432_v31, %v2432_v31 }
 0x637   :  { %v2504_v6 = vsel %vm2367_vm3, %v2478_v14, 0.0  ;;  %v2505_v1 = vsel %vm2367_vm3, %v2479_v27, 0.0  ;;  %v2507_v32 = vsel %vm2367_vm3, %v2480_v17, 0.0  ;;  %v2509_v15 = vsel %vm2367_vm3, %v2481_v30, 0.0 }
 0x638   :  { %v2506_v40 = vadd.f32 %v2505_v1, %v2504_v6  ;;  %v2511_v43 = vsel %vm2367_vm3, %v2482_v5, 0.0  ;;  %v2435_v12 = vsub.f32 %v4711_v24, %v4796_v29  ;;  %v2485_v45 = vmul.f32 %v2433_v47, %v2433_v47 }
 0x639   :  { %v2513_v11 = vsel %vm2367_vm3, %v2483_v10, 0.0  ;;  %v2436_v22 = vsub.f32 %v4716_v34, %v4796_v29  ;;  %v2486_v63 = vmul.f32 %v2434_v0, %v2434_v0  ;;  %v2515_v52 = vsel %vm2367_vm3, %v2484_v38, 0.0 }
 0x63a   :  { %v2508_v37 = vadd.f32 %v2507_v32, %v2506_v40  ;;  %v2437_v2 = vsub.f32 %v4721_v50, %v4796_v29  ;;  %v2487_v42 = vmul.f32 %v2435_v12, %v2435_v12  ;;  %v2517_v8 = vsel %vm2367_vm3, %v2485_v45, 0.0 }
 0x63b   :  { %v2438_v56 = vsub.f32 %v4726_v35, %v4796_v29  ;;  %v2488_v36 = vmul.f32 %v2436_v22, %v2436_v22  ;;  %v2519_v16 = vsel %vm2367_vm3, %v2486_v63, 0.0  ;;  %v2439_v14 = vsub.f32 %v4731_v7, %v4796_v29 }
 0x63c   :  { %v2510_v41 = vadd.f32 %v2509_v15, %v2508_v37  ;;  %v2489_v27 = vmul.f32 %v2437_v2, %v2437_v2  ;;  %v2521_v58 = vsel %vm2367_vm3, %v2487_v42, 0.0  ;;  %v2440_v13 = vsub.f32 %v4736_v44, %v4796_v29 }
 0x63d   :  { %v2490_v30 = vmul.f32 %v2438_v56, %v2438_v56  ;;  %v2523_v6 = vsel %vm2367_vm3, %v2488_v36, 0.0  ;;  %v2441_v40 = vsub.f32 %v4741_v25, %v4796_v29  ;;  %v2491_v31 = vmul.f32 %v2439_v14, %v2439_v14 }
 0x63e   :  { %v2512_v18 = vadd.f32 %v2511_v43, %v2510_v41  ;;  %v2525_v5 = vsel %vm2367_vm3, %v2489_v27, 0.0  ;;  %v2442_v37 = vsub.f32 %v4746_v48, %v4796_v29  ;;  %v2492_v47 = vmul.f32 %v2440_v13, %v2440_v13 }
 0x63f   :  { %v2527_v10 = vsel %vm2367_vm3, %v2490_v30, 0.0  ;;  %v2443_v41 = vsub.f32 %v4751_v46, %v4796_v29  ;;  %v2493_v0 = vmul.f32 %v2441_v40, %v2441_v40  ;;  %v2529_v38 = vsel %vm2367_vm3, %v2491_v31, 0.0 }
 0x640   :  { %v2514_v62 = vadd.f32 %v2513_v11, %v2512_v18  ;;  %v2444_v18 = vsub.f32 %v4756_v57, %v4796_v29  ;;  %v2494_v12 = vmul.f32 %v2442_v37, %v2442_v37  ;;  %v2531_v45 = vsel %vm2367_vm3, %v2492_v47, 0.0 }
 0x641   :  { %v2495_v22 = vmul.f32 %v2443_v41, %v2443_v41  ;;  %v2533_v63 = vsel %vm2367_vm3, %v2493_v0, 0.0  ;;  %v2451_v13 = vsub.f32 %v4792_v59, %v4796_v29  ;;  %v2450_v40 = vsub.f32 %v4785_v20, %v4796_v29 }
 0x642   :  { %v2516_v60 = vadd.f32 %v2515_v52, %v2514_v62  ;;  %v2445_v62 = vsub.f32 %v4761_v4, %v4796_v29  ;;  %v2496_v2 = vmul.f32 %v2444_v18, %v2444_v18  ;;  %v2535_v42 = vsel %vm2367_vm3, %v2494_v12, 0.0 }
 0x643   :  { %v2537_v36 = vsel %vm2367_vm3, %v2495_v22, 0.0  ;;  %v2477_v37 = vmul.f32 0.0, %v2451_v13  ;;  %v2502_v41 = vmul.f32 %v2450_v40, %v2450_v40  ;;  %v4899_v40 = vld [vmem:[%s5160_s5 + $0x14] ss:$0 sm:$0xff] }
 0x644   :  { %v2518_v3 = vadd.f32 %v2517_v8, %v2516_v60  ;;  %v2446_v60 = vsub.f32 %v4766_v49, %v4796_v29  ;;  %v2497_v56 = vmul.f32 %v2445_v62, %v2445_v62  ;;  %v2539_v27 = vsel %vm2367_vm3, %v2496_v2, 0.0 }
 0x646   :  { %v2520_v55 = vadd.f32 %v2519_v16, %v2518_v3  ;;  %v2447_v3 = vsub.f32 %v4771_v26, %v4796_v29  ;;  %v2498_v14 = vmul.f32 %v2446_v60, %v2446_v60 }
 0x648   :  { %v2522_v17 = vadd.f32 %v2521_v58, %v2520_v55  ;;  %v2448_v55 = vsub.f32 %v4776_v23, %v4796_v29  ;;  %v2499_v30 = vmul.f32 %v2447_v3, %v2447_v3 }
 0x64a   :  { %v2524_v1 = vadd.f32 %v2523_v6, %v2522_v17  ;;  %v2449_v17 = vsub.f32 %v4780_v9, %v4796_v29  ;;  %v2541_v6 = vsel %vm2367_vm3, %v2497_v56, 0.0  ;;  %v2500_v31 = vmul.f32 %v2448_v55, %v2448_v55 }
 0x64c   :  { %v2526_v32 = vadd.f32 %v2525_v5, %v2524_v1  ;;  %v2543_v5 = vsel %vm2367_vm3, %v2498_v14, 0.0  ;;  %v2501_v47 = vmul.f32 %v2449_v17, %v2449_v17  ;;  %v2547_v0 = vsel %vm2367_vm3, %v2500_v31, 0.0 }
 0x64e   :  { %v2528_v15 = vadd.f32 %v2527_v10, %v2526_v32  ;;  %v2545_v10 = vsel %vm2367_vm3, %v2499_v30, 0.0  ;;  %v2549_v18 = vsel %vm2367_vm3, %v2501_v47, 0.0 }
 0x650   :  { %v2530_v43 = vadd.f32 %v2529_v38, %v2528_v15 }
 0x652   :  { %v2532_v11 = vadd.f32 %v2531_v45, %v2530_v43  ;;  %v2503_v43 = vmul.f32 %v2477_v37, %v2477_v37  ;;  %v2551_v45 = vsel %vm2367_vm3, %v2502_v41, 0.0 }
 0x654   :  { %v2534_v52 = vadd.f32 %v2533_v63, %v2532_v11  ;;  %v2553_v62 = vsel %vm2367_vm3, %v2503_v43, 0.0 }
 0x656   :  { %v2536_v8 = vadd.f32 %v2535_v42, %v2534_v52 }
 0x658   :  { %v2538_v16 = vadd.f32 %v2537_v36, %v2536_v8 }
 0x65a   :  { %v2540_v58 = vadd.f32 %v2539_v27, %v2538_v16  ;;  %v2105_v16 = vld [vmem:[%s5160_s5 + $0x12] ss:$0 sm:$0xff]  ;;  %v2106_v27 = vld [vmem:[%s5160_s5 + $0x13] ss:$0 sm:$0xff] }
 0x65c   :  { %v2542_v1 = vadd.f32 %v2541_v6, %v2540_v58 }
 0x65e   :  { %v2544_v32 = vadd.f32 %v2543_v5, %v2542_v1 }
 0x660   :  { %v2546_v15 = vadd.f32 %v2545_v10, %v2544_v32 }
 0x662   :  { %v2548_v38 = vadd.f32 %v2547_v0, %v2546_v15 }
 0x664   :  { %v2550_v12 = vadd.f32 %v2549_v18, %v2548_v38 }
 0x666   :  { %v2552_v11 = vadd.f32 %v2551_v45, %v2550_v12 }
 0x668   :  { %v2554_v22 = vadd.f32 %v2553_v62, %v2552_v11 }
 0x66a   :  { %v2555_v63 = vrot.slane %v2554_v22, 4 }
 0x66c   :  { %v2556_v52 = vadd.f32 %v2555_v63, %v2554_v22 }
 0x66e   :  { %v2557_v60 = vrot.slane %v2556_v52, 2 }
 0x670   :  { %v2558_v2 = vadd.f32 %v2557_v60, %v2556_v52 }
 0x672   :  { %v2559_v42 = vrot.slane %v2558_v2, 1 }
 0x674   :  { %v2560_v8 = vadd.f32 %v2559_v42, %v2558_v2 }
 0x676   :  { %v2561_v3 = vmul.f32 0.005, %v2560_v8 }
 0x678   :  { %v2562_v56 = vmax.f32 %v2561_v3, 0.0 }
 0x67a   :  { %v2563_v36 = vadd.f32 1e-05, %v2562_v56 }
 0x67c   :  { %3183 = vrsqrt.f32 %v2563_v36 }
 0x689   :  { %v3184_v55 = vpop.eup %3183 }
 0x68a   :  { %v4879_v14 = vmul.f32 %v3184_v55, %v2105_v16 }
 0x68c   :  { %v2566_v58 = vmul.f32 %v4879_v14, %v4796_v29  ;;  %v2570_v17 = vmul.f32 %v4879_v14, %v4677_v61  ;;  %v2568_v30 = vmul.f32 %v4879_v14, %v4670_v53  ;;  %v2571_v6 = vmul.f32 %v4879_v14, %v4682_v28 }
 0x68d   :  { %v2569_v1 = vmul.f32 %v4879_v14, %v4668_v33  ;;  %v2573_v53 = vmul.f32 %v4879_v14, %v4691_v21  ;;  %v2572_v28 = vmul.f32 %v4879_v14, %v4688_v39  ;;  %v2575_v39 = vmul.f32 %v4879_v14, %v4701_v19 }
 0x68e   :  { %v4888_v13 = vsub.f32 %v2106_v27, %v2566_v58  ;;  %v2574_v21 = vmul.f32 %v4879_v14, %v4696_v51  ;;  %v2577_v19 = vmul.f32 %v4879_v14, %v4711_v24  ;;  %v2576_v51 = vmul.f32 %v4879_v14, %v4706_v54 }
 0x68f   :  { %v2579_v24 = vmul.f32 %v4879_v14, %v4721_v50  ;;  %v2578_v54 = vmul.f32 %v4879_v14, %v4716_v34  ;;  %v2581_v50 = vmul.f32 %v4879_v14, %v4731_v7  ;;  %v2580_v34 = vmul.f32 %v4879_v14, %v4726_v35 }
 0x690   :  { %v2596_v29 = vadd.f32 %v2570_v17, %v4888_v13  ;;  %v2594_v61 = vadd.f32 %v2568_v30, %v4888_v13  ;;  %v2597_v31 = vadd.f32 %v2571_v6, %v4888_v13  ;;  %v2595_v5 = vadd.f32 %v2569_v1, %v4888_v13 }
 0x691   :  { %v2599_v37 = vadd.f32 %v2573_v53, %v4888_v13  ;;  %v2598_v47 = vadd.f32 %v2572_v28, %v4888_v13  ;;  %v2601_v38 = vadd.f32 %v2575_v39, %v4888_v13  ;;  %v2600_v43 = vadd.f32 %v2574_v21, %v4888_v13 }
 0x692   :  { %v2624_v33 = vmul.f32 %v4899_v40, %v2596_v29  ;;  %v2622_v32 = vmul.f32 %v4899_v40, %v2594_v61  ;;  %v2625_v41 = vmul.f32 %v4899_v40, %v2597_v31  ;;  %v2623_v0 = vmul.f32 %v4899_v40, %v2595_v5 }
 0x693   :  { %v2627_v45 = vmul.f32 %v4899_v40, %v2599_v37  ;;  %v2626_v11 = vmul.f32 %v4899_v40, %v2598_v47  ;;  %v2629_v62 = vmul.f32 %v4899_v40, %v2601_v38  ;;  %v2628_v22 = vmul.f32 %v4899_v40, %v2600_v43 }
 0x694   :  { %v2654_v10 = vsel %vm2367_vm3, %v2624_v33, 0.0  ;;  %v2648_v15 = vsel %vm2367_vm3, %v2622_v32, 0.0  ;;  %v2657_v18 = vsel %vm2367_vm3, %v2625_v41, 0.0  ;;  %v2651_v12 = vsel %vm2367_vm3, %v2623_v0, 0.0 }
 0x695   :  { %2655 = vadd.xlane.f32.xlu1 %v2654_v10  ;;  %2649 = vadd.xlane.f32.xlu0 %v2648_v15  ;;  %v2663_v63 = vsel %vm2367_vm3, %v2627_v45, 0.0  ;;  %v2660_v52 = vsel %vm2367_vm3, %v2626_v11, 0.0  ;;  %v2603_v60 = vadd.f32 %v2577_v19, %v4888_v13  ;;  %v2602_v2 = vadd.f32 %v2576_v51, %v4888_v13 }
 0x696   :  { %v2669_v42 = vsel %vm2367_vm3, %v2629_v62, 0.0  ;;  %v2605_v8 = vadd.f32 %v2579_v24, %v4888_v13  ;;  %v2666_v3 = vsel %vm2367_vm3, %v2628_v22, 0.0  ;;  %v2604_v16 = vadd.f32 %v2578_v54, %v4888_v13 }
 0x697   :  { %v2631_v56 = vmul.f32 %v4899_v40, %v2603_v60  ;;  %v2630_v36 = vmul.f32 %v4899_v40, %v2602_v2  ;;  %v2607_v27 = vadd.f32 %v2581_v50, %v4888_v13  ;;  %v2606_v6 = vadd.f32 %v2580_v34, %v4888_v13 }
 0x698   :  { %v2633_v55 = vmul.f32 %v4899_v40, %v2605_v8  ;;  %v2632_v30 = vmul.f32 %v4899_v40, %v2604_v16  ;;  %v2583_v7 = vmul.f32 %v4879_v14, %v4741_v25  ;;  %v2582_v35 = vmul.f32 %v4879_v14, %v4736_v44 }
 0x699   :  { %2658 = vadd.xlane.f32.xlu1 %v2657_v18  ;;  %2652 = vadd.xlane.f32.xlu0 %v2651_v12  ;;  %v2675_v58 = vsel %vm2367_vm3, %v2631_v56, 0.0  ;;  %v2672_v17 = vsel %vm2367_vm3, %v2630_v36, 0.0  ;;  %v2635_v1 = vmul.f32 %v4899_v40, %v2607_v27  ;;  %v2634_v5 = vmul.f32 %v4899_v40, %v2606_v6 }
 0x69a   :  { %v2609_v29 = vadd.f32 %v2583_v7, %v4888_v13  ;;  %v2681_v61 = vsel %vm2367_vm3, %v2633_v55, 0.0  ;;  %v2678_v31 = vsel %vm2367_vm3, %v2632_v30, 0.0  ;;  %v2608_v53 = vadd.f32 %v2582_v35, %v4888_v13 }
 0x69b   :  { %v2585_v25 = vmul.f32 %v4879_v14, %v4751_v46  ;;  %v2584_v44 = vmul.f32 %v4879_v14, %v4746_v48  ;;  %v2687_v28 = vsel %vm2367_vm3, %v2635_v1, 0.0  ;;  %v2684_v32 = vsel %vm2367_vm3, %v2634_v5, 0.0 }
 0x69c   :  { %v2637_v33 = vmul.f32 %v4899_v40, %v2609_v29  ;;  %v2636_v37 = vmul.f32 %v4899_v40, %v2608_v53  ;;  %v2587_v46 = vmul.f32 %v4879_v14, %v4761_v4  ;;  %v2586_v48 = vmul.f32 %v4879_v14, %v4756_v57 }
 0x69d   :  { %2664 = vadd.xlane.f32.xlu1 %v2663_v63  ;;  %2661 = vadd.xlane.f32.xlu0 %v2660_v52  ;;  %v2611_v47 = vadd.f32 %v2585_v25, %v4888_v13  ;;  %v2610_v10 = vadd.f32 %v2584_v44, %v4888_v13  ;;  %v2589_v4 = vmul.f32 %v4879_v14, %v4771_v26 }
 0x69e   :  { %v2693_v15 = vsel %vm2367_vm3, %v2637_v33, 0.0  ;;  %v2613_v41 = vadd.f32 %v2587_v46, %v4888_v13  ;;  %v2690_v0 = vsel %vm2367_vm3, %v2636_v37, 0.0  ;;  %v2612_v38 = vadd.f32 %v2586_v48, %v4888_v13 }
 0x69f   :  { %v2639_v39 = vmul.f32 %v4899_v40, %v2611_v47  ;;  %v2638_v21 = vmul.f32 %v4899_v40, %v2610_v10  ;;  %v2588_v57 = vmul.f32 %v4879_v14, %v4766_v49  ;;  %v2615_v18 = vadd.f32 %v2589_v4, %v4888_v13 }
 0x6a0   :  { %v2641_v43 = vmul.f32 %v4899_v40, %v2613_v41  ;;  %v2640_v11 = vmul.f32 %v4899_v40, %v2612_v38  ;;  %v2591_v26 = vmul.f32 %v4879_v14, %v4780_v9  ;;  %v2590_v49 = vmul.f32 %v4879_v14, %v4776_v23 }
 0x6a1   :  { %2670 = vadd.xlane.f32.xlu1 %v2669_v42  ;;  %2667 = vadd.xlane.f32.xlu0 %v2666_v3  ;;  %v2699_v12 = vsel %vm2367_vm3, %v2639_v39, 0.0  ;;  %v2696_v45 = vsel %vm2367_vm3, %v2638_v21, 0.0  ;;  %v2614_v19 = vadd.f32 %v2588_v57, %v4888_v13  ;;  %v2643_v51 = vmul.f32 %v4899_v40, %v2615_v18 }
 0x6a2   :  { %v2617_v62 = vadd.f32 %v2591_v26, %v4888_v13  ;;  %v2705_v22 = vsel %vm2367_vm3, %v2641_v43, 0.0  ;;  %v2702_v63 = vsel %vm2367_vm3, %v2640_v11, 0.0  ;;  %v2616_v60 = vadd.f32 %v2590_v49, %v4888_v13 }
 0x6a3   :  { %v2642_v52 = vmul.f32 %v4899_v40, %v2614_v19  ;;  %v2593_v9 = vmul.f32 %v4879_v14, %v4792_v59  ;;  %v2592_v23 = vmul.f32 %v4879_v14, %v4785_v20  ;;  %v2711_v2 = vsel %vm2367_vm3, %v2643_v51, 0.0 }
 0x6a4   :  { %v2645_v24 = vmul.f32 %v4899_v40, %v2617_v62  ;;  %v2644_v42 = vmul.f32 %v4899_v40, %v2616_v60 }
 0x6a5   :  { %2676 = vadd.xlane.f32.xlu1 %v2675_v58  ;;  %2673 = vadd.xlane.f32.xlu0 %v2672_v17  ;;  %v2708_v54 = vsel %vm2367_vm3, %v2642_v52, 0.0  ;;  %v2619_v8 = vadd.f32 %v2593_v9, %v4888_v13  ;;  %v2618_v3 = vadd.f32 %v2592_v23, %v4888_v13  ;;  %v5026_v13 = vld [vmem:[%s5160_s5 + $0x15] ss:$0 sm:$0xff] }
 0x6a6   :  { %v2717_v56 = vsel %vm2367_vm3, %v2645_v24, 0.0  ;;  %v2714_v59 = vsel %vm2367_vm3, %v2644_v42, 0.0 }
 0x6a7   :  { %v2647_v20 = vmul.f32 %v4899_v40, %v2619_v8  ;;  %v2646_v14 = vmul.f32 %v4899_v40, %v2618_v3 }
 0x6a9   :  { %2682 = vadd.xlane.f32.xlu1 %v2681_v61  ;;  %2679 = vadd.xlane.f32.xlu0 %v2678_v31  ;;  %v2723_v36 = vsel %vm2367_vm3, %v2647_v20, 0.0  ;;  %v2720_v16 = vsel %vm2367_vm3, %v2646_v14, 0.0 }
 0x6ad   :  { %2688 = vadd.xlane.f32.xlu1 %v2687_v28  ;;  %2685 = vadd.xlane.f32.xlu0 %v2684_v32 }
 0x6b1   :  { %2694 = vadd.xlane.f32.xlu1 %v2693_v15  ;;  %2691 = vadd.xlane.f32.xlu0 %v2690_v0 }
 0x6b5   :  { %2700 = vadd.xlane.f32.xlu1 %v2699_v12  ;;  %2697 = vadd.xlane.f32.xlu0 %v2696_v45 }
 0x6b9   :  { %2706 = vadd.xlane.f32.xlu1 %v2705_v22  ;;  %2703 = vadd.xlane.f32.xlu0 %v2702_v63 }
 0x6bd   :  { %2712 = vadd.xlane.f32.xlu1 %v2711_v2  ;;  %2709 = vadd.xlane.f32.xlu0 %v2708_v54 }
 0x6c1   :  { %2718 = vadd.xlane.f32.xlu1 %v2717_v56  ;;  %2715 = vadd.xlane.f32.xlu0 %v2714_v59 }
 0x6c5   :  { %2724 = vadd.xlane.f32.xlu1 %v2723_v36  ;;  %2721 = vadd.xlane.f32.xlu0 %v2720_v16 }
 0x71e   :  { %v2656_v50 = vpop.xlane.xlu1 %2655  ;;  %v2650_v34 = vpop.xlane.xlu0 %2649 }
 0x71f   :  { %v2728_v55 = vadd.f32 %v2656_v50, %v5026_v13  ;;  %v2726_v40 = vadd.f32 %v2650_v34, %v5026_v13 }
 0x721   :  { %2755 = vst.msk [vmem:[%s5164_s6 + $0x10] sm:$0xff] %vm2752_vm4, %v2728_v55  ;;  %2753 = vst.msk [vmem:[%s5164_s6] sm:$0xff] %vm2752_vm4, %v2726_v40 }
 0x722   :  { %v2659_v27 = vpop.xlane.xlu1 %2658  ;;  %v2653_v58 = vpop.xlane.xlu0 %2652 }
 0x723   :  { %v2729_v17 = vadd.f32 %v2659_v27, %v5026_v13  ;;  %v2727_v30 = vadd.f32 %v2653_v58, %v5026_v13 }
 0x725   :  { %2756 = vst.msk [vmem:[%s5164_s6 + $0x18] sm:$0xff] %vm2752_vm4, %v2729_v17  ;;  %2754 = vst.msk [vmem:[%s5164_s6 + $0x8] sm:$0xff] %vm2752_vm4, %v2727_v30 }
 0x726   :  { %v2665_v6 = vpop.xlane.xlu1 %2664  ;;  %v2662_v7 = vpop.xlane.xlu0 %2661 }
 0x727   :  { %v2731_v35 = vadd.f32 %v2665_v6, %v5026_v13  ;;  %v2730_v1 = vadd.f32 %v2662_v7, %v5026_v13 }
 0x729   :  { %2758 = vst.msk [vmem:[%s5164_s6 + $0x28] sm:$0xff] %vm2752_vm4, %v2731_v35  ;;  %2757 = vst.msk [vmem:[%s5164_s6 + $0x20] sm:$0xff] %vm2752_vm4, %v2730_v1 }
 0x72a   :  { %v2671_v29 = vpop.xlane.xlu1 %2670  ;;  %v2668_v61 = vpop.xlane.xlu0 %2667 }
 0x72b   :  { %v2733_v31 = vadd.f32 %v2671_v29, %v5026_v13  ;;  %v2732_v5 = vadd.f32 %v2668_v61, %v5026_v13 }
 0x72d   :  { %2760 = vst.msk [vmem:[%s5164_s6 + $0x38] sm:$0xff] %vm2752_vm4, %v2733_v31  ;;  %2759 = vst.msk [vmem:[%s5164_s6 + $0x30] sm:$0xff] %vm2752_vm4, %v2732_v5 }
 0x72e   :  { %v2677_v53 = vpop.xlane.xlu1 %2676  ;;  %v2674_v25 = vpop.xlane.xlu0 %2673 }
 0x72f   :  { %v2735_v44 = vadd.f32 %v2677_v53, %v5026_v13  ;;  %v2734_v28 = vadd.f32 %v2674_v25, %v5026_v13 }
 0x731   :  { %2762 = vst.msk [vmem:[%s5164_s6 + $0x48] sm:$0xff] %vm2752_vm4, %v2735_v44  ;;  %2761 = vst.msk [vmem:[%s5164_s6 + $0x40] sm:$0xff] %vm2752_vm4, %v2734_v28 }
 0x732   :  { %v2683_v33 = vpop.xlane.xlu1 %2682  ;;  %v2680_v32 = vpop.xlane.xlu0 %2679 }
 0x733   :  { %v2737_v37 = vadd.f32 %v2683_v33, %v5026_v13  ;;  %v2736_v47 = vadd.f32 %v2680_v32, %v5026_v13 }
 0x735   :  { %2764 = vst.msk [vmem:[%s5164_s6 + $0x58] sm:$0xff] %vm2752_vm4, %v2737_v37  ;;  %2763 = vst.msk [vmem:[%s5164_s6 + $0x50] sm:$0xff] %vm2752_vm4, %v2736_v47 }
 0x736   :  { %v2689_v10 = vpop.xlane.xlu1 %2688  ;;  %v2686_v46 = vpop.xlane.xlu0 %2685 }
 0x737   :  { %v2739_v48 = vadd.f32 %v2689_v10, %v5026_v13  ;;  %v2738_v15 = vadd.f32 %v2686_v46, %v5026_v13 }
 0x739   :  { %2766 = vst.msk [vmem:[%s5164_s6 + $0x68] sm:$0xff] %vm2752_vm4, %v2739_v48  ;;  %2765 = vst.msk [vmem:[%s5164_s6 + $0x60] sm:$0xff] %vm2752_vm4, %v2738_v15 }
 0x73a   :  { %v2695_v41 = vpop.xlane.xlu1 %2694  ;;  %v2692_v0 = vpop.xlane.xlu0 %2691 }
 0x73b   :  { %v2741_v39 = vadd.f32 %v2695_v41, %v5026_v13  ;;  %v2740_v21 = vadd.f32 %v2692_v0, %v5026_v13 }
 0x73d   :  { %2768 = vst.msk [vmem:[%s5164_s6 + $0x78] sm:$0xff] %vm2752_vm4, %v2741_v39  ;;  %2767 = vst.msk [vmem:[%s5164_s6 + $0x70] sm:$0xff] %vm2752_vm4, %v2740_v21 }
 0x73e   :  { %v2701_v38 = vpop.xlane.xlu1 %2700  ;;  %v2698_v4 = vpop.xlane.xlu0 %2697 }
 0x73f   :  { %v2743_v57 = vadd.f32 %v2701_v38, %v5026_v13  ;;  %v2742_v43 = vadd.f32 %v2698_v4, %v5026_v13 }
 0x741   :  { %2770 = vst.msk [vmem:[%s5164_s6 + $0x88] sm:$0xff] %vm2752_vm4, %v2743_v57  ;;  %2769 = vst.msk [vmem:[%s5164_s6 + $0x80] sm:$0xff] %vm2752_vm4, %v2742_v43 }
 0x742   :  { %v2707_v18 = vpop.xlane.xlu1 %2706  ;;  %v2704_v12 = vpop.xlane.xlu0 %2703 }
 0x743   :  { %v2745_v45 = vadd.f32 %v2707_v18, %v5026_v13  ;;  %v2744_v11 = vadd.f32 %v2704_v12, %v5026_v13 }
 0x745   :  { %2772 = vst.msk [vmem:[%s5164_s6 + $0x98] sm:$0xff] %vm2752_vm4, %v2745_v45  ;;  %2771 = vst.msk [vmem:[%s5164_s6 + $0x90] sm:$0xff] %vm2752_vm4, %v2744_v11 }
 0x746   :  { %v2713_v19 = vpop.xlane.xlu1 %2712  ;;  %v2710_v26 = vpop.xlane.xlu0 %2709 }
 0x747   :  { %v2747_v49 = vadd.f32 %v2713_v19, %v5026_v13  ;;  %v2746_v51 = vadd.f32 %v2710_v26, %v5026_v13 }
 0x749   :  { %2774 = vst.msk [vmem:[%s5164_s6 + $0xa8] sm:$0xff] %vm2752_vm4, %v2747_v49  ;;  %2773 = vst.msk [vmem:[%s5164_s6 + $0xa0] sm:$0xff] %vm2752_vm4, %v2746_v51 }
 0x74a   :  { %v2719_v62 = vpop.xlane.xlu1 %2718  ;;  %v2716_v22 = vpop.xlane.xlu0 %2715 }
 0x74b   :  { %v2749_v63 = vadd.f32 %v2719_v62, %v5026_v13  ;;  %v2748_v52 = vadd.f32 %v2716_v22, %v5026_v13 }
 0x74d   :  { %2776 = vst.msk [vmem:[%s5164_s6 + $0xb8] sm:$0xff] %vm2752_vm4, %v2749_v63  ;;  %2775 = vst.msk [vmem:[%s5164_s6 + $0xb0] sm:$0xff] %vm2752_vm4, %v2748_v52 }
 0x74e   :  { %v2725_v60 = vpop.xlane.xlu1 %2724  ;;  %v2722_v9 = vpop.xlane.xlu0 %2721 }
 0x74f   :  { %v2751_v23 = vadd.f32 %v2725_v60, %v5026_v13  ;;  %v2750_v2 = vadd.f32 %v2722_v9, %v5026_v13 }
 0x751   :  { %2778 = vst.msk [vmem:[%s5164_s6 + $0xc8] sm:$0xff] %vm2752_vm4, %v2751_v23  ;;  %2777 = vst.msk [vmem:[%s5164_s6 + $0xc0] sm:$0xff] %vm2752_vm4, %v2750_v2 }

</bundles_post_ra>
